<compile_context>
chip_gen: v6e
topology: v6e:2x2x1
jax: 0.10.0
libtpu: 0.0.40
codegen_flags: <defaults>
</compile_context>

<pallas_src>
import numpy as np
import jax
import jax.numpy as jnp
from jax.experimental import pallas as pl
from jax.experimental.pallas import tpu as pltpu


def _round_up(a, m):
    return ((a + m - 1) // m) * m


def _make_dense_kernel(H, W, radius, temperature):
    """Builds the per-image dense kernel, its scratch shapes and a VMEM estimate.

    Dense outputs per pixel:
      nms   : simple_nms(scores, radius) with border zeroing applied
      rx,ry : soft-argmax sub-pixel residual (x offset, y offset)
      disp  : score dispersity
    """
    K = 2 * radius + 1
    # Top/left halos rounded up so the HxW interior store starts at an
    # (8,128)-aligned origin; bottom/right halos stay at `radius`.
    TOP = max(_round_up(radius, 8), radius)
    LEFT = max(_round_up(radius, 128), radius)
    PH = TOP + H + radius
    PW = LEFT + W + radius
    HB = H + 2 * radius                 # rows read by the KxK window
    CW = W + 2 * radius                 # cols read by the KxK window
    NEG = -1e30                         # stands in for max_pool2d's -inf padding
    inv_t = 1.0 / float(temperature)
    inv_r2 = 1.0 / float(radius * radius)

    def kernel(x_ref, nms_ref, rx_ref, ry_ref, disp_ref,
               pad_ref, hbuf_ref, cbuf_ref):
        x = x_ref[0]                    # [H, W]

        # ------------------------- scratch helpers -------------------------
        def fill(shape, val):
            return jnp.broadcast_to(jnp.asarray(val, jnp.float32), shape)

        def set_interior(arr):
            # aligned (8,128) origin -> unmasked full-tile stores
            pad_ref[TOP:TOP + H, LEFT:LEFT + W] = arr

        def set_margins(val):
            # Wide, lane-aligned margin fills (top/bottom full width, left a
            # full 128-lane strip): same store-tile count as the thin radius
            # ring but unmasked where possible.  Only the thin ring is read.
            pad_ref[0:TOP, :] = fill((TOP, PW), val)
            pad_ref[TOP + H:PH, :] = fill((radius, PW), val)
            pad_ref[TOP:TOP + H, 0:LEFT] = fill((H, LEFT), val)
            pad_ref[TOP:TOP + H, LEFT + W:PW] = fill((H, radius), val)

        def sep_maxpool():
            # separable KxK max pool (stride 1, same padding):
            #   K lane(dx)-shifted reads -> row max [HB, W] stored once so the
            #   K sublane(dy) slices are cheap loads.
            h = pad_ref[TOP - radius:TOP + H + radius,
                        LEFT - radius:LEFT - radius + W]
            for dx in range(1, K):
                h = jnp.maximum(
                    h, pad_ref[TOP - radius:TOP + H + radius,
                               LEFT - radius + dx:LEFT - radius + dx + W])
            hbuf_ref[...] = h
            m = hbuf_ref[0:H, :]
            for dy in range(1, K):
                m = jnp.maximum(m, hbuf_ref[dy:dy + H, :])
            return m

        # -------- phase A: simple_nms (max_pool2d semantics, -inf padding) --------
        set_margins(NEG)
        set_interior(x)
        max_mask = x == sep_maxpool()
        for _ in range(2):
            set_interior(max_mask.astype(jnp.float32))
            supp_mask = sep_maxpool() > 0.0
            supp_scores = jnp.where(supp_mask, 0.0, x)
            set_interior(supp_scores)
            new_max_mask = supp_scores == sep_maxpool()
            max_mask = max_mask | (new_max_mask & jnp.logical_not(supp_mask))
        nms = jnp.where(max_mask, x, 0.0)

        # border zeroing:  [:r+1], [h-r:], [:r+1], [w-r:]
        row = jax.lax.broadcasted_iota(jnp.int32, (H, W), 0)
        col = jax.lax.broadcasted_iota(jnp.int32, (H, W), 1)
        keep = ((row >= radius + 1) & (row < H - radius) &
                (col >= radius + 1) & (col < W - radius))
        nms_ref[0] = jnp.where(keep, nms, 0.0)

        # -------- phase B: dense soft-argmax (nn.Unfold zero padding) --------
        # Single exp of the stabilised slab; the per-image stabiliser (and the
        # old per-pixel one) cancels exactly in the rx/ry/disp ratios.
        gmax = jnp.max(x, keepdims=True)              # (1,1), per-image
        ering = jnp.exp(-gmax * inv_t)                # exp of a zero-padded cell
        set_margins(ering)
        set_interior(jnp.exp((x - gmax) * inv_t))

        # RowSum over dx -> hbuf [HB, W]   (K lane-shifted adds, 1 slab store)
        r_acc = pad_ref[TOP - radius:TOP + H + radius,
                        LEFT - radius:LEFT - radius + W]
        for dx in range(1, K):
            r_acc = r_acc + pad_ref[TOP - radius:TOP + H + radius,
                                    LEFT - radius + dx:LEFT - radius + dx + W]
        hbuf_ref[...] = r_acc

        # ColSum over dy -> cbuf [H, W+2r] (K sublane-shifted adds, 1 slab store)
        c_acc = pad_ref[TOP - radius:TOP - radius + H,
                        LEFT - radius:LEFT - radius + CW]
        for dy in range(1, K):
            c_acc = c_acc + pad_ref[TOP - radius + dy:TOP - radius + dy + H,
                                    LEFT - radius:LEFT - radius + CW]
        cbuf_ref[...] = c_acc

        # dy loop: s_exp, s_y, s_d2(gy) from K cheap sublane slices of RowSum
        tap = hbuf_ref[0:H, :]
        s_exp = tap
        s_y = tap * float(-radius)
        s_d2 = tap * float(radius * radius)
        for dy in range(1, K):
            gy = float(dy - radius)
            tap = hbuf_ref[dy:dy + H, :]
            s_exp = s_exp + tap
            if gy != 0.0:
                s_y = s_y + tap * gy
            if gy * gy != 0.0:
                s_d2 = s_d2 + tap * (gy * gy)

        # dx loop: s_x, s_d2(gx) from K-1 lane slices of ColSum (gx=0 tap skipped)
        tap = cbuf_ref[:, 0:W]
        s_x = tap * float(-radius)
        s_d2 = s_d2 + tap * float(radius * radius)
        for dx in range(1, K):
            gx = float(dx - radius)
            if gx == 0.0:
                continue
            tap = cbuf_ref[:, dx:dx + W]
            s_x = s_x + tap * gx
            s_d2 = s_d2 + tap * (gx * gx)

        s_exp = jnp.maximum(s_exp, 1e-20)             # guard pathological underflow
        inv_sum = pl.reciprocal(s_exp, approx=True)   # EUP approximate path
        rx = s_x * inv_sum
        ry = s_y * inv_sum
        # sum(e*((gx-rx)^2+(gy-ry)^2))/sum(e) == S2/S - rx^2 - ry^2  (exact identity)
        disp = (s_d2 * inv_sum - rx * rx - ry * ry) * inv_r2
        rx_ref[0] = rx
        ry_ref[0] = ry
        disp_ref[0] = disp

    scratch = [pltpu.VMEM((PH, PW), jnp.float32),     # padded slab (x, then E)
               pltpu.VMEM((HB, W), jnp.float32),      # row-max / RowSum buffer
               pltpu.VMEM((H, CW), jnp.float32)]      # ColSum buffer
    # rough per-step footprint: scratch + double-buffered in/out blocks + live slabs
    vmem_est = 4 * (PH * PW + HB * W + H * CW) + 4 * H * W * (2 + 8 + 10)
    return kernel, scratch, vmem_est


def run_dense(scores, radius, temperature):
    """scores: [B, H, W] fp32 -> (nms, rx, ry, disp) each [B, H, W] fp32."""
    B, H, W = scores.shape
    kernel, scratch, vmem_est = _make_dense_kernel(H, W, radius, temperature)
    spec = pl.BlockSpec((1, H, W), lambda b: (b, 0, 0))
    out_sds = tuple(jax.ShapeDtypeStruct((B, H, W), jnp.float32) for _ in range(4))
    vmem_limit = int(min(max(2 * vmem_est, 32 * 1024 * 1024), 100 * 1024 * 1024))
    return pl.pallas_call(
        kernel,
        out_shape=out_sds,
        grid_spec=pltpu.PrefetchScalarGridSpec(
            num_scalar_prefetch=0,
            grid=(B,),
            in_specs=[spec],
            out_specs=(spec, spec, spec, spec),
            scratch_shapes=scratch,
        ),
        compiler_params=pltpu.CompilerParams(
            dimension_semantics=("parallel",),        # images independent
            vmem_limit_bytes=vmem_limit,
        ),
    )(scores)


def _bilinear_sample(img, px, py):
    """grid_sample(bilinear, align_corners=True, padding_mode='zeros') at pixel coords."""
    Hh, Ww = img.shape
    x0 = np.floor(px)
    y0 = np.floor(py)
    x1 = x0 + 1.0
    y1 = y0 + 1.0
    wx = px - x0
    wy = py - y0

    def tap(yy, xx):
        inb = (xx >= 0) & (xx <= Ww - 1) & (yy >= 0) & (yy <= Hh - 1)
        xi = np.clip(xx, 0, Ww - 1).astype(np.int64)
        yi = np.clip(yy, 0, Hh - 1).astype(np.int64)
        return np.where(inb, img[yi, xi], 0.0)

    return (tap(y0, x0) * (1 - wx) * (1 - wy) + tap(y0, x1) * wx * (1 - wy) +
            tap(y1, x0) * (1 - wx) * wy + tap(y1, x1) * wx * wy)


class SoftDetect:
    """JAX/Pallas port of SoftDetect (no learned parameters; hw_grid derived from radius)."""

    def __init__(self, radius=2, top_k=0, scores_th=0.2, n_limit=20000):
        self.radius = radius
        self.top_k = top_k
        self.scores_th = scores_th
        self.n_limit = n_limit
        self.temperature = 0.1

    def forward(self, scores_map, normalized_coordinates=True):
        scores_map = jnp.asarray(scores_map, jnp.float32)
        B, C, H, W = scores_map.shape
        scores = scores_map[:, 0]  # [B, H, W]

        dense = run_dense(scores, self.radius, self.temperature)
        dense = jax.block_until_ready(dense)
        nms, rx, ry, disp = (np.asarray(t) for t in dense)
        scores_np = np.asarray(scores)

        # ----- keypoint index selection (variable length -> host-side glue) -----
        if self.top_k > 0:
            flat = nms.reshape(B, -1)
            indices_list = [np.argsort(-flat[b], kind="stable")[: self.top_k] for b in range(B)]
        else:
            if self.scores_th > 0:
                masks = nms > self.scores_th
                if masks.sum() == 0:
                    th = scores_np.reshape(B, -1).mean(axis=1)
                    masks = nms > th[:, None, None]
            else:
                th = scores_np.reshape(B, -1).mean(axis=1)
                masks = nms > th[:, None, None]
            masks = masks.reshape(B, -1)
            scores_flat = scores_np.reshape(B, -1)
            indices_list = []
            for b in range(B):
                idx = np.nonzero(masks[b])[0]
                if len(idx) > self.n_limit:
                    kpts_sc = scores_flat[b][idx]
                    sel = np.argsort(-kpts_sc, kind="stable")[: self.n_limit]
                    idx = idx[sel]
                indices_list.append(idx)

        rx_f = rx.reshape(B, -1)
        ry_f = ry.reshape(B, -1)
        disp_f = disp.reshape(B, -1)

        keypoints, scoredispersitys, kptscores = [], [], []
        for b in range(B):
            idx = indices_list[b]
            res_x = rx_f[b][idx]
            res_y = ry_f[b][idx]
            kx = (idx % W).astype(np.float32) + res_x
            ky = (idx // W).astype(np.float32) + res_y
            kpts_xy = np.stack([kx, ky], axis=1).astype(np.float32)
            if normalized_coordinates:
                kpts_xy = kpts_xy / np.array([W - 1, H - 1], np.float32) * 2.0 - 1.0
            # grid_sample(bilinear, align_corners=True): normalized -> pixel coords
            px = (kpts_xy[:, 0] + 1.0) * 0.5 * (W - 1)
            py = (kpts_xy[:, 1] + 1.0) * 0.5 * (H - 1)
            kptscore = _bilinear_sample(scores_np[b], px, py).astype(np.float32)

            keypoints.append(kpts_xy)
            scoredispersitys.append(disp_f[b][idx].astype(np.float32))
            kptscores.append(kptscore)

        # forward returns (keypoints, kptscores, scoredispersitys)
        return keypoints, kptscores, scoredispersitys

    __call__ = forward


def _reference_dense(scores, radius, temperature):
    """Pure-numpy reference of the dense outputs (f64 softmax, torch semantics)."""
    B, H, W = scores.shape
    K = 2 * radius + 1
    nms_o = np.zeros((B, H, W), np.float64)
    rx_o = np.zeros((B, H, W), np.float64)
    ry_o = np.zeros((B, H, W), np.float64)
    disp_o = np.zeros((B, H, W), np.float64)
    for b in range(B):
        s = scores[b].astype(np.float64)

        def maxpool(a):
            p = np.full((H + 2 * radius, W + 2 * radius), -np.inf, np.float64)
            p[radius:radius + H, radius:radius + W] = a
            out = np.full((H, W), -np.inf, np.float64)
            for dy in range(K):
                for dx in range(K):
                    out = np.maximum(out, p[dy:dy + H, dx:dx + W])
            return out

        max_mask = s == maxpool(s)
        for _ in range(2):
            supp_mask = maxpool(max_mask.astype(np.float64)) > 0
            supp_scores = np.where(supp_mask, 0.0, s)
            new_max = supp_scores == maxpool(supp_scores)
            max_mask = max_mask | (new_max & ~supp_mask)
        nms = np.where(max_mask, s, 0.0)
        nms[:radius + 1, :] = 0.0
        nms[:, :radius + 1] = 0.0
        nms[H - radius:, :] = 0.0
        nms[:, W - radius:] = 0.0
        nms_o[b] = nms

        p = np.zeros((H + 2 * radius, W + 2 * radius), np.float64)
        p[radius:radius + H, radius:radius + W] = s
        taps = np.stack([p[dy:dy + H, dx:dx + W]
                         for dy in range(K) for dx in range(K)], axis=0)
        gx = np.array([(j % K) - radius for j in range(K * K)], np.float64).reshape(-1, 1, 1)
        gy = np.array([(j // K) - radius for j in range(K * K)], np.float64).reshape(-1, 1, 1)
        mx = taps.max(axis=0, keepdims=True)
        e = np.exp((taps - mx) / temperature)
        ssum = e.sum(0)
        rx = (e * gx).sum(0) / ssum
        ry = (e * gy).sum(0) / ssum
        d2 = ((gx - rx) ** 2 + (gy - ry) ** 2) / float(radius * radius)
        disp_o[b] = (e * d2).sum(0) / ssum
        rx_o[b] = rx
        ry_o[b] = ry
    return nms_o, rx_o, ry_o, disp_o


if __name__ == "__main__":
    key = jax.random.PRNGKey(0)
    B, H, W = 2, 32, 128  # W kept lane-dense (multiple of 128)
    # score maps in [0, 1] (like a sigmoid detector head)
    scores_map = jax.random.uniform(key, (B, 1, H, W), dtype=jnp.float32)

    # --- dense kernel vs pure-numpy reference ---
    scores_np = np.asarray(scores_map)[:, 0]
    dense = jax.block_until_ready(run_dense(jnp.asarray(scores_np), 2, 0.1))
    nms_k, rx_k, ry_k, disp_k = (np.asarray(t) for t in dense)
    nms_r, rx_r, ry_r, disp_r = _reference_dense(scores_np, 2, 0.1)
    assert np.allclose(nms_k, nms_r, atol=1e-6)
    assert np.allclose(rx_k, rx_r, atol=2e-2)
    assert np.allclose(ry_k, ry_r, atol=2e-2)
    assert np.allclose(disp_k, disp_r, atol=5e-2)

    # --- full forward pass ---
    det = SoftDetect(radius=2, top_k=0, scores_th=0.2, n_limit=20000)
    keypoints, kptscores, scoredispersitys = det(scores_map)

    assert len(keypoints) == B and len(kptscores) == B and len(scoredispersitys) == B
    for b in range(B):
        n = keypoints[b].shape[0]
        assert keypoints[b].shape == (n, 2)
        assert kptscores[b].shape == (n,)
        assert scoredispersitys[b].shape == (n,)
        if n > 0:
            assert np.all(keypoints[b] >= -1.0 - 1e-4) and np.all(keypoints[b] <= 1.0 + 1e-4)
            assert np.all(np.isfinite(kptscores[b]))
            # small negative values possible from f32 cancellation + approx reciprocal
            assert np.all(scoredispersitys[b] >= -1e-3)

    print("KERNEL_OK")
</pallas_src>

<mosaic_0001>
module attributes {stable_mosaic.version = 11 : i64} {
  func.func @kernel(%arg0: i32, %arg1: memref<1x32x128xf32, #tpu.memory_space<vmem>>, %arg2: memref<1x32x128xf32, #tpu.memory_space<vmem>>, %arg3: memref<1x32x128xf32, #tpu.memory_space<vmem>>, %arg4: memref<1x32x128xf32, #tpu.memory_space<vmem>>, %arg5: memref<1x32x128xf32, #tpu.memory_space<vmem>>, %arg6: memref<42x258xf32, #tpu.memory_space<vmem>>, %arg7: memref<36x128xf32, #tpu.memory_space<vmem>>, %arg8: memref<32x132xf32, #tpu.memory_space<vmem>>) attributes {dimension_semantics = [#tpu.dimension_semantics<parallel>], iteration_bounds = array<i64: 2>, scalar_prefetch = 0 : i64, scratch_operands = 3 : i64, tpu.core_type = #tpu.core_type<tc>, window_params = [{transform_indices = @transform_0, window_bounds = array<i64: 1, 32, 128>}, {transform_indices = @transform_1, window_bounds = array<i64: 1, 32, 128>}, {transform_indices = @transform_2, window_bounds = array<i64: 1, 32, 128>}, {transform_indices = @transform_3, window_bounds = array<i64: 1, 32, 128>}, {transform_indices = @transform_4, window_bounds = array<i64: 1, 32, 128>}]} {
    %c0 = arith.constant 0 : index
    %c0_0 = arith.constant 0 : index
    %c0_1 = arith.constant 0 : index
    %0 = vector.load %arg1[%c0, %c0_0, %c0_1] : memref<1x32x128xf32, #tpu.memory_space<vmem>>, vector<1x32x128xf32>
    %1 = vector.shape_cast %0 : vector<1x32x128xf32> to vector<32x128xf32>
    %cst = arith.constant -1.000000e+30 : f32
    %2 = vector.broadcast %cst : f32 to vector<8x258xf32>
    %c0_2 = arith.constant 0 : index
    %c0_3 = arith.constant 0 : index
    %3 = vector.load %arg6[%c0_2, %c0_3] : memref<42x258xf32, #tpu.memory_space<vmem>>, vector<8x258xf32>
    tpu.vector_store %arg6[%c0_2, %c0_3], %2 {strides = array<i32>} : memref<42x258xf32, #tpu.memory_space<vmem>>, vector<8x258xf32>,
    %cst_4 = arith.constant -1.000000e+30 : f32
    %4 = vector.broadcast %cst_4 : f32 to vector<2x258xf32>
    %c40 = arith.constant 40 : index
    %c0_5 = arith.constant 0 : index
    %5 = vector.load %arg6[%c40, %c0_5] : memref<42x258xf32, #tpu.memory_space<vmem>>, vector<2x258xf32>
    tpu.vector_store %arg6[%c40, %c0_5], %4 {strides = array<i32>} : memref<42x258xf32, #tpu.memory_space<vmem>>, vector<2x258xf32>,
    %cst_6 = arith.constant -1.000000e+30 : f32
    %6 = vector.broadcast %cst_6 : f32 to vector<32x128xf32>
    %c8 = arith.constant 8 : index
    %c0_7 = arith.constant 0 : index
    %7 = vector.load %arg6[%c8, %c0_7] : memref<42x258xf32, #tpu.memory_space<vmem>>, vector<32x128xf32>
    tpu.vector_store %arg6[%c8, %c0_7], %6 {strides = array<i32>} : memref<42x258xf32, #tpu.memory_space<vmem>>, vector<32x128xf32>,
    %cst_8 = arith.constant -1.000000e+30 : f32
    %8 = vector.broadcast %cst_8 : f32 to vector<32x2xf32>
    %c8_9 = arith.constant 8 : index
    %c256 = arith.constant 256 : index
    %9 = vector.load %arg6[%c8_9, %c256] : memref<42x258xf32, #tpu.memory_space<vmem>>, vector<32x2xf32>
    tpu.vector_store %arg6[%c8_9, %c256], %8 {strides = array<i32>} : memref<42x258xf32, #tpu.memory_space<vmem>>, vector<32x2xf32>,
    %c8_10 = arith.constant 8 : index
    %c128 = arith.constant 128 : index
    %10 = vector.load %arg6[%c8_10, %c128] : memref<42x258xf32, #tpu.memory_space<vmem>>, vector<32x128xf32>
    tpu.vector_store %arg6[%c8_10, %c128], %1 {strides = array<i32>} : memref<42x258xf32, #tpu.memory_space<vmem>>, vector<32x128xf32>,
    %c6 = arith.constant 6 : index
    %c126 = arith.constant 126 : index
    %11 = vector.load %arg6[%c6, %c126] : memref<42x258xf32, #tpu.memory_space<vmem>>, vector<36x128xf32>
    %c6_11 = arith.constant 6 : index
    %c127 = arith.constant 127 : index
    %12 = vector.load %arg6[%c6_11, %c127] : memref<42x258xf32, #tpu.memory_space<vmem>>, vector<36x128xf32>
    %13 = arith.maximumf %11, %12 : vector<36x128xf32>
    %c6_12 = arith.constant 6 : index
    %c128_13 = arith.constant 128 : index
    %14 = vector.load %arg6[%c6_12, %c128_13] : memref<42x258xf32, #tpu.memory_space<vmem>>, vector<36x128xf32>
    %15 = arith.maximumf %13, %14 : vector<36x128xf32>
    %c6_14 = arith.constant 6 : index
    %c129 = arith.constant 129 : index
    %16 = vector.load %arg6[%c6_14, %c129] : memref<42x258xf32, #tpu.memory_space<vmem>>, vector<36x128xf32>
    %17 = arith.maximumf %15, %16 : vector<36x128xf32>
    %c6_15 = arith.constant 6 : index
    %c130 = arith.constant 130 : index
    %18 = vector.load %arg6[%c6_15, %c130] : memref<42x258xf32, #tpu.memory_space<vmem>>, vector<36x128xf32>
    %19 = arith.maximumf %17, %18 : vector<36x128xf32>
    %c0_16 = arith.constant 0 : index
    %c0_17 = arith.constant 0 : index
    %20 = vector.load %arg7[%c0_16, %c0_17] : memref<36x128xf32, #tpu.memory_space<vmem>>, vector<36x128xf32>
    tpu.vector_store %arg7[%c0_16, %c0_17], %19 {strides = array<i32>} : memref<36x128xf32, #tpu.memory_space<vmem>>, vector<36x128xf32>,
    %c0_18 = arith.constant 0 : index
    %c0_19 = arith.constant 0 : index
    %21 = vector.load %arg7[%c0_18, %c0_19] : memref<36x128xf32, #tpu.memory_space<vmem>>, vector<32x128xf32>
    %c1 = arith.constant 1 : index
    %c0_20 = arith.constant 0 : index
    %22 = vector.load %arg7[%c1, %c0_20] : memref<36x128xf32, #tpu.memory_space<vmem>>, vector<32x128xf32>
    %23 = arith.maximumf %21, %22 : vector<32x128xf32>
    %c2 = arith.constant 2 : index
    %c0_21 = arith.constant 0 : index
    %24 = vector.load %arg7[%c2, %c0_21] : memref<36x128xf32, #tpu.memory_space<vmem>>, vector<32x128xf32>
    %25 = arith.maximumf %23, %24 : vector<32x128xf32>
    %c3 = arith.constant 3 : index
    %c0_22 = arith.constant 0 : index
    %26 = vector.load %arg7[%c3, %c0_22] : memref<36x128xf32, #tpu.memory_space<vmem>>, vector<32x128xf32>
    %27 = arith.maximumf %25, %26 : vector<32x128xf32>
    %c4 = arith.constant 4 : index
    %c0_23 = arith.constant 0 : index
    %28 = vector.load %arg7[%c4, %c0_23] : memref<36x128xf32, #tpu.memory_space<vmem>>, vector<32x128xf32>
    %29 = arith.maximumf %27, %28 : vector<32x128xf32>
    %30 = arith.cmpf oeq, %1, %29 : vector<32x128xf32>
    %31 = arith.extui %30 : vector<32x128xi1> to vector<32x128xi32>
    %32 = arith.sitofp %31 : vector<32x128xi32> to vector<32x128xf32>
    %c8_24 = arith.constant 8 : index
    %c128_25 = arith.constant 128 : index
    %33 = vector.load %arg6[%c8_24, %c128_25] : memref<42x258xf32, #tpu.memory_space<vmem>>, vector<32x128xf32>
    tpu.vector_store %arg6[%c8_24, %c128_25], %32 {strides = array<i32>} : memref<42x258xf32, #tpu.memory_space<vmem>>, vector<32x128xf32>,
    %c6_26 = arith.constant 6 : index
    %c126_27 = arith.constant 126 : index
    %34 = vector.load %arg6[%c6_26, %c126_27] : memref<42x258xf32, #tpu.memory_space<vmem>>, vector<36x128xf32>
    %c6_28 = arith.constant 6 : index
    %c127_29 = arith.constant 127 : index
    %35 = vector.load %arg6[%c6_28, %c127_29] : memref<42x258xf32, #tpu.memory_space<vmem>>, vector<36x128xf32>
    %36 = arith.maximumf %34, %35 : vector<36x128xf32>
    %c6_30 = arith.constant 6 : index
    %c128_31 = arith.constant 128 : index
    %37 = vector.load %arg6[%c6_30, %c128_31] : memref<42x258xf32, #tpu.memory_space<vmem>>, vector<36x128xf32>
    %38 = arith.maximumf %36, %37 : vector<36x128xf32>
    %c6_32 = arith.constant 6 : index
    %c129_33 = arith.constant 129 : index
    %39 = vector.load %arg6[%c6_32, %c129_33] : memref<42x258xf32, #tpu.memory_space<vmem>>, vector<36x128xf32>
    %40 = arith.maximumf %38, %39 : vector<36x128xf32>
    %c6_34 = arith.constant 6 : index
    %c130_35 = arith.constant 130 : index
    %41 = vector.load %arg6[%c6_34, %c130_35] : memref<42x258xf32, #tpu.memory_space<vmem>>, vector<36x128xf32>
    %42 = arith.maximumf %40, %41 : vector<36x128xf32>
    %c0_36 = arith.constant 0 : index
    %c0_37 = arith.constant 0 : index
    %43 = vector.load %arg7[%c0_36, %c0_37] : memref<36x128xf32, #tpu.memory_space<vmem>>, vector<36x128xf32>
    tpu.vector_store %arg7[%c0_36, %c0_37], %42 {strides = array<i32>} : memref<36x128xf32, #tpu.memory_space<vmem>>, vector<36x128xf32>,
    %c0_38 = arith.constant 0 : index
    %c0_39 = arith.constant 0 : index
    %44 = vector.load %arg7[%c0_38, %c0_39] : memref<36x128xf32, #tpu.memory_space<vmem>>, vector<32x128xf32>
    %c1_40 = arith.constant 1 : index
    %c0_41 = arith.constant 0 : index
    %45 = vector.load %arg7[%c1_40, %c0_41] : memref<36x128xf32, #tpu.memory_space<vmem>>, vector<32x128xf32>
    %46 = arith.maximumf %44, %45 : vector<32x128xf32>
    %c2_42 = arith.constant 2 : index
    %c0_43 = arith.constant 0 : index
    %47 = vector.load %arg7[%c2_42, %c0_43] : memref<36x128xf32, #tpu.memory_space<vmem>>, vector<32x128xf32>
    %48 = arith.maximumf %46, %47 : vector<32x128xf32>
    %c3_44 = arith.constant 3 : index
    %c0_45 = arith.constant 0 : index
    %49 = vector.load %arg7[%c3_44, %c0_45] : memref<36x128xf32, #tpu.memory_space<vmem>>, vector<32x128xf32>
    %50 = arith.maximumf %48, %49 : vector<32x128xf32>
    %c4_46 = arith.constant 4 : index
    %c0_47 = arith.constant 0 : index
    %51 = vector.load %arg7[%c4_46, %c0_47] : memref<36x128xf32, #tpu.memory_space<vmem>>, vector<32x128xf32>
    %52 = arith.maximumf %50, %51 : vector<32x128xf32>
    %cst_48 = arith.constant 0.000000e+00 : f32
    %53 = vector.broadcast %cst_48 : f32 to vector<32x128xf32>
    %54 = arith.cmpf ogt, %52, %53 : vector<32x128xf32>
    %cst_49 = arith.constant 0.000000e+00 : f32
    %55 = vector.broadcast %cst_49 : f32 to vector<32x128xf32>
    %56 = arith.select %54, %55, %1 : vector<32x128xi1>, vector<32x128xf32>
    %c8_50 = arith.constant 8 : index
    %c128_51 = arith.constant 128 : index
    %57 = vector.load %arg6[%c8_50, %c128_51] : memref<42x258xf32, #tpu.memory_space<vmem>>, vector<32x128xf32>
    tpu.vector_store %arg6[%c8_50, %c128_51], %56 {strides = array<i32>} : memref<42x258xf32, #tpu.memory_space<vmem>>, vector<32x128xf32>,
    %c6_52 = arith.constant 6 : index
    %c126_53 = arith.constant 126 : index
    %58 = vector.load %arg6[%c6_52, %c126_53] : memref<42x258xf32, #tpu.memory_space<vmem>>, vector<36x128xf32>
    %c6_54 = arith.constant 6 : index
    %c127_55 = arith.constant 127 : index
    %59 = vector.load %arg6[%c6_54, %c127_55] : memref<42x258xf32, #tpu.memory_space<vmem>>, vector<36x128xf32>
    %60 = arith.maximumf %58, %59 : vector<36x128xf32>
    %c6_56 = arith.constant 6 : index
    %c128_57 = arith.constant 128 : index
    %61 = vector.load %arg6[%c6_56, %c128_57] : memref<42x258xf32, #tpu.memory_space<vmem>>, vector<36x128xf32>
    %62 = arith.maximumf %60, %61 : vector<36x128xf32>
    %c6_58 = arith.constant 6 : index
    %c129_59 = arith.constant 129 : index
    %63 = vector.load %arg6[%c6_58, %c129_59] : memref<42x258xf32, #tpu.memory_space<vmem>>, vector<36x128xf32>
    %64 = arith.maximumf %62, %63 : vector<36x128xf32>
    %c6_60 = arith.constant 6 : index
    %c130_61 = arith.constant 130 : index
    %65 = vector.load %arg6[%c6_60, %c130_61] : memref<42x258xf32, #tpu.memory_space<vmem>>, vector<36x128xf32>
    %66 = arith.maximumf %64, %65 : vector<36x128xf32>
    %c0_62 = arith.constant 0 : index
    %c0_63 = arith.constant 0 : index
    %67 = vector.load %arg7[%c0_62, %c0_63] : memref<36x128xf32, #tpu.memory_space<vmem>>, vector<36x128xf32>
    tpu.vector_store %arg7[%c0_62, %c0_63], %66 {strides = array<i32>} : memref<36x128xf32, #tpu.memory_space<vmem>>, vector<36x128xf32>,
    %c0_64 = arith.constant 0 : index
    %c0_65 = arith.constant 0 : index
    %68 = vector.load %arg7[%c0_64, %c0_65] : memref<36x128xf32, #tpu.memory_space<vmem>>, vector<32x128xf32>
    %c1_66 = arith.constant 1 : index
    %c0_67 = arith.constant 0 : index
    %69 = vector.load %arg7[%c1_66, %c0_67] : memref<36x128xf32, #tpu.memory_space<vmem>>, vector<32x128xf32>
    %70 = arith.maximumf %68, %69 : vector<32x128xf32>
    %c2_68 = arith.constant 2 : index
    %c0_69 = arith.constant 0 : index
    %71 = vector.load %arg7[%c2_68, %c0_69] : memref<36x128xf32, #tpu.memory_space<vmem>>, vector<32x128xf32>
    %72 = arith.maximumf %70, %71 : vector<32x128xf32>
    %c3_70 = arith.constant 3 : index
    %c0_71 = arith.constant 0 : index
    %73 = vector.load %arg7[%c3_70, %c0_71] : memref<36x128xf32, #tpu.memory_space<vmem>>, vector<32x128xf32>
    %74 = arith.maximumf %72, %73 : vector<32x128xf32>
    %c4_72 = arith.constant 4 : index
    %c0_73 = arith.constant 0 : index
    %75 = vector.load %arg7[%c4_72, %c0_73] : memref<36x128xf32, #tpu.memory_space<vmem>>, vector<32x128xf32>
    %76 = arith.maximumf %74, %75 : vector<32x128xf32>
    %77 = arith.cmpf oeq, %56, %76 : vector<32x128xf32>
    %cst_74 = arith.constant dense<true> : vector<32x128xi1>
    %78 = arith.xori %54, %cst_74 : vector<32x128xi1>
    %79 = arith.andi %77, %78 : vector<32x128xi1>
    %80 = arith.ori %30, %79 : vector<32x128xi1>
    %81 = arith.extui %80 : vector<32x128xi1> to vector<32x128xi32>
    %82 = arith.sitofp %81 : vector<32x128xi32> to vector<32x128xf32>
    %c8_75 = arith.constant 8 : index
    %c128_76 = arith.constant 128 : index
    %83 = vector.load %arg6[%c8_75, %c128_76] : memref<42x258xf32, #tpu.memory_space<vmem>>, vector<32x128xf32>
    tpu.vector_store %arg6[%c8_75, %c128_76], %82 {strides = array<i32>} : memref<42x258xf32, #tpu.memory_space<vmem>>, vector<32x128xf32>,
    %c6_77 = arith.constant 6 : index
    %c126_78 = arith.constant 126 : index
    %84 = vector.load %arg6[%c6_77, %c126_78] : memref<42x258xf32, #tpu.memory_space<vmem>>, vector<36x128xf32>
    %c6_79 = arith.constant 6 : index
    %c127_80 = arith.constant 127 : index
    %85 = vector.load %arg6[%c6_79, %c127_80] : memref<42x258xf32, #tpu.memory_space<vmem>>, vector<36x128xf32>
    %86 = arith.maximumf %84, %85 : vector<36x128xf32>
    %c6_81 = arith.constant 6 : index
    %c128_82 = arith.constant 128 : index
    %87 = vector.load %arg6[%c6_81, %c128_82] : memref<42x258xf32, #tpu.memory_space<vmem>>, vector<36x128xf32>
    %88 = arith.maximumf %86, %87 : vector<36x128xf32>
    %c6_83 = arith.constant 6 : index
    %c129_84 = arith.constant 129 : index
    %89 = vector.load %arg6[%c6_83, %c129_84] : memref<42x258xf32, #tpu.memory_space<vmem>>, vector<36x128xf32>
    %90 = arith.maximumf %88, %89 : vector<36x128xf32>
    %c6_85 = arith.constant 6 : index
    %c130_86 = arith.constant 130 : index
    %91 = vector.load %arg6[%c6_85, %c130_86] : memref<42x258xf32, #tpu.memory_space<vmem>>, vector<36x128xf32>
    %92 = arith.maximumf %90, %91 : vector<36x128xf32>
    %c0_87 = arith.constant 0 : index
    %c0_88 = arith.constant 0 : index
    %93 = vector.load %arg7[%c0_87, %c0_88] : memref<36x128xf32, #tpu.memory_space<vmem>>, vector<36x128xf32>
    tpu.vector_store %arg7[%c0_87, %c0_88], %92 {strides = array<i32>} : memref<36x128xf32, #tpu.memory_space<vmem>>, vector<36x128xf32>,
    %c0_89 = arith.constant 0 : index
    %c0_90 = arith.constant 0 : index
    %94 = vector.load %arg7[%c0_89, %c0_90] : memref<36x128xf32, #tpu.memory_space<vmem>>, vector<32x128xf32>
    %c1_91 = arith.constant 1 : index
    %c0_92 = arith.constant 0 : index
    %95 = vector.load %arg7[%c1_91, %c0_92] : memref<36x128xf32, #tpu.memory_space<vmem>>, vector<32x128xf32>
    %96 = arith.maximumf %94, %95 : vector<32x128xf32>
    %c2_93 = arith.constant 2 : index
    %c0_94 = arith.constant 0 : index
    %97 = vector.load %arg7[%c2_93, %c0_94] : memref<36x128xf32, #tpu.memory_space<vmem>>, vector<32x128xf32>
    %98 = arith.maximumf %96, %97 : vector<32x128xf32>
    %c3_95 = arith.constant 3 : index
    %c0_96 = arith.constant 0 : index
    %99 = vector.load %arg7[%c3_95, %c0_96] : memref<36x128xf32, #tpu.memory_space<vmem>>, vector<32x128xf32>
    %100 = arith.maximumf %98, %99 : vector<32x128xf32>
    %c4_97 = arith.constant 4 : index
    %c0_98 = arith.constant 0 : index
    %101 = vector.load %arg7[%c4_97, %c0_98] : memref<36x128xf32, #tpu.memory_space<vmem>>, vector<32x128xf32>
    %102 = arith.maximumf %100, %101 : vector<32x128xf32>
    %cst_99 = arith.constant 0.000000e+00 : f32
    %103 = vector.broadcast %cst_99 : f32 to vector<32x128xf32>
    %104 = arith.cmpf ogt, %102, %103 : vector<32x128xf32>
    %cst_100 = arith.constant 0.000000e+00 : f32
    %105 = vector.broadcast %cst_100 : f32 to vector<32x128xf32>
    %106 = arith.select %104, %105, %1 : vector<32x128xi1>, vector<32x128xf32>
    %c8_101 = arith.constant 8 : index
    %c128_102 = arith.constant 128 : index
    %107 = vector.load %arg6[%c8_101, %c128_102] : memref<42x258xf32, #tpu.memory_space<vmem>>, vector<32x128xf32>
    tpu.vector_store %arg6[%c8_101, %c128_102], %106 {strides = array<i32>} : memref<42x258xf32, #tpu.memory_space<vmem>>, vector<32x128xf32>,
    %c6_103 = arith.constant 6 : index
    %c126_104 = arith.constant 126 : index
    %108 = vector.load %arg6[%c6_103, %c126_104] : memref<42x258xf32, #tpu.memory_space<vmem>>, vector<36x128xf32>
    %c6_105 = arith.constant 6 : index
    %c127_106 = arith.constant 127 : index
    %109 = vector.load %arg6[%c6_105, %c127_106] : memref<42x258xf32, #tpu.memory_space<vmem>>, vector<36x128xf32>
    %110 = arith.maximumf %108, %109 : vector<36x128xf32>
    %c6_107 = arith.constant 6 : index
    %c128_108 = arith.constant 128 : index
    %111 = vector.load %arg6[%c6_107, %c128_108] : memref<42x258xf32, #tpu.memory_space<vmem>>, vector<36x128xf32>
    %112 = arith.maximumf %110, %111 : vector<36x128xf32>
    %c6_109 = arith.constant 6 : index
    %c129_110 = arith.constant 129 : index
    %113 = vector.load %arg6[%c6_109, %c129_110] : memref<42x258xf32, #tpu.memory_space<vmem>>, vector<36x128xf32>
    %114 = arith.maximumf %112, %113 : vector<36x128xf32>
    %c6_111 = arith.constant 6 : index
    %c130_112 = arith.constant 130 : index
    %115 = vector.load %arg6[%c6_111, %c130_112] : memref<42x258xf32, #tpu.memory_space<vmem>>, vector<36x128xf32>
    %116 = arith.maximumf %114, %115 : vector<36x128xf32>
    %c0_113 = arith.constant 0 : index
    %c0_114 = arith.constant 0 : index
    %117 = vector.load %arg7[%c0_113, %c0_114] : memref<36x128xf32, #tpu.memory_space<vmem>>, vector<36x128xf32>
    tpu.vector_store %arg7[%c0_113, %c0_114], %116 {strides = array<i32>} : memref<36x128xf32, #tpu.memory_space<vmem>>, vector<36x128xf32>,
    %c0_115 = arith.constant 0 : index
    %c0_116 = arith.constant 0 : index
    %118 = vector.load %arg7[%c0_115, %c0_116] : memref<36x128xf32, #tpu.memory_space<vmem>>, vector<32x128xf32>
    %c1_117 = arith.constant 1 : index
    %c0_118 = arith.constant 0 : index
    %119 = vector.load %arg7[%c1_117, %c0_118] : memref<36x128xf32, #tpu.memory_space<vmem>>, vector<32x128xf32>
    %120 = arith.maximumf %118, %119 : vector<32x128xf32>
    %c2_119 = arith.constant 2 : index
    %c0_120 = arith.constant 0 : index
    %121 = vector.load %arg7[%c2_119, %c0_120] : memref<36x128xf32, #tpu.memory_space<vmem>>, vector<32x128xf32>
    %122 = arith.maximumf %120, %121 : vector<32x128xf32>
    %c3_121 = arith.constant 3 : index
    %c0_122 = arith.constant 0 : index
    %123 = vector.load %arg7[%c3_121, %c0_122] : memref<36x128xf32, #tpu.memory_space<vmem>>, vector<32x128xf32>
    %124 = arith.maximumf %122, %123 : vector<32x128xf32>
    %c4_123 = arith.constant 4 : index
    %c0_124 = arith.constant 0 : index
    %125 = vector.load %arg7[%c4_123, %c0_124] : memref<36x128xf32, #tpu.memory_space<vmem>>, vector<32x128xf32>
    %126 = arith.maximumf %124, %125 : vector<32x128xf32>
    %127 = arith.cmpf oeq, %106, %126 : vector<32x128xf32>
    %cst_125 = arith.constant dense<true> : vector<32x128xi1>
    %128 = arith.xori %104, %cst_125 : vector<32x128xi1>
    %129 = arith.andi %127, %128 : vector<32x128xi1>
    %130 = arith.ori %80, %129 : vector<32x128xi1>
    %cst_126 = arith.constant 0.000000e+00 : f32
    %131 = vector.broadcast %cst_126 : f32 to vector<32x128xf32>
    %132 = arith.select %130, %1, %131 : vector<32x128xi1>, vector<32x128xf32>
    %133 = tpu.iota {dimensions = array<i32: 0>} : vector<32x128xi32>
    %134 = tpu.iota {dimensions = array<i32: 1>} : vector<32x128xi32>
    %c3_i32 = arith.constant 3 : i32
    %135 = vector.broadcast %c3_i32 : i32 to vector<32x128xi32>
    %136 = arith.cmpi sge, %133, %135 : vector<32x128xi32>
    %c30_i32 = arith.constant 30 : i32
    %137 = vector.broadcast %c30_i32 : i32 to vector<32x128xi32>
    %138 = arith.cmpi slt, %133, %137 : vector<32x128xi32>
    %139 = arith.andi %136, %138 : vector<32x128xi1>
    %c3_i32_127 = arith.constant 3 : i32
    %140 = vector.broadcast %c3_i32_127 : i32 to vector<32x128xi32>
    %141 = arith.cmpi sge, %134, %140 : vector<32x128xi32>
    %142 = arith.andi %139, %141 : vector<32x128xi1>
    %c126_i32 = arith.constant 126 : i32
    %143 = vector.broadcast %c126_i32 : i32 to vector<32x128xi32>
    %144 = arith.cmpi slt, %134, %143 : vector<32x128xi32>
    %145 = arith.andi %142, %144 : vector<32x128xi1>
    %cst_128 = arith.constant 0.000000e+00 : f32
    %146 = vector.broadcast %cst_128 : f32 to vector<32x128xf32>
    %147 = arith.select %145, %132, %146 : vector<32x128xi1>, vector<32x128xf32>
    %c0_129 = arith.constant 0 : index
    %c0_130 = arith.constant 0 : index
    %c0_131 = arith.constant 0 : index
    %148 = vector.load %arg2[%c0_129, %c0_130, %c0_131] : memref<1x32x128xf32, #tpu.memory_space<vmem>>, vector<1x32x128xf32>
    %149 = vector.shape_cast %148 : vector<1x32x128xf32> to vector<32x128xf32>
    %150 = vector.shape_cast %147 : vector<32x128xf32> to vector<1x32x128xf32>
    tpu.vector_store %arg2[%c0_129, %c0_130, %c0_131], %150 {strides = array<i32>} : memref<1x32x128xf32, #tpu.memory_space<vmem>>, vector<1x32x128xf32>,
    %151 = vector.shape_cast %1 : vector<32x128xf32> to vector<1x32x128xf32>
    %cst_132 = arith.constant dense<0xFF800000> : vector<1xf32>
    %152 = vector.multi_reduction <maximumf>, %151, %cst_132 [1, 2] : vector<1x32x128xf32> to vector<1xf32>
    %153 = vector.shape_cast %152 : vector<1xf32> to vector<1x1x1xf32>
    %154 = vector.extract %153[0, 0, 0] : f32 from vector<1x1x1xf32>
    %155 = vector.broadcast %154 : f32 to vector<1x1xf32>
    %cst_133 = arith.constant 0.000000e+00 : f32
    %156 = vector.broadcast %cst_133 : f32 to vector<1x1xf32>
    %157 = arith.subf %156, %155 : vector<1x1xf32>
    %cst_134 = arith.constant 1.000000e+01 : f32
    %158 = vector.broadcast %cst_134 : f32 to vector<1x1xf32>
    %159 = arith.mulf %157, %158 : vector<1x1xf32>
    %160 = math.exp %159 : vector<1x1xf32>
    %161 = vector.shape_cast %160 : vector<1x1xf32> to vector<1x1xf32>
    %162 = vector.broadcast %161 : vector<1x1xf32> to vector<8x258xf32>
    %c0_135 = arith.constant 0 : index
    %c0_136 = arith.constant 0 : index
    %163 = vector.load %arg6[%c0_135, %c0_136] : memref<42x258xf32, #tpu.memory_space<vmem>>, vector<8x258xf32>
    tpu.vector_store %arg6[%c0_135, %c0_136], %162 {strides = array<i32>} : memref<42x258xf32, #tpu.memory_space<vmem>>, vector<8x258xf32>,
    %164 = vector.shape_cast %160 : vector<1x1xf32> to vector<1x1xf32>
    %165 = vector.broadcast %164 : vector<1x1xf32> to vector<2x258xf32>
    %c40_137 = arith.constant 40 : index
    %c0_138 = arith.constant 0 : index
    %166 = vector.load %arg6[%c40_137, %c0_138] : memref<42x258xf32, #tpu.memory_space<vmem>>, vector<2x258xf32>
    tpu.vector_store %arg6[%c40_137, %c0_138], %165 {strides = array<i32>} : memref<42x258xf32, #tpu.memory_space<vmem>>, vector<2x258xf32>,
    %167 = vector.shape_cast %160 : vector<1x1xf32> to vector<1x1xf32>
    %168 = vector.broadcast %167 : vector<1x1xf32> to vector<32x128xf32>
    %c8_139 = arith.constant 8 : index
    %c0_140 = arith.constant 0 : index
    %169 = vector.load %arg6[%c8_139, %c0_140] : memref<42x258xf32, #tpu.memory_space<vmem>>, vector<32x128xf32>
    tpu.vector_store %arg6[%c8_139, %c0_140], %168 {strides = array<i32>} : memref<42x258xf32, #tpu.memory_space<vmem>>, vector<32x128xf32>,
    %170 = vector.shape_cast %160 : vector<1x1xf32> to vector<1x1xf32>
    %171 = vector.broadcast %170 : vector<1x1xf32> to vector<32x2xf32>
    %c8_141 = arith.constant 8 : index
    %c256_142 = arith.constant 256 : index
    %172 = vector.load %arg6[%c8_141, %c256_142] : memref<42x258xf32, #tpu.memory_space<vmem>>, vector<32x2xf32>
    tpu.vector_store %arg6[%c8_141, %c256_142], %171 {strides = array<i32>} : memref<42x258xf32, #tpu.memory_space<vmem>>, vector<32x2xf32>,
    %173 = vector.broadcast %155 : vector<1x1xf32> to vector<32x128xf32>
    %174 = arith.subf %1, %173 : vector<32x128xf32>
    %cst_143 = arith.constant 1.000000e+01 : f32
    %175 = vector.broadcast %cst_143 : f32 to vector<32x128xf32>
    %176 = arith.mulf %174, %175 : vector<32x128xf32>
    %177 = math.exp %176 : vector<32x128xf32>
    %c8_144 = arith.constant 8 : index
    %c128_145 = arith.constant 128 : index
    %178 = vector.load %arg6[%c8_144, %c128_145] : memref<42x258xf32, #tpu.memory_space<vmem>>, vector<32x128xf32>
    tpu.vector_store %arg6[%c8_144, %c128_145], %177 {strides = array<i32>} : memref<42x258xf32, #tpu.memory_space<vmem>>, vector<32x128xf32>,
    %c6_146 = arith.constant 6 : index
    %c126_147 = arith.constant 126 : index
    %179 = vector.load %arg6[%c6_146, %c126_147] : memref<42x258xf32, #tpu.memory_space<vmem>>, vector<36x128xf32>
    %c6_148 = arith.constant 6 : index
    %c127_149 = arith.constant 127 : index
    %180 = vector.load %arg6[%c6_148, %c127_149] : memref<42x258xf32, #tpu.memory_space<vmem>>, vector<36x128xf32>
    %181 = arith.addf %179, %180 : vector<36x128xf32>
    %c6_150 = arith.constant 6 : index
    %c128_151 = arith.constant 128 : index
    %182 = vector.load %arg6[%c6_150, %c128_151] : memref<42x258xf32, #tpu.memory_space<vmem>>, vector<36x128xf32>
    %183 = arith.addf %181, %182 : vector<36x128xf32>
    %c6_152 = arith.constant 6 : index
    %c129_153 = arith.constant 129 : index
    %184 = vector.load %arg6[%c6_152, %c129_153] : memref<42x258xf32, #tpu.memory_space<vmem>>, vector<36x128xf32>
    %185 = arith.addf %183, %184 : vector<36x128xf32>
    %c6_154 = arith.constant 6 : index
    %c130_155 = arith.constant 130 : index
    %186 = vector.load %arg6[%c6_154, %c130_155] : memref<42x258xf32, #tpu.memory_space<vmem>>, vector<36x128xf32>
    %187 = arith.addf %185, %186 : vector<36x128xf32>
    %c0_156 = arith.constant 0 : index
    %c0_157 = arith.constant 0 : index
    %188 = vector.load %arg7[%c0_156, %c0_157] : memref<36x128xf32, #tpu.memory_space<vmem>>, vector<36x128xf32>
    tpu.vector_store %arg7[%c0_156, %c0_157], %187 {strides = array<i32>} : memref<36x128xf32, #tpu.memory_space<vmem>>, vector<36x128xf32>,
    %c6_158 = arith.constant 6 : index
    %c126_159 = arith.constant 126 : index
    %189 = vector.load %arg6[%c6_158, %c126_159] : memref<42x258xf32, #tpu.memory_space<vmem>>, vector<32x132xf32>
    %c7 = arith.constant 7 : index
    %c126_160 = arith.constant 126 : index
    %190 = vector.load %arg6[%c7, %c126_160] : memref<42x258xf32, #tpu.memory_space<vmem>>, vector<32x132xf32>
    %191 = arith.addf %189, %190 : vector<32x132xf32>
    %c8_161 = arith.constant 8 : index
    %c126_162 = arith.constant 126 : index
    %192 = vector.load %arg6[%c8_161, %c126_162] : memref<42x258xf32, #tpu.memory_space<vmem>>, vector<32x132xf32>
    %193 = arith.addf %191, %192 : vector<32x132xf32>
    %c9 = arith.constant 9 : index
    %c126_163 = arith.constant 126 : index
    %194 = vector.load %arg6[%c9, %c126_163] : memref<42x258xf32, #tpu.memory_space<vmem>>, vector<32x132xf32>
    %195 = arith.addf %193, %194 : vector<32x132xf32>
    %c10 = arith.constant 10 : index
    %c126_164 = arith.constant 126 : index
    %196 = vector.load %arg6[%c10, %c126_164] : memref<42x258xf32, #tpu.memory_space<vmem>>, vector<32x132xf32>
    %197 = arith.addf %195, %196 : vector<32x132xf32>
    %c0_165 = arith.constant 0 : index
    %c0_166 = arith.constant 0 : index
    %198 = vector.load %arg8[%c0_165, %c0_166] : memref<32x132xf32, #tpu.memory_space<vmem>>, vector<32x132xf32>
    tpu.vector_store %arg8[%c0_165, %c0_166], %197 {strides = array<i32>} : memref<32x132xf32, #tpu.memory_space<vmem>>, vector<32x132xf32>,
    %c0_167 = arith.constant 0 : index
    %c0_168 = arith.constant 0 : index
    %199 = vector.load %arg7[%c0_167, %c0_168] : memref<36x128xf32, #tpu.memory_space<vmem>>, vector<32x128xf32>
    %cst_169 = arith.constant -2.000000e+00 : f32
    %200 = vector.broadcast %cst_169 : f32 to vector<32x128xf32>
    %201 = arith.mulf %199, %200 : vector<32x128xf32>
    %cst_170 = arith.constant 4.000000e+00 : f32
    %202 = vector.broadcast %cst_170 : f32 to vector<32x128xf32>
    %203 = arith.mulf %199, %202 : vector<32x128xf32>
    %c1_171 = arith.constant 1 : index
    %c0_172 = arith.constant 0 : index
    %204 = vector.load %arg7[%c1_171, %c0_172] : memref<36x128xf32, #tpu.memory_space<vmem>>, vector<32x128xf32>
    %205 = arith.addf %199, %204 : vector<32x128xf32>
    %cst_173 = arith.constant -1.000000e+00 : f32
    %206 = vector.broadcast %cst_173 : f32 to vector<32x128xf32>
    %207 = arith.mulf %204, %206 : vector<32x128xf32>
    %208 = arith.addf %201, %207 : vector<32x128xf32>
    %cst_174 = arith.constant 1.000000e+00 : f32
    %209 = vector.broadcast %cst_174 : f32 to vector<32x128xf32>
    %210 = arith.mulf %204, %209 : vector<32x128xf32>
    %211 = arith.addf %203, %210 : vector<32x128xf32>
    %c2_175 = arith.constant 2 : index
    %c0_176 = arith.constant 0 : index
    %212 = vector.load %arg7[%c2_175, %c0_176] : memref<36x128xf32, #tpu.memory_space<vmem>>, vector<32x128xf32>
    %213 = arith.addf %205, %212 : vector<32x128xf32>
    %c3_177 = arith.constant 3 : index
    %c0_178 = arith.constant 0 : index
    %214 = vector.load %arg7[%c3_177, %c0_178] : memref<36x128xf32, #tpu.memory_space<vmem>>, vector<32x128xf32>
    %215 = arith.addf %213, %214 : vector<32x128xf32>
    %cst_179 = arith.constant 1.000000e+00 : f32
    %216 = vector.broadcast %cst_179 : f32 to vector<32x128xf32>
    %217 = arith.mulf %214, %216 : vector<32x128xf32>
    %218 = arith.addf %208, %217 : vector<32x128xf32>
    %cst_180 = arith.constant 1.000000e+00 : f32
    %219 = vector.broadcast %cst_180 : f32 to vector<32x128xf32>
    %220 = arith.mulf %214, %219 : vector<32x128xf32>
    %221 = arith.addf %211, %220 : vector<32x128xf32>
    %c4_181 = arith.constant 4 : index
    %c0_182 = arith.constant 0 : index
    %222 = vector.load %arg7[%c4_181, %c0_182] : memref<36x128xf32, #tpu.memory_space<vmem>>, vector<32x128xf32>
    %223 = arith.addf %215, %222 : vector<32x128xf32>
    %cst_183 = arith.constant 2.000000e+00 : f32
    %224 = vector.broadcast %cst_183 : f32 to vector<32x128xf32>
    %225 = arith.mulf %222, %224 : vector<32x128xf32>
    %226 = arith.addf %218, %225 : vector<32x128xf32>
    %cst_184 = arith.constant 4.000000e+00 : f32
    %227 = vector.broadcast %cst_184 : f32 to vector<32x128xf32>
    %228 = arith.mulf %222, %227 : vector<32x128xf32>
    %229 = arith.addf %221, %228 : vector<32x128xf32>
    %c0_185 = arith.constant 0 : index
    %c0_186 = arith.constant 0 : index
    %230 = vector.load %arg8[%c0_185, %c0_186] : memref<32x132xf32, #tpu.memory_space<vmem>>, vector<32x128xf32>
    %cst_187 = arith.constant -2.000000e+00 : f32
    %231 = vector.broadcast %cst_187 : f32 to vector<32x128xf32>
    %232 = arith.mulf %230, %231 : vector<32x128xf32>
    %cst_188 = arith.constant 4.000000e+00 : f32
    %233 = vector.broadcast %cst_188 : f32 to vector<32x128xf32>
    %234 = arith.mulf %230, %233 : vector<32x128xf32>
    %235 = arith.addf %229, %234 : vector<32x128xf32>
    %c0_189 = arith.constant 0 : index
    %c1_190 = arith.constant 1 : index
    %236 = vector.load %arg8[%c0_189, %c1_190] : memref<32x132xf32, #tpu.memory_space<vmem>>, vector<32x128xf32>
    %cst_191 = arith.constant -1.000000e+00 : f32
    %237 = vector.broadcast %cst_191 : f32 to vector<32x128xf32>
    %238 = arith.mulf %236, %237 : vector<32x128xf32>
    %239 = arith.addf %232, %238 : vector<32x128xf32>
    %cst_192 = arith.constant 1.000000e+00 : f32
    %240 = vector.broadcast %cst_192 : f32 to vector<32x128xf32>
    %241 = arith.mulf %236, %240 : vector<32x128xf32>
    %242 = arith.addf %235, %241 : vector<32x128xf32>
    %c0_193 = arith.constant 0 : index
    %c3_194 = arith.constant 3 : index
    %243 = vector.load %arg8[%c0_193, %c3_194] : memref<32x132xf32, #tpu.memory_space<vmem>>, vector<32x128xf32>
    %cst_195 = arith.constant 1.000000e+00 : f32
    %244 = vector.broadcast %cst_195 : f32 to vector<32x128xf32>
    %245 = arith.mulf %243, %244 : vector<32x128xf32>
    %246 = arith.addf %239, %245 : vector<32x128xf32>
    %cst_196 = arith.constant 1.000000e+00 : f32
    %247 = vector.broadcast %cst_196 : f32 to vector<32x128xf32>
    %248 = arith.mulf %243, %247 : vector<32x128xf32>
    %249 = arith.addf %242, %248 : vector<32x128xf32>
    %c0_197 = arith.constant 0 : index
    %c4_198 = arith.constant 4 : index
    %250 = vector.load %arg8[%c0_197, %c4_198] : memref<32x132xf32, #tpu.memory_space<vmem>>, vector<32x128xf32>
    %cst_199 = arith.constant 2.000000e+00 : f32
    %251 = vector.broadcast %cst_199 : f32 to vector<32x128xf32>
    %252 = arith.mulf %250, %251 : vector<32x128xf32>
    %253 = arith.addf %246, %252 : vector<32x128xf32>
    %cst_200 = arith.constant 4.000000e+00 : f32
    %254 = vector.broadcast %cst_200 : f32 to vector<32x128xf32>
    %255 = arith.mulf %250, %254 : vector<32x128xf32>
    %256 = arith.addf %249, %255 : vector<32x128xf32>
    %cst_201 = arith.constant 9.99999968E-21 : f32
    %257 = vector.broadcast %cst_201 : f32 to vector<32x128xf32>
    %258 = arith.maximumf %223, %257 : vector<32x128xf32>
    %259 = tpu.reciprocal %258 {approx = true} : vector<32x128xf32> -> vector<32x128xf32>
    %260 = arith.mulf %253, %259 : vector<32x128xf32>
    %261 = arith.mulf %226, %259 : vector<32x128xf32>
    %262 = arith.mulf %256, %259 : vector<32x128xf32>
    %263 = arith.mulf %260, %260 : vector<32x128xf32>
    %264 = arith.subf %262, %263 : vector<32x128xf32>
    %265 = arith.mulf %261, %261 : vector<32x128xf32>
    %266 = arith.subf %264, %265 : vector<32x128xf32>
    %cst_202 = arith.constant 2.500000e-01 : f32
    %267 = vector.broadcast %cst_202 : f32 to vector<32x128xf32>
    %268 = arith.mulf %266, %267 : vector<32x128xf32>
    %c0_203 = arith.constant 0 : index
    %c0_204 = arith.constant 0 : index
    %c0_205 = arith.constant 0 : index
    %269 = vector.load %arg3[%c0_203, %c0_204, %c0_205] : memref<1x32x128xf32, #tpu.memory_space<vmem>>, vector<1x32x128xf32>
    %270 = vector.shape_cast %269 : vector<1x32x128xf32> to vector<32x128xf32>
    %271 = vector.shape_cast %260 : vector<32x128xf32> to vector<1x32x128xf32>
    tpu.vector_store %arg3[%c0_203, %c0_204, %c0_205], %271 {strides = array<i32>} : memref<1x32x128xf32, #tpu.memory_space<vmem>>, vector<1x32x128xf32>,
    %c0_206 = arith.constant 0 : index
    %c0_207 = arith.constant 0 : index
    %c0_208 = arith.constant 0 : index
    %272 = vector.load %arg4[%c0_206, %c0_207, %c0_208] : memref<1x32x128xf32, #tpu.memory_space<vmem>>, vector<1x32x128xf32>
    %273 = vector.shape_cast %272 : vector<1x32x128xf32> to vector<32x128xf32>
    %274 = vector.shape_cast %261 : vector<32x128xf32> to vector<1x32x128xf32>
    tpu.vector_store %arg4[%c0_206, %c0_207, %c0_208], %274 {strides = array<i32>} : memref<1x32x128xf32, #tpu.memory_space<vmem>>, vector<1x32x128xf32>,
    %c0_209 = arith.constant 0 : index
    %c0_210 = arith.constant 0 : index
    %c0_211 = arith.constant 0 : index
    %275 = vector.load %arg5[%c0_209, %c0_210, %c0_211] : memref<1x32x128xf32, #tpu.memory_space<vmem>>, vector<1x32x128xf32>
    %276 = vector.shape_cast %275 : vector<1x32x128xf32> to vector<32x128xf32>
    %277 = vector.shape_cast %268 : vector<32x128xf32> to vector<1x32x128xf32>
    tpu.vector_store %arg5[%c0_209, %c0_210, %c0_211], %277 {strides = array<i32>} : memref<1x32x128xf32, #tpu.memory_space<vmem>>, vector<1x32x128xf32>,
    return
  }
  func.func @transform_0(%arg0: i32) -> (i32, i32, i32) {
    %c0_i32 = arith.constant 0 : i32
    %c0_i32_0 = arith.constant 0 : i32
    %c0_i32_1 = arith.constant 0 : i32
    return %arg0, %c0_i32, %c0_i32_0 : i32, i32, i32
  }
  func.func @transform_1(%arg0: i32) -> (i32, i32, i32) {
    %c0_i32 = arith.constant 0 : i32
    %c0_i32_0 = arith.constant 0 : i32
    %c0_i32_1 = arith.constant 0 : i32
    return %arg0, %c0_i32, %c0_i32_0 : i32, i32, i32
  }
  func.func @transform_2(%arg0: i32) -> (i32, i32, i32) {
    %c0_i32 = arith.constant 0 : i32
    %c0_i32_0 = arith.constant 0 : i32
    %c0_i32_1 = arith.constant 0 : i32
    return %arg0, %c0_i32, %c0_i32_0 : i32, i32, i32
  }
  func.func @transform_3(%arg0: i32) -> (i32, i32, i32) {
    %c0_i32 = arith.constant 0 : i32
    %c0_i32_0 = arith.constant 0 : i32
    %c0_i32_1 = arith.constant 0 : i32
    return %arg0, %c0_i32, %c0_i32_0 : i32, i32, i32
  }
  func.func @transform_4(%arg0: i32) -> (i32, i32, i32) {
    %c0_i32 = arith.constant 0 : i32
    %c0_i32_0 = arith.constant 0 : i32
    %c0_i32_1 = arith.constant 0 : i32
    return %arg0, %c0_i32, %c0_i32_0 : i32, i32, i32
  }
}

</mosaic_0001>

<bundles_post_ra>
// kernel: tpu_custom_call.1
= control target key start
LH: loop header
LB: loop body
LE: loop exit
PB: predicated region body
PF: predicated region fallthrough
CT: control target
= control target key end

     0   :  { %10 = vsyncpa [#allocation6], 0  ;;  %s6234_s0 = inlined_call_operand.hbm [shape: f32[2,32,128], index: 0, kind: input, shape index: {}]   ;;  %s6235_s1 = inlined_call_operand.hbm [shape: f32[2,32,128], index: 1, kind: output, shape index: {0}]   ;;  %s6236_s2 = inlined_call_operand.hbm [shape: f32[2,32,128], index: 2, kind: output, shape index: {1}]   ;;  %s6237_s3 = inlined_call_operand.hbm [shape: f32[2,32,128], index: 3, kind: output, shape index: {2}]   ;;  %s6238_s4 = inlined_call_operand.hbm [shape: f32[2,32,128], index: 4, kind: output, shape index: {3}]  }
   0x1   :  { %12 = vsyncpa [#allocation6 + $0x1], 0 }
   0x2   :  { %13 = vsyncpa [#allocation7], 0 }
   0x3   :  { %15 = vsyncpa [#allocation7 + $0x1], 0 }
   0x4   :  { %16 = vsyncpa [#allocation10], 0 }
   0x5   :  { %18 = vsyncpa [#allocation10 + $0x1], 0 }
   0x6   :  { %19 = vsyncpa [#allocation13], 0 }
   0x7   :  { %21 = vsyncpa [#allocation13 + $0x1], 0  ;;  %s3662_s15 = smov 0   ;;  %s3664_s16 = smov 0  }
   0x8   :  { %s3666_s17 = smov 0   ;;  %s3668_s18 = smov 0  }
   0x9 LB: > { %s3683_s19 = sadd.s32 4294967295, %s3618_s18   ;;  %s6276_s20 = sadd.s32 4294967294, %s3618_s18   ;;  %s3618_s18 = sphi %s3668_s18, %s6511_s18   ;;  %s3614_s17 = sphi %s3666_s17, %s6510_s17   ;;  %s3610_s16 = sphi %s3664_s16, %s6509_s16   ;;  %s3606_s15 = sphi %s3662_s15, %s6508_s15  }
   0xa   : > { %s3687_s21 = sadd.s32 1, %s3618_s18   ;;  %s34_s22 = sadd.s32 1, %s3614_s17 }
   0xb   : > { %s31_s23 = ssub.s32 %s3618_s18, %s3687_s21  ;;  %p41_p0 = scmp.ne.s32.totalorder %s3614_s17, %s3610_s16 }
   0xc   : > { %p32_p1 = scmp.eq.s32.totalorder %s31_s23, 0  ;;  %p42_p2 = scmp.eq.s32.totalorder %s3618_s18, 0 }
   0xd   : > { %p47_p3 = scmp.ne.s32.totalorder %s3610_s16, %s3606_s15  ;;  %p48_p4 = scmp.eq.s32.totalorder %s3683_s19, 0 }
   0xe   : > { %s3699_s24 = scalar_select %p32_p1, %s3614_s17, %s34_s22  }
   0xf   : > { %p3701_p5 = por %p42_p2, %p41_p0  ;;  %p3705_p6 = por %p48_p4, %p47_p3 }
  0x10   : > { %p71_p7 = scmp.eq.s32.totalorder %s3683_s19, 1  ;;  %p77_p8 = scmp.eq.s32.totalorder %s6276_s20, 1 }
  0x11   : > { %s6280_s26 = scalar_select %p3705_p6, 1, 0 }
  0x12   : > { %p3362_p10 = scmp.lt.s32.totalorder %s3618_s18, 2  ;;  %p3714_p11 = por %p71_p7, %p41_p0 }
  0x13   : > { %p3718_p12 = por %p77_p8, %p47_p3  ;;  %s175_s29 = sand.u32 1, %s3614_s17  }
  0x14   : > { %s6281_s27 = scalar_select %p3714_p11, 1, 0 }
  0x15   : > { %s6282_s28 = scalar_select %p3718_p12, 1, 0 }
  0x16   : > { %s3328_s30 = sshll.u32 %s3618_s18, 9  ;;  %s3297_s5 = sshll.u32 %s175_s29, 5 }
  0x17   : > { %s3727_s8 = scalar_lea.hbm %s6234_s0, %s3328_s30  ;;  %s179_s9 = scalar_lea.vmem [#allocation5], %s3297_s5 }
  0x18   : > { %s186_s10 = sshll.u32 %s179_s9, 4  ;;  %p3731_p13 = pnand %p3362_p10, %p3701_p5  ;;  %s3735_s10 = int_to_ptr.vmem [resolvable:$true] %s186_s10 }
  0x19   : > { %s3737_s12 = scalar_lea.sflag [#allocation6], %s175_s29  ;;  %s3440_s13 = scalar_lea.hbm %s3727_s8, 512 }
  0x1a   : > { %p3441_p0 = scmp.ne.s32.totalorder %s3727_s8, %s3440_s13  ;;  %p3442_p1 = pneg %p3731_p13 }
  0x1b   : > { %s3445_s23 = scalar_lea.hbm %s6234_s0, 1024  ;;  %p3446_p4 = scmp.lt.s32.totalorder %s3727_s8, %s6234_s0 }
  0x1c   : > { %p3443_p2 = pnand %p3442_p1, %p3441_p0  ;;  %p3447_p5 = scmp.lt.s32.totalorder %s3445_s23, %s3440_s13 }
  0x1e   : > { %p3444_p3 = pneg %p3443_p2  ;;  %p3448_p7 = por %p3447_p5, %p3446_p4 }
  0x20   : > { %p3449_p8 = pnand %p3448_p7, %p3444_p3 }
  0x22   : > { %3452 = shalt.err (!%p3449_p8)
}
  0x23   : > { %s3453_s29 = scalar_lea.vmem %s3735_s10, 512  ;;  %s3620_s5 = smov [#allocation5]  }
  0x24   : > { %p3454_p10 = scmp.ne.s32.totalorder %s3735_s10, %s3453_s29  ;;  %s3458_s6 = sshll.u32 %s3620_s5, 4  ;;  %s3459_s6 = int_to_ptr.vmem [resolvable:$false] %s3458_s6 }
  0x25   : > { %s3460_s7 = scalar_lea.vmem %s3459_s6, 1024  ;;  %p3461_p2 = scmp.lt.s32.totalorder %s3735_s10, %s3459_s6 }
  0x26   : > { %p3456_p9 = pnand %p3454_p10, %p3442_p1  ;;  %p3462_p12 = scmp.lt.s32.totalorder %s3460_s7, %s3453_s29 }
  0x28   : > { %p3457_p0 = pneg %p3456_p9  ;;  %p3463_p11 = por %p3462_p12, %p3461_p2 }
  0x2a   : > { %p3464_p6 = pnand %p3463_p11, %p3457_p0 }
  0x2c   : > { %3467 = shalt.err (!%p3464_p6)
}
  0x2d   : > { %s3621_s9 = smov 128   ;;  %s3622_s13 = smov 8  }
  0x2e   : > { %3348 = dma.hbm_to_vmem [thread:$0]  (!%p3731_p13), %s3727_s8, 512, %s3735_s10, %s3737_s12, %s3621_s9, %s3621_s9, %s3622_s13  }
  0x2f   : > { %p3300_p9 = scmp.ge.s32.totalorder %s3618_s18, 1  ;;  %p194_p1 = scmp.lt.s32.totalorder %s3618_s18, 3 }
  0x31   : > { %p195_p3 = pnand %p3300_p9, %p194_p1 }
  0x33   : > { %198 = sbr.rel (%p195_p3) target bundleno = 1877 (0x755), region = 24 }
  0x38   : > { %s3761_s14 = sand.u32 1, %s3610_s16   ;;  %p6284_p6 = scmp.ne.s32.totalorder %s6280_s26, 0 }
  0x39   : > { %s3764_s22 = sshll.u32 %s3761_s14, 5  ;;  %s201_s23 = scalar_lea.sflag [#allocation6], %s3761_s14 }
  0x3a   : > { %s3768_s25 = scalar_lea.vmem [#allocation5], %s3764_s22 }
  0x3b   : > { %3589 = dma.done.wait (%p6284_p6), %s201_s23, 512  }
  0x3c   : > { %3591 = vsyncadd (%p6284_p6), %s201_s23, 4294966784  ;;  %vm6247_vm0 = vcmask 15360   ;;  %v3623_v0 = vmov -1e+30   ;;  %s3624_s8 = smov 127   ;;  %vm6245_vm1 = vcmask 9216  }
  0x3d   : > { %248 = vst [vmem:[#allocation2] sm:$0xff] %v3623_v0  ;;  %249 = vst [vmem:[#allocation2 + $0x8] sm:$0xff] %v3623_v0  ;;  %296 = vrot.lane.b32.xlu1 %v3623_v0, %s3624_s8  ;;  %v3793_v1 = vld [vmem:[%s3768_s25] sm:$0xff]  ;;  %v3802_v3 = vld [vmem:[%s3768_s25 + $0x8] sm:$0xff]  ;;  %s3625_s26 = smov 126   ;;  %s3626_s10 = smov 125  }
  0x3e   : > { %252 = vst [vmem:[#allocation2 + $0x78] sm:$0x3] %v3623_v0  ;;  %253 = vst [vmem:[#allocation2 + $0x80] sm:$0x3] %v3623_v0  ;;  %v3811_v5 = vld [vmem:[%s3768_s25 + $0x10] sm:$0xff]  ;;  %v3818_v6 = vld [vmem:[%s3768_s25 + $0x18] sm:$0xff] }
  0x3f   : > { %251 = vst.msk [vmem:[#allocation2 + $0x10] sm:$0xff] %vm6247_vm0, %v3623_v0  ;;  %260 = vst.msk [vmem:[#allocation2 + $0x28] sm:$0xff] %vm6247_vm0, %v3623_v0  ;;  %s3627_s11 = smov 124   ;;  %vm6272_vm2 = vcmask 1039360   ;;  %vm6248_vm3 = vcmask 1022976   ;;  %s3628_s12 = smov 2  }
  0x40   : > { %261 = vst.msk [vmem:[#allocation2 + $0x40] sm:$0xff] %vm6247_vm0, %v3623_v0  ;;  %262 = vst.msk [vmem:[#allocation2 + $0x58] sm:$0xff] %vm6247_vm0, %v3623_v0  ;;  %vm6246_vm4 = vcmask 1014784   ;;  %vm3630_vm13 = vmmov 1   ;;  %s222_s29 = scalar_lea.vmem [#allocation8], %s3764_s22  ;;  %s5824_s5 = sshll.u32 %s3683_s19, 9 }
  0x41   : > { %263 = vst.msk [vmem:[#allocation2 + $0x70] sm:$0xff] %vm6247_vm0, %v3623_v0  ;;  %298 = vrot.lane.b32.xlu1 %v3793_v1, %s3624_s8  ;;  %s3080_s6 = sshll.u32 %s222_s29, 4  ;;  %s5838_s13 = scalar_lea.hbm %s6235_s1, %s5824_s5  ;;  %s5840_s6 = int_to_ptr.vmem [resolvable:$true] %s3080_s6 }
  0x42   : > { %255 = vst.msk [vmem:[#allocation2 + $0x88] sm:$0x3] %vm6245_vm1, %v3623_v0  ;;  %s3052_s23 = scalar_lea.sflag [#allocation7], %s3761_s14  ;;  %p6476_p12 = scmp.ne.s32.totalorder %s6281_s27, 0 }
  0x44   : > { %v3795_v2 = vld [vmem:[#allocation2] sm:$0xc0]  ;;  %v3804_v4 = vld [vmem:[#allocation2 + $0x8] sm:$0xc0] }
  0x45   : > { %292 = vrot.lane.b32.xlu0 %v3795_v2, %s3624_s8  ;;  %302 = vrot.lane.b32.xlu1 %v3802_v3, %s3624_s8  ;;  %v3832_v7 = vld [vmem:[#allocation2 + $0x78] sm:$0x3]  ;;  %v3842_v8 = vld [vmem:[#allocation2 + $0x80] sm:$0x3]  ;;  %v3896_v15 = vld [vmem:[#allocation2 + $0x8] sm:$0xc0] }
  0x46   : > { %v377_v9 = vld [vmem:[#allocation2 + $0x10] sm:$0xc0]  ;;  %v3851_v10 = vld [vmem:[#allocation2 + $0x28] sm:$0xff]  ;;  %v3902_v16 = vld [vmem:[#allocation2] sm:$0xc0] }
  0x47   : > { %v3857_v11 = vld [vmem:[#allocation2 + $0x40] sm:$0xff]  ;;  %v3863_v12 = vld [vmem:[#allocation2 + $0x58] sm:$0xff] }
  0x48   : > { %v3869_v13 = vld [vmem:[#allocation2 + $0x70] sm:$0xff] }
  0x49   : > { %294 = vrot.lane.b32.xlu0 %v3804_v4, %s3624_s8  ;;  %306 = vrot.lane.b32.xlu1 %v3811_v5, %s3624_s8  ;;  %v382_v14 = vld [vmem:[#allocation2 + $0x88] sm:$0x3] }
  0x4d   : > { %300 = vrot.lane.b32.xlu0 %v3623_v0, %s3624_s8  ;;  %310 = vrot.lane.b32.xlu1 %v3818_v6, %s3624_s8 }
  0x51   : > { %304 = vrot.lane.b32.xlu0 %v3623_v0, %s3624_s8  ;;  %349 = vrot.lane.b32.xlu1 %v3793_v1, %s3625_s26 }
  0x55   : > { %308 = vrot.lane.b32.xlu0 %v3623_v0, %s3624_s8  ;;  %353 = vrot.lane.b32.xlu1 %v3811_v5, %s3625_s26 }
  0x59   : > { %347 = vrot.lane.b32.xlu0 %v3804_v4, %s3625_s26  ;;  %312 = vrot.lane.b32.xlu1 %v3832_v7, %s3624_s8 }
  0x5d   : > { %351 = vrot.lane.b32.xlu0 %v3802_v3, %s3625_s26  ;;  %389 = vrot.lane.b32.xlu1 %v3804_v4, %s3626_s10 }
  0x61   : > { %355 = vrot.lane.b32.xlu0 %v3818_v6, %s3625_s26  ;;  %393 = vrot.lane.b32.xlu1 %v3793_v1, %s3626_s10 }
  0x65   : > { %314 = vrot.lane.b32.xlu0 %v3842_v8, %s3624_s8  ;;  %397 = vrot.lane.b32.xlu1 %v3802_v3, %s3626_s10 }
  0x69   : > { %391 = vrot.lane.b32.xlu0 %v377_v9, %s3626_s10  ;;  %401 = vrot.lane.b32.xlu1 %v3811_v5, %s3626_s10 }
  0x6d   : > { %395 = vrot.lane.b32.xlu0 %v3851_v10, %s3626_s10  ;;  %405 = vrot.lane.b32.xlu1 %v3818_v6, %s3626_s10 }
  0x71   : > { %399 = vrot.lane.b32.xlu0 %v3857_v11, %s3626_s10  ;;  %444 = vrot.lane.b32.xlu1 %v3804_v4, %s3627_s11 }
  0x75   : > { %403 = vrot.lane.b32.xlu0 %v3863_v12, %s3626_s10  ;;  %448 = vrot.lane.b32.xlu1 %v3793_v1, %s3627_s11 }
  0x79   : > { %407 = vrot.lane.b32.xlu0 %v3869_v13, %s3626_s10  ;;  %452 = vrot.lane.b32.xlu1 %v3802_v3, %s3627_s11 }
  0x7d   : > { %446 = vrot.lane.b32.xlu0 %v377_v9, %s3627_s11  ;;  %456 = vrot.lane.b32.xlu1 %v3811_v5, %s3627_s11 }
  0x81   : > { %450 = vrot.lane.b32.xlu0 %v3851_v10, %s3627_s11  ;;  %460 = vrot.lane.b32.xlu1 %v3818_v6, %s3627_s11 }
  0x85   : > { %454 = vrot.lane.b32.xlu0 %v3857_v11, %s3627_s11  ;;  %357 = vrot.lane.b32.xlu1 %v3842_v8, %s3625_s26 }
  0x89   : > { %458 = vrot.lane.b32.xlu0 %v3863_v12, %s3627_s11  ;;  %411 = vrot.lane.b32.xlu1 %v382_v14, %s3626_s10 }
  0x8d   : > { %462 = vrot.lane.b32.xlu0 %v3869_v13, %s3627_s11  ;;  %466 = vrot.lane.b32.xlu1 %v382_v14, %s3627_s11 }
  0x91   : > { %409 = vrot.lane.b32.xlu0 %v3842_v8, %s3626_s10  ;;  %631 = vrot.lane.b32.xlu1 %v3896_v15, %s3624_s8 }
  0x95   : > { %464 = vrot.lane.b32.xlu0 %v3842_v8, %s3627_s11 }
  0x99   : > { %629 = vrot.lane.b32.xlu0 %v3902_v16, %s3624_s8 }
  0x9d   : > { %633 = vrot.lane.b32.xlu0 %v3623_v0, %s3624_s8 }
  0xa1   : > { %637 = vrot.lane.b32.xlu0 %v3623_v0, %s3624_s8 }
  0xa5   : > { %641 = vrot.lane.b32.xlu0 %v3623_v0, %s3624_s8 }
  0xaf   : > { %v297_v17 = vpop.permute.xlu1 %296 }
  0xb3   : > { %v3912_v18 = vpop.permute.xlu1 %298 }
  0xb7   : > { %v293_v19 = vpop.permute.xlu0 %292  ;;  %v3914_v20 = vpop.permute.xlu1 %302 }
  0xbb   : > { %v295_v21 = vpop.permute.xlu0 %294  ;;  %v3916_v22 = vpop.permute.xlu1 %306 }
  0xbc   : > { %v317_v38 = vsel %vm6272_vm2, %v293_v19, %v295_v21  ;;  %v336_v50 = vmax.f32 %v3804_v4, %v295_v21  ;;  %v318_v21 = vsel %vm6272_vm2, %v297_v17, %v3912_v18 }
  0xbd   : > { %v335_v41 = vmax.f32 %v3795_v2, %v317_v38 }
  0xbf   : > { %v3918_v23 = vpop.permute.xlu0 %300  ;;  %v3920_v24 = vpop.permute.xlu1 %310 }
  0xc3   : > { %v3922_v25 = vpop.permute.xlu0 %304  ;;  %v3924_v26 = vpop.permute.xlu1 %349 }
  0xc7   : > { %v3926_v27 = vpop.permute.xlu0 %308  ;;  %v3928_v28 = vpop.permute.xlu1 %353 }
  0xcb   : > { %v348_v29 = vpop.permute.xlu0 %347  ;;  %v313_v30 = vpop.permute.xlu1 %312 }
  0xcc   : > { %v365_v43 = vmax.f32 %v335_v41, %v348_v29  ;;  %v366_v53 = vmax.f32 %v336_v50, %v348_v29 }
  0xcf   : > { %v3930_v31 = vpop.permute.xlu0 %351  ;;  %v390_v32 = vpop.permute.xlu1 %389 }
  0xd0   : > { %v432_v45 = vmax.f32 %v365_v43, %v390_v32 }
  0xd3   : > { %v3932_v33 = vpop.permute.xlu0 %355  ;;  %v3934_v34 = vpop.permute.xlu1 %393 }
  0xd7   : > { %v315_v35 = vpop.permute.xlu0 %314  ;;  %v3936_v36 = vpop.permute.xlu1 %397 }
  0xd8   : > { %v322_v4 = vsel %vm6272_vm2, %v313_v30, %v315_v35  ;;  %v346_v29 = vmax.f32 %v3842_v8, %v315_v35  ;;  %v338_v30 = vmax.f32 %v3793_v1, %v3912_v18 }
  0xd9   : > { %v345_v19 = vmax.f32 %v3832_v7, %v322_v4  ;;  %v319_v7 = vsel %vm6272_vm2, %v3918_v23, %v3914_v20  ;;  %v340_v23 = vmax.f32 %v3802_v3, %v3914_v20 }
  0xdb   : > { %v392_v37 = vpop.permute.xlu0 %391  ;;  %v3939_v39 = vpop.permute.xlu1 %401  ;;  %v370_v4 = vmax.f32 %v340_v23, %v3930_v31 }
  0xdc   : > { %v414_v52 = vsel %vm6248_vm3, %v390_v32, %v392_v37 }
  0xdd   : > { %v433_v55 = vmax.f32 %v366_v53, %v414_v52  ;;  %v368_v53 = vmax.f32 %v338_v30, %v3924_v26 }
  0xdf   : > { %v396_v40 = vpop.permute.xlu0 %395  ;;  %v3942_v42 = vpop.permute.xlu1 %405 }
  0xe0   : > { %v415_v8 = vsel %vm6248_vm3, %v3934_v34, %v396_v40  ;;  %v320_v40 = vsel %vm6272_vm2, %v3922_v25, %v3916_v22 }
  0xe1   : > { %v341_v20 = vmax.f32 %v320_v40, -1e+30 }
  0xe3   : > { %v400_v44 = vpop.permute.xlu0 %399  ;;  %v445_v46 = vpop.permute.xlu1 %444 }
  0xe4   : > { %v487_v48 = vmax.f32 %v432_v45, %v445_v46  ;;  %v337_v45 = vmax.f32 %v318_v21, -1e+30  ;;  %v321_v21 = vsel %vm6272_vm2, %v3926_v27, %v3920_v24  ;;  %v344_v27 = vmax.f32 %v3818_v6, %v3920_v24 }
  0xe6   : > { %511 = vrot.lane.b32.xlu0 %v487_v48, %s3628_s12  ;;  %v367_v17 = vmax.f32 %v337_v45, %v3924_v26 }
  0xe7   : > { %v3944_v47 = vpop.permute.xlu0 %403  ;;  %v449_v49 = vpop.permute.xlu1 %448 }
  0xe8   : > { %v434_v18 = vmax.f32 %v367_v17, %v3934_v34 }
  0xea   : > { %v489_v34 = vmax.f32 %v434_v18, %v449_v49 }
  0xeb   : > { %v3948_v51 = vpop.permute.xlu0 %407  ;;  %v453_v54 = vpop.permute.xlu1 %452 }
  0xef   : > { %v447_v56 = vpop.permute.xlu0 %446  ;;  %v3952_v59 = vpop.permute.xlu1 %456 }
  0xf0   : > { %v469_v57 = vsel %vm6246_vm4, %v445_v46, %v447_v56  ;;  %v339_v56 = vmax.f32 %v319_v7, -1e+30 }
  0xf1   : > { %v488_v58 = vmax.f32 %v433_v55, %v469_v57 }
  0xf2   : > { %v369_v26 = vmax.f32 %v339_v56, %v3930_v31 }
  0xf3   : > { %v451_v60 = vpop.permute.xlu0 %450  ;;  %513 = vrot.lane.b32.xlu1 %v488_v58, %s3628_s12  ;;  %v3955_v61 = vpop.permute.xlu1 %460  ;;  %v435_v58 = vmax.f32 %v368_v53, %v415_v8 }
  0xf4   : > { %v470_v57 = vsel %vm6246_vm4, %v449_v49, %v451_v60  ;;  %v342_v60 = vmax.f32 %v3811_v5, %v3916_v22  ;;  %v417_v22 = vsel %vm6248_vm3, %v3939_v39, %v3944_v47 }
  0xf7   : > { %v455_v62 = vpop.permute.xlu0 %454  ;;  %v358_v2 = vpop.permute.xlu1 %357 }
  0xf8   : > { %v375_v37 = vmax.f32 %v345_v19, %v358_v2  ;;  %v376_v41 = vmax.f32 %v346_v29, %v358_v2  ;;  %v416_v2 = vsel %vm6248_vm3, %v3936_v36, %v400_v44  ;;  %v436_v19 = vmax.f32 %v369_v26, %v3936_v36 }
  0xf9   : > { %v471_v25 = vsel %vm6246_vm4, %v453_v54, %v455_v62  ;;  %v437_v29 = vmax.f32 %v370_v4, %v416_v2  ;;  %v371_v44 = vmax.f32 %v341_v20, %v3928_v28  ;;  %v372_v36 = vmax.f32 %v342_v60, %v3928_v28 }
  0xfa   : > { %v491_v31 = vmax.f32 %v436_v19, %v453_v54  ;;  %v343_v62 = vmax.f32 %v321_v21, -1e+30  ;;  %v418_v28 = vsel %vm6248_vm3, %v3942_v42, %v3948_v51  ;;  %v4021_v51 = vld [vmem:[#allocation2 + $0x80] sm:$0x3] }
  0xfb   : > { %v459_v63 = vpop.permute.xlu0 %458  ;;  %v412_v14 = vpop.permute.xlu1 %411  ;;  %v492_v49 = vmax.f32 %v437_v29, %v471_v25 }
  0xfc   : > { %v373_v47 = vmax.f32 %v343_v62, %v3932_v33 }
  0xff   : > { %v463_v9 = vpop.permute.xlu0 %462  ;;  %v467_v43 = vpop.permute.xlu1 %466 }
 0x103   : > { %v410_v32 = vpop.permute.xlu0 %409 }
 0x104   : > { %v419_v38 = vsel %vm6248_vm3, %v410_v32, %v412_v14  ;;  %v442_v46 = vmax.f32 %v375_v37, %v410_v32  ;;  %v490_v14 = vmax.f32 %v435_v58, %v470_v57  ;;  %v438_v32 = vmax.f32 %v371_v44, %v3939_v39 }
 0x105   : > { %v443_v48 = vmax.f32 %v376_v41, %v419_v38  ;;  %v472_v37 = vsel %vm6246_vm4, %v3952_v59, %v459_v63  ;;  %v439_v38 = vmax.f32 %v372_v36, %v417_v22  ;;  %v374_v39 = vmax.f32 %v344_v27, %v3932_v33  ;;  %v4025_v33 = vld [vmem:[#allocation2 + $0x78] sm:$0x3] }
 0x106   : > { %v493_v54 = vmax.f32 %v438_v32, %v3952_v59  ;;  %v440_v63 = vmax.f32 %v373_v47, %v3942_v42  ;;  %v713_v42 = vld [vmem:[#allocation2 + $0x10] sm:$0xc0]  ;;  %v718_v59 = vld [vmem:[#allocation2 + $0x88] sm:$0x3] }
 0x107   : > { %v465_v50 = vpop.permute.xlu0 %464  ;;  %v494_v41 = vmax.f32 %v439_v38, %v472_v37  ;;  %v441_v24 = vmax.f32 %v374_v39, %v418_v28 }
 0x108   : > { %v497_v35 = vmax.f32 %v442_v46, %v465_v50  ;;  %v474_v52 = vsel %vm6246_vm4, %v465_v50, %v467_v43  ;;  %v473_v43 = vsel %vm6246_vm4, %v3955_v61, %v463_v9  ;;  %v495_v45 = vmax.f32 %v440_v63, %v3955_v61 }
 0x109   : > { %v498_v55 = vmax.f32 %v443_v48, %v474_v52  ;;  %v496_v46 = vmax.f32 %v441_v24, %v473_v43  ;;  %v632_v48 = vpop.permute.xlu1 %631 }
 0x10a   : > { %531 = vrot.lane.b32.xlu0 %v497_v35, %s3628_s12  ;;  %v672_v24 = vmax.f32 %v3896_v15, %v632_v48 }
 0x10b   : > { %533 = vrot.lane.b32.xlu1 %v498_v55, %s3628_s12  ;;  %v630_v61 = vpop.permute.xlu0 %629 }
 0x10c   : > { %v653_v21 = vsel %vm6272_vm2, %v630_v61, %v632_v48 }
 0x10d   : > { %v671_v22 = vmax.f32 %v3902_v16, %v653_v21 }
 0x10e   : > { %515 = vrot.lane.b32.xlu0 %v489_v34, %s3628_s12 }
 0x10f   : > { %517 = vrot.lane.b32.xlu1 %v490_v14, %s3628_s12  ;;  %v4063_v9 = vpop.permute.xlu0 %633 }
 0x112   : > { %519 = vrot.lane.b32.xlu0 %v491_v31, %s3628_s12 }
 0x113   : > { %521 = vrot.lane.b32.xlu1 %v492_v49, %s3628_s12  ;;  %v4065_v30 = vpop.permute.xlu0 %637 }
 0x116   : > { %523 = vrot.lane.b32.xlu0 %v493_v54, %s3628_s12 }
 0x117   : > { %525 = vrot.lane.b32.xlu1 %v494_v41, %s3628_s12  ;;  %v4067_v7 = vpop.permute.xlu0 %641 }
 0x11a   : > { %527 = vrot.lane.b32.xlu0 %v495_v45, %s3628_s12 }
 0x11b   : > { %529 = vrot.lane.b32.xlu1 %v496_v46, %s3628_s12 }
 0x11e   : > { %645 = vrot.lane.b32.xlu0 %v3623_v0, %s3624_s8 }
 0x11f   : > { %651 = vrot.lane.b32.xlu1 %v4021_v51, %s3624_s8 }
 0x122   : > { %649 = vrot.lane.b32.xlu0 %v4025_v33, %s3624_s8 }
 0x123   : > { %693 = vrot.lane.b32.xlu1 %v4021_v51, %s3625_s26 }
 0x126   : > { %683 = vrot.lane.b32.xlu0 %v3896_v15, %s3625_s26 }
 0x127   : > { %727 = vrot.lane.b32.xlu1 %v713_v42, %s3626_s10 }
 0x12a   : > { %725 = vrot.lane.b32.xlu0 %v3896_v15, %s3626_s10 }
 0x12b   : > { %731 = vrot.lane.b32.xlu1 %v3851_v10, %s3626_s10 }
 0x12e   : > { %779 = vrot.lane.b32.xlu0 %v3896_v15, %s3627_s11 }
 0x12f   : > { %735 = vrot.lane.b32.xlu1 %v3857_v11, %s3626_s10 }
 0x132   : > { %745 = vrot.lane.b32.xlu0 %v4021_v51, %s3626_s10 }
 0x133   : > { %739 = vrot.lane.b32.xlu1 %v3863_v12, %s3626_s10 }
 0x136   : > { %799 = vrot.lane.b32.xlu0 %v4021_v51, %s3627_s11 }
 0x137   : > { %743 = vrot.lane.b32.xlu1 %v3869_v13, %s3626_s10 }
 0x13b   : > { %781 = vrot.lane.b32.xlu1 %v713_v42, %s3627_s11 }
 0x13f   : > { %785 = vrot.lane.b32.xlu1 %v3851_v10, %s3627_s11 }
 0x143   : > { %789 = vrot.lane.b32.xlu1 %v3857_v11, %s3627_s11 }
 0x147   : > { %793 = vrot.lane.b32.xlu1 %v3863_v12, %s3627_s11 }
 0x14b   : > { %797 = vrot.lane.b32.xlu1 %v3869_v13, %s3627_s11 }
 0x14f   : > { %747 = vrot.lane.b32.xlu1 %v718_v59, %s3626_s10 }
 0x153   : > { %801 = vrot.lane.b32.xlu1 %v718_v59, %s3627_s11 }
 0x158   : > { %v512_v50 = vpop.permute.xlu0 %511 }
 0x165   : > { %v514_v17 = vpop.permute.xlu1 %513 }
 0x166   : > { %v535_v8 = vsel %vm6247_vm0, %v512_v50, %v514_v17  ;;  %v4111_v17 = vld [vmem:[#allocation2] sm:$0xc0] }
 0x167   : > { %547 = vst [vmem:[#allocation3 - $0x6] sm:$0xc0] %v535_v8 }
 0x17c   : > { %v532_v35 = vpop.permute.xlu0 %531 }
 0x17d   : > { %v534_v52 = vpop.permute.xlu1 %533 }
 0x17e   : > { %v540_v53 = vsel %vm6247_vm0, %v532_v35, %v534_v52 }
 0x17f   : > { %552 = vst [vmem:[#allocation3 + $0x22] sm:$0x3] %v540_v53 }
 0x180   : > { %v516_v55 = vpop.permute.xlu0 %515 }
 0x181   : > { %v518_v56 = vpop.permute.xlu1 %517 }
 0x182   : > { %v4072_v18 = vsel %vm6247_vm0, %v516_v55, %v518_v56 }
 0x183   : > { %548 = vst [vmem:[#allocation3 + $0x2] sm:$0xff] %v4072_v18 }
 0x184   : > { %v520_v57 = vpop.permute.xlu0 %519 }
 0x185   : > { %v522_v23 = vpop.permute.xlu1 %521 }
 0x186   : > { %v537_v40 = vsel %vm6247_vm0, %v520_v57, %v522_v23 }
 0x187   : > { %549 = vst [vmem:[#allocation3 + $0xa] sm:$0xff] %v537_v40 }
 0x188   : > { %v524_v58 = vpop.permute.xlu0 %523 }
 0x189   : > { %v526_v26 = vpop.permute.xlu1 %525 }
 0x18a   : > { %v4077_v2 = vsel %vm6247_vm0, %v524_v58, %v526_v26  ;;  %v553_v55 = vld [vmem:[#allocation3] sm:$0xff] }
 0x18b   : > { %550 = vst [vmem:[#allocation3 + $0x12] sm:$0xff] %v4077_v2  ;;  %v557_v56 = vld [vmem:[#allocation3 + $0x1] sm:$0xff] }
 0x18c   : > { %v528_v34 = vpop.permute.xlu0 %527  ;;  %v561_v58 = vmax.f32 %v553_v55, %v557_v56  ;;  %v1048_v55 = vld [vmem:[#allocation2 + $0x88] sm:$0x3] }
 0x18d   : > { %v530_v60 = vpop.permute.xlu1 %529 }
 0x18e   : > { %v539_v4 = vsel %vm6247_vm0, %v528_v34, %v530_v60  ;;  %v554_v41 = vld [vmem:[#allocation3 + $0x8] sm:$0xff]  ;;  %v569_v21 = vmax.f32 %v561_v58, %v4072_v18 }
 0x18f   : > { %551 = vst [vmem:[#allocation3 + $0x1a] sm:$0xff] %v539_v4  ;;  %v558_v63 = vld [vmem:[#allocation3 + $0x9] sm:$0xff] }
 0x190   : > { %v4081_v14 = vpop.permute.xlu0 %645  ;;  %v562_v42 = vmax.f32 %v554_v41, %v558_v63 }
 0x191   : > { %v4083_v20 = vpop.permute.xlu1 %651 }
 0x192   : > { %v570_v53 = vmax.f32 %v562_v42, %v537_v40  ;;  %v574_v57 = vld [vmem:[#allocation3 + $0xb] sm:$0xff]  ;;  %v682_v63 = vmax.f32 %v4021_v51, %v4083_v20 }
 0x193   : > { %v582_v40 = vld [vmem:[#allocation3 + $0xc] sm:$0xff] }
 0x194   : > { %v650_v19 = vpop.permute.xlu0 %649  ;;  %v578_v34 = vmax.f32 %v570_v53, %v574_v57  ;;  %v4217_v53 = vld [vmem:[#allocation2 + $0x80] sm:$0x3] }
 0x195   : > { %v4085_v25 = vpop.permute.xlu1 %693  ;;  %v658_v62 = vsel %vm6272_vm2, %v650_v19, %v4083_v20 }
 0x196   : > { %v681_v27 = vmax.f32 %v4025_v33, %v658_v62  ;;  %v556_v61 = vld [vmem:[#allocation3 + $0x18] sm:$0xff] }
 0x197   : > { %v560_v50 = vld [vmem:[#allocation3 + $0x19] sm:$0xff] }
 0x198   : > { %v684_v29 = vpop.permute.xlu0 %683  ;;  %v711_v16 = vmax.f32 %v681_v27, %v4085_v25  ;;  %v564_v15 = vmax.f32 %v556_v61, %v560_v50  ;;  %v576_v19 = vld [vmem:[#allocation3 + $0x1b] sm:$0xff] }
 0x199   : > { %v728_v44 = vpop.permute.xlu1 %727  ;;  %v701_v36 = vmax.f32 %v671_v22, %v684_v29  ;;  %v702_v59 = vmax.f32 %v672_v24, %v684_v29  ;;  %v573_v22 = vld [vmem:[#allocation3 + $0x3] sm:$0xff]  ;;  %v583_v50 = vld [vmem:[#allocation3 + $0x14] sm:$0xff] }
 0x19a   : > { %v572_v26 = vmax.f32 %v564_v15, %v539_v4  ;;  %v584_v62 = vld [vmem:[#allocation3 + $0x1c] sm:$0xff]  ;;  %v577_v18 = vmax.f32 %v569_v21, %v573_v22  ;;  %v4221_v15 = vld [vmem:[#allocation2 + $0x78] sm:$0x3] }
 0x19c   : > { %v726_v31 = vpop.permute.xlu0 %725  ;;  %v580_v29 = vmax.f32 %v572_v26, %v576_v19 }
 0x19d   : > { %v4089_v49 = vpop.permute.xlu1 %731  ;;  %v767_v32 = vmax.f32 %v701_v36, %v726_v31  ;;  %v749_v33 = vsel %vm6248_vm3, %v726_v31, %v728_v44  ;;  %v4126_v44 = vmax.f32 %v578_v34, %v582_v40  ;;  %v555_v31 = vld [vmem:[#allocation3 + $0x10] sm:$0xff] }
 0x19e   : > { %v768_v8 = vmax.f32 %v702_v59, %v749_v33  ;;  %v559_v36 = vld [vmem:[#allocation3 + $0x11] sm:$0xff]  ;;  %v712_v59 = vmax.f32 %v682_v63, %v4085_v25 }
 0x19f   : > { %vm590_vm5 = vcmp.eq.f32.partialorder %v3802_v3, %v4126_v44 }
 0x1a0   : > { %v780_v37 = vpop.permute.xlu0 %779 }
 0x1a1   : > { %v821_v38 = vmax.f32 %v767_v32, %v780_v37  ;;  %v4094_v47 = vpop.permute.xlu1 %735  ;;  %v563_v32 = vmax.f32 %v555_v31, %v559_v36 }
 0x1a3   : > { %845 = vrot.lane.b32.xlu0 %v821_v38, %s3628_s12  ;;  %v581_v38 = vld [vmem:[#allocation3 + $0x4] sm:$0xff]  ;;  %v571_v41 = vmax.f32 %v563_v32, %v4077_v2 }
 0x1a4   : > { %v4097_v28 = vpop.permute.xlu0 %745  ;;  %v4151_v24 = vmax.f32 %v577_v18, %v581_v38 }
 0x1a5   : > { %v4100_v54 = vpop.permute.xlu1 %739  ;;  %v777_v39 = vmax.f32 %v711_v16, %v4097_v28  ;;  %v6241_v16 = vmov 0.0  }
 0x1a6   : > { %vm589_vm7 = vcmp.eq.f32.partialorder %v3793_v1, %v4151_v24 }
 0x1a8   : > { %v4103_v43 = vpop.permute.xlu0 %799 }
 0x1a9   : > { %v831_v45 = vmax.f32 %v777_v39, %v4103_v43  ;;  %v4107_v46 = vpop.permute.xlu1 %743  ;;  %v4142_v39 = vsel %vm590_vm5, 1.0, %v6241_v16 }
 0x1ab   : > { %865 = vrot.lane.b32.xlu0 %v831_v45, %s3628_s12  ;;  %v575_v45 = vld [vmem:[#allocation3 + $0x13] sm:$0xff] }
 0x1ac   : > { %v579_v51 = vmax.f32 %v571_v41, %v575_v45 }
 0x1ad   : > { %v782_v35 = vpop.permute.xlu1 %781 }
 0x1ae   : > { %v803_v52 = vsel %vm6246_vm4, %v780_v37, %v782_v35  ;;  %v4130_v37 = vmax.f32 %v580_v29, %v584_v62  ;;  %v4176_v35 = vmax.f32 %v579_v51, %v583_v50 }
 0x1af   : > { %959 = vrot.lane.b32.xlu0 %v4111_v17, %s3624_s8  ;;  %v822_v48 = vmax.f32 %v768_v8, %v803_v52  ;;  %v4170_v8 = vsel %vm589_vm7, 1.0, %v6241_v16  ;;  %v4179_v52 = vld [vmem:[#allocation2 + $0x8] sm:$0xc0] }
 0x1b0   : > { %vm592_vm6 = vcmp.eq.f32.partialorder %v3818_v6, %v4130_v37  ;;  %6285 = vst [vmem:[#allocation18_spill] sm:$0xff] %v4176_v35  ;;  %vm591_vm8 = vcmp.eq.f32.partialorder %v3811_v5, %v4176_v35 }
 0x1b1   : > { %847 = vrot.lane.b32.xlu1 %v822_v48, %s3628_s12  ;;  %v4117_v23 = vpop.permute.xlu1 %785  ;;  %v4157_v42 = vsel %vm592_vm6, 1.0, %v6241_v16  ;;  %v1043_v48 = vld [vmem:[#allocation2 + $0x10] sm:$0xc0] }
 0x1b3   : > { %963 = vrot.lane.b32.xlu0 %v3623_v0, %s3624_s8 }
 0x1b5   : > { %v4121_v60 = vpop.permute.xlu1 %789 }
 0x1b7   : > { %967 = vrot.lane.b32.xlu0 %v3623_v0, %s3624_s8 }
 0x1b9   : > { %v4128_v4 = vpop.permute.xlu1 %793 }
 0x1bb   : > { %971 = vrot.lane.b32.xlu0 %v3623_v0, %s3624_s8 }
 0x1bd   : > { %v4136_v27 = vpop.permute.xlu1 %797 }
 0x1bf   : > { %687 = vrot.lane.b32.xlu0 %v4142_v39, %s3625_s26 }
 0x1c1   : > { %v748_v33 = vpop.permute.xlu1 %747 }
 0x1c2   : > { %v754_v2 = vsel %vm6248_vm3, %v4097_v28, %v748_v33 }
 0x1c3   : > { %691 = vrot.lane.b32.xlu0 %v4157_v42, %s3625_s26  ;;  %v778_v20 = vmax.f32 %v712_v59, %v754_v2 }
 0x1c5   : > { %v802_v61 = vpop.permute.xlu1 %801 }
 0x1c6   : > { %v808_v28 = vsel %vm6246_vm4, %v4103_v43, %v802_v61  ;;  %v4191_v43 = vsel %vm591_vm8, 1.0, %v6241_v16 }
 0x1c7   : > { %729 = vrot.lane.b32.xlu0 %v4170_v8, %s3626_s10  ;;  %v832_v25 = vmax.f32 %v778_v20, %v808_v28 }
 0x1c9   : > { %867 = vrot.lane.b32.xlu1 %v832_v25, %s3628_s12 }
 0x1cb   : > { %733 = vrot.lane.b32.xlu0 %v4142_v39, %s3626_s10 }
 0x1cd   : > { %961 = vrot.lane.b32.xlu1 %v4179_v52, %s3624_s8 }
 0x1cf   : > { %737 = vrot.lane.b32.xlu0 %v4191_v43, %s3626_s10 }
 0x1d1   : > { %635 = vrot.lane.b32.xlu1 %v4170_v8, %s3624_s8 }
 0x1d3   : > { %741 = vrot.lane.b32.xlu0 %v4157_v42, %s3626_s10 }
 0x1d5   : > { %639 = vrot.lane.b32.xlu1 %v4142_v39, %s3624_s8 }
 0x1d7   : > { %783 = vrot.lane.b32.xlu0 %v4170_v8, %s3627_s11 }
 0x1d9   : > { %643 = vrot.lane.b32.xlu1 %v4191_v43, %s3624_s8 }
 0x1db   : > { %787 = vrot.lane.b32.xlu0 %v4142_v39, %s3627_s11 }
 0x1dd   : > { %647 = vrot.lane.b32.xlu1 %v4157_v42, %s3624_s8 }
 0x1df   : > { %791 = vrot.lane.b32.xlu0 %v4191_v43, %s3627_s11 }
 0x1e1   : > { %685 = vrot.lane.b32.xlu1 %v4170_v8, %s3625_s26 }
 0x1e3   : > { %795 = vrot.lane.b32.xlu0 %v4157_v42, %s3627_s11 }
 0x1e5   : > { %689 = vrot.lane.b32.xlu1 %v4191_v43, %s3625_s26 }
 0x1e7   : > { %975 = vrot.lane.b32.xlu0 %v3623_v0, %s3624_s8 }
 0x1e9   : > { %981 = vrot.lane.b32.xlu1 %v4217_v53, %s3624_s8 }
 0x1eb   : > { %979 = vrot.lane.b32.xlu0 %v4221_v15, %s3624_s8 }
 0x1ed   : > { %1023 = vrot.lane.b32.xlu1 %v4217_v53, %s3625_s26 }
 0x1ef   : > { %1013 = vrot.lane.b32.xlu0 %v4179_v52, %s3625_s26 }
 0x1f1   : > { %1057 = vrot.lane.b32.xlu1 %v1043_v48, %s3626_s10 }
 0x1f3   : > { %1055 = vrot.lane.b32.xlu0 %v4179_v52, %s3626_s10 }
 0x1f5   : > { %1061 = vrot.lane.b32.xlu1 %v3851_v10, %s3626_s10 }
 0x1f7   : > { %1075 = vrot.lane.b32.xlu0 %v4217_v53, %s3626_s10 }
 0x1f9   : > { %1065 = vrot.lane.b32.xlu1 %v3857_v11, %s3626_s10 }
 0x1fb   : > { %1109 = vrot.lane.b32.xlu0 %v4179_v52, %s3627_s11 }
 0x1fd   : > { %1069 = vrot.lane.b32.xlu1 %v3863_v12, %s3626_s10 }
 0x1ff   : > { %1129 = vrot.lane.b32.xlu0 %v4217_v53, %s3627_s11 }
 0x201   : > { %1073 = vrot.lane.b32.xlu1 %v3869_v13, %s3626_s10 }
 0x205   : > { %1077 = vrot.lane.b32.xlu1 %v1048_v55, %s3626_s10 }
 0x209   : > { %1111 = vrot.lane.b32.xlu1 %v1043_v48, %s3627_s11 }
 0x20d   : > { %1115 = vrot.lane.b32.xlu1 %v3851_v10, %s3627_s11 }
 0x211   : > { %1119 = vrot.lane.b32.xlu1 %v3857_v11, %s3627_s11 }
 0x215   : > { %1123 = vrot.lane.b32.xlu1 %v3863_v12, %s3627_s11  ;;  %v846_v56 = vpop.permute.xlu0 %845 }
 0x219   : > { %1127 = vrot.lane.b32.xlu1 %v3869_v13, %s3627_s11 }
 0x21d   : > { %v866_v57 = vpop.permute.xlu0 %865  ;;  %1131 = vrot.lane.b32.xlu1 %v1048_v55, %s3627_s11 }
 0x221   : > { %v960_v58 = vpop.permute.xlu0 %959 }
 0x223   : > { %v848_v26 = vpop.permute.xlu1 %847 }
 0x224   : > { %v869_v34 = vsel %vm6247_vm0, %v846_v56, %v848_v26 }
 0x225   : > { %v4260_v40 = vpop.permute.xlu0 %963  ;;  %881 = vst [vmem:[#allocation3 - $0x6] sm:$0xc0] %v869_v34 }
 0x229   : > { %v4262_v10 = vpop.permute.xlu0 %967 }
 0x22d   : > { %v4264_v11 = vpop.permute.xlu0 %971 }
 0x231   : > { %v4266_v19 = vpop.permute.xlu0 %687 }
 0x235   : > { %v4268_v12 = vpop.permute.xlu0 %691 }
 0x239   : > { %v4270_v21 = vpop.permute.xlu0 %729 }
 0x23a   : > { %v750_v50 = vsel %vm6248_vm3, %v4270_v21, %v4089_v49 }
 0x23b   : > { %v868_v13 = vpop.permute.xlu1 %867 }
 0x23c   : > { %v874_v29 = vsel %vm6247_vm0, %v866_v57, %v868_v13 }
 0x23d   : > { %v4273_v22 = vpop.permute.xlu0 %733  ;;  %886 = vst [vmem:[#allocation3 + $0x22] sm:$0x3] %v874_v29 }
 0x23f   : > { %v4275_v31 = vpop.permute.xlu1 %961 }
 0x241   : > { %v4277_v36 = vpop.permute.xlu0 %737 }
 0x243   : > { %v636_v62 = vpop.permute.xlu1 %635 }
 0x244   : > { %v674_v59 = vmax.f32 %v4170_v8, %v636_v62 }
 0x245   : > { %v4279_v32 = vpop.permute.xlu0 %741 }
 0x247   : > { %v4281_v18 = vpop.permute.xlu1 %639 }
 0x248   : > { %v676_v33 = vmax.f32 %v4142_v39, %v4281_v18  ;;  %v751_v39 = vsel %vm6248_vm3, %v4273_v22, %v4094_v47  ;;  %v752_v47 = vsel %vm6248_vm3, %v4277_v36, %v4100_v54 }
 0x249   : > { %v4283_v38 = vpop.permute.xlu0 %783 }
 0x24a   : > { %v706_v20 = vmax.f32 %v676_v33, %v4266_v19  ;;  %v804_v8 = vsel %vm6246_vm4, %v4283_v38, %v4117_v23 }
 0x24b   : > { %v4285_v41 = vpop.permute.xlu1 %643 }
 0x24c   : > { %v678_v25 = vmax.f32 %v4191_v43, %v4285_v41  ;;  %v772_v56 = vmax.f32 %v706_v20, %v751_v39 }
 0x24d   : > { %v4287_v63 = vpop.permute.xlu0 %787 }
 0x24e   : > { %v805_v43 = vsel %vm6246_vm4, %v4287_v63, %v4121_v60  ;;  %v753_v60 = vsel %vm6248_vm3, %v4279_v32, %v4107_v46  ;;  %v983_v46 = vsel %vm6272_vm2, %v960_v58, %v4275_v31 }
 0x24f   : > { %v4289_v45 = vpop.permute.xlu1 %647  ;;  %v826_v13 = vmax.f32 %v772_v56, %v805_v43 }
 0x250   : > { %v680_v49 = vmax.f32 %v4157_v42, %v4289_v45 }
 0x251   : > { %v4293_v2 = vpop.permute.xlu0 %791 }
 0x252   : > { %v710_v42 = vmax.f32 %v680_v49, %v4268_v12  ;;  %v1001_v49 = vmax.f32 %v4111_v17, %v983_v46 }
 0x253   : > { %v686_v51 = vpop.permute.xlu1 %685 }
 0x254   : > { %v704_v61 = vmax.f32 %v674_v59, %v686_v51  ;;  %v806_v59 = vsel %vm6246_vm4, %v4293_v2, %v4128_v4  ;;  %v776_v54 = vmax.f32 %v710_v42, %v753_v60 }
 0x255   : > { %v4300_v28 = vpop.permute.xlu0 %795 }
 0x256   : > { %v770_v48 = vmax.f32 %v704_v61, %v750_v50  ;;  %v807_v50 = vsel %vm6246_vm4, %v4300_v28, %v4136_v27 }
 0x257   : > { %v4310_v55 = vpop.permute.xlu1 %689  ;;  %v830_v39 = vmax.f32 %v776_v54, %v807_v50  ;;  %v4363_v50 = vld [vmem:[#allocation2] sm:$0xc0] }
 0x258   : > { %v708_v57 = vmax.f32 %v678_v25, %v4310_v55  ;;  %v824_v26 = vmax.f32 %v770_v48, %v804_v8 }
 0x259   : > { %v4318_v34 = vpop.permute.xlu0 %975 }
 0x25a   : > { %851 = vrot.lane.b32.xlu1 %v824_v26, %s3628_s12  ;;  %v774_v29 = vmax.f32 %v708_v57, %v752_v47 }
 0x25b   : > { %v4324_v23 = vpop.permute.xlu1 %981 }
 0x25c   : > { %v828_v61 = vmax.f32 %v774_v29, %v806_v59 }
 0x25d   : > { %v980_v33 = vpop.permute.xlu0 %979 }
 0x25e   : > { %855 = vrot.lane.b32.xlu1 %v826_v13, %s3628_s12  ;;  %v988_v4 = vsel %vm6272_vm2, %v980_v33, %v4324_v23  ;;  %v654_v33 = vsel %vm6272_vm2, %v4063_v9, %v636_v62 }
 0x25f   : > { %v4334_v20 = vpop.permute.xlu1 %1023  ;;  %v1011_v27 = vmax.f32 %v4221_v15, %v988_v4  ;;  %v655_v15 = vsel %vm6272_vm2, %v4065_v30, %v4281_v18  ;;  %v1002_v4 = vmax.f32 %v4179_v52, %v4275_v31  ;;  %v656_v30 = vsel %vm6272_vm2, %v4067_v7, %v4285_v41 }
 0x261   : > { %v1014_v25 = vpop.permute.xlu0 %1013  ;;  %v1041_v58 = vmax.f32 %v1011_v27, %v4334_v20 }
 0x262   : > { %859 = vrot.lane.b32.xlu1 %v828_v61, %s3628_s12  ;;  %v1031_v26 = vmax.f32 %v1001_v49, %v1014_v25  ;;  %v673_v61 = vmax.f32 %v654_v33, -1e+30  ;;  %v1032_v62 = vmax.f32 %v1002_v4, %v1014_v25  ;;  %v4436_v33 = vld [vmem:[#allocation2 + $0x28] sm:$0xff] }
 0x263   : > { %v1058_v48 = vpop.permute.xlu1 %1057 }
 0x264   : > { %v703_v46 = vmax.f32 %v673_v61, %v686_v51  ;;  %v657_v51 = vsel %vm6272_vm2, %v4081_v14, %v4289_v45  ;;  %v4458_v61 = vld [vmem:[#allocation2 + $0x88] sm:$0x3] }
 0x265   : > { %v1056_v8 = vpop.permute.xlu0 %1055  ;;  %v679_v41 = vmax.f32 %v657_v51, -1e+30 }
 0x266   : > { %863 = vrot.lane.b32.xlu1 %v830_v39, %s3628_s12  ;;  %v1097_v47 = vmax.f32 %v1031_v26, %v1056_v8  ;;  %v675_v39 = vmax.f32 %v655_v15, -1e+30  ;;  %v1079_v9 = vsel %vm6248_vm3, %v1056_v8, %v1058_v48  ;;  %v769_v27 = vmax.f32 %v703_v46, %v4270_v21  ;;  %v4454_v15 = vld [vmem:[#allocation2 + $0x70] sm:$0xff] }
 0x267   : > { %v4345_v56 = vpop.permute.xlu1 %1061  ;;  %v1098_v52 = vmax.f32 %v1032_v62, %v1079_v9  ;;  %v677_v26 = vmax.f32 %v656_v30, -1e+30 }
 0x268   : > { %v705_v18 = vmax.f32 %v675_v39, %v4266_v19  ;;  %v823_v21 = vmax.f32 %v769_v27, %v4283_v38 }
 0x269   : > { %v1076_v57 = vpop.permute.xlu0 %1075  ;;  %v707_v19 = vmax.f32 %v677_v26, %v4310_v55 }
 0x26a   : > { %v1107_v60 = vmax.f32 %v1041_v58, %v1076_v57  ;;  %v771_v7 = vmax.f32 %v705_v18, %v4273_v22 }
 0x26b   : > { %v4349_v43 = vpop.permute.xlu1 %1065  ;;  %v773_v45 = vmax.f32 %v707_v19, %v4277_v36 }
 0x26c   : > { %v825_v14 = vmax.f32 %v771_v7, %v4287_v63 }
 0x26d   : > { %v1110_v13 = vpop.permute.xlu0 %1109  ;;  %v827_v38 = vmax.f32 %v773_v45, %v4293_v2  ;;  %v4407_v2 = vld [vmem:[#allocation2] sm:$0xff] }
 0x26e   : > { %v1151_v42 = vmax.f32 %v1097_v47, %v1110_v13 }
 0x26f   : > { %v4352_v29 = vpop.permute.xlu1 %1069 }
 0x270   : > { %1175 = vrot.lane.b32.xlu0 %v1151_v42, %s3628_s12 }
 0x271   : > { %v1130_v17 = vpop.permute.xlu0 %1129 }
 0x272   : > { %v1161_v59 = vmax.f32 %v1107_v60, %v1130_v17 }
 0x273   : > { %v4360_v54 = vpop.permute.xlu1 %1073 }
 0x274   : > { %1195 = vrot.lane.b32.xlu0 %v1161_v59, %s3628_s12  ;;  %v4448_v59 = vld [vmem:[#allocation2 + $0x58] sm:$0xff] }
 0x277   : > { %v1078_v49 = vpop.permute.xlu1 %1077 }
 0x278   : > { %1305 = vrot.lane.b32.xlu0 %v4363_v50, %s3624_s8  ;;  %v1084_v36 = vsel %vm6248_vm3, %v1076_v57, %v1078_v49  ;;  %v1389_v57 = vld [vmem:[#allocation2 + $0x10] sm:$0xc0] }
 0x27b   : > { %v1112_v31 = vpop.permute.xlu1 %1111 }
 0x27c   : > { %1309 = vrot.lane.b32.xlu0 %v3623_v0, %s3624_s8  ;;  %v1133_v48 = vsel %vm6246_vm4, %v1110_v13, %v1112_v31  ;;  %v709_v0 = vmax.f32 %v679_v41, %v4268_v12  ;;  %v1012_v13 = vmax.f32 %v4217_v53, %v4324_v23  ;;  %v4421_v23 = vld [vmem:[#allocation2 + $0x80] sm:$0x3] }
 0x27d   : > { %v1152_v8 = vmax.f32 %v1098_v52, %v1133_v48 }
 0x27e   : > { %v775_v22 = vmax.f32 %v709_v0, %v4279_v32  ;;  %v1042_v58 = vmax.f32 %v1012_v13, %v4334_v20  ;;  %v4423_v20 = vld [vmem:[#allocation2 + $0x78] sm:$0x3] }
 0x27f   : > { %1177 = vrot.lane.b32.xlu1 %v1152_v8, %s3628_s12  ;;  %v4385_v25 = vpop.permute.xlu1 %1115 }
 0x280   : > { %849 = vrot.lane.b32.xlu0 %v823_v21, %s3628_s12  ;;  %v829_v63 = vmax.f32 %v775_v22, %v4300_v28  ;;  %v1108_v32 = vmax.f32 %v1042_v58, %v1084_v36  ;;  %v4415_v28 = vld [vmem:[#allocation2 + $0x8] sm:$0xc0] }
 0x283   : > { %v4391_v47 = vpop.permute.xlu1 %1119 }
 0x284   : > { %853 = vrot.lane.b32.xlu0 %v825_v14, %s3628_s12 }
 0x287   : > { %v4396_v55 = vpop.permute.xlu1 %1123 }
 0x288   : > { %857 = vrot.lane.b32.xlu0 %v827_v38, %s3628_s12 }
 0x28b   : > { %v4402_v12 = vpop.permute.xlu1 %1127 }
 0x28c   : > { %861 = vrot.lane.b32.xlu0 %v829_v63, %s3628_s12 }
 0x28f   : > { %v1132_v42 = vpop.permute.xlu1 %1131 }
 0x290   : > { %1313 = vrot.lane.b32.xlu0 %v4407_v2, %s3624_s8  ;;  %v1138_v60 = vsel %vm6246_vm4, %v1130_v17, %v1132_v42  ;;  %v4442_v17 = vld [vmem:[#allocation2 + $0x40] sm:$0xff] }
 0x291   : > { %v1162_v53 = vmax.f32 %v1108_v32, %v1138_v60 }
 0x293   : > { %1197 = vrot.lane.b32.xlu1 %v1162_v53, %s3628_s12 }
 0x294   : > { %1317 = vrot.lane.b32.xlu0 %v4407_v2, %s3624_s8 }
 0x297   : > { %1307 = vrot.lane.b32.xlu1 %v4415_v28, %s3624_s8 }
 0x298   : > { %1321 = vrot.lane.b32.xlu0 %v4407_v2, %s3624_s8 }
 0x29b   : > { %1327 = vrot.lane.b32.xlu1 %v4421_v23, %s3624_s8 }
 0x29c   : > { %1325 = vrot.lane.b32.xlu0 %v4423_v20, %s3624_s8 }
 0x29f   : > { %1369 = vrot.lane.b32.xlu1 %v4421_v23, %s3625_s26 }
 0x2a0   : > { %1359 = vrot.lane.b32.xlu0 %v4415_v28, %s3625_s26 }
 0x2a3   : > { %1403 = vrot.lane.b32.xlu1 %v1389_v57, %s3626_s10 }
 0x2a4   : > { %1401 = vrot.lane.b32.xlu0 %v4415_v28, %s3626_s10 }
 0x2a7   : > { %1407 = vrot.lane.b32.xlu1 %v4436_v33, %s3626_s10 }
 0x2a8   : > { %1421 = vrot.lane.b32.xlu0 %v4421_v23, %s3626_s10 }
 0x2ab   : > { %1411 = vrot.lane.b32.xlu1 %v4442_v17, %s3626_s10 }
 0x2ac   : > { %1455 = vrot.lane.b32.xlu0 %v4415_v28, %s3627_s11 }
 0x2af   : > { %1415 = vrot.lane.b32.xlu1 %v4448_v59, %s3626_s10 }
 0x2b0   : > { %1475 = vrot.lane.b32.xlu0 %v4421_v23, %s3627_s11 }
 0x2b3   : > { %1419 = vrot.lane.b32.xlu1 %v4454_v15, %s3626_s10 }
 0x2b7   : > { %1423 = vrot.lane.b32.xlu1 %v4458_v61, %s3626_s10 }
 0x2bb   : > { %1457 = vrot.lane.b32.xlu1 %v1389_v57, %s3627_s11 }
 0x2bf   : > { %1461 = vrot.lane.b32.xlu1 %v4436_v33, %s3627_s11 }
 0x2c3   : > { %1465 = vrot.lane.b32.xlu1 %v4442_v17, %s3627_s11 }
 0x2c7   : > { %1469 = vrot.lane.b32.xlu1 %v4448_v59, %s3627_s11 }
 0x2cb   : > { %1473 = vrot.lane.b32.xlu1 %v4454_v15, %s3627_s11 }
 0x2cc   : > { %v852_v39 = vpop.permute.xlu1 %851 }
 0x2d0   : > { %v856_v49 = vpop.permute.xlu1 %855 }
 0x2d4   : > { %v860_v30 = vpop.permute.xlu1 %859 }
 0x2d8   : > { %v864_v51 = vpop.permute.xlu1 %863 }
 0x2e2   : > { %v1176_v46 = vpop.permute.xlu0 %1175 }
 0x2e6   : > { %v1196_v4 = vpop.permute.xlu0 %1195 }
 0x2ea   : > { %v4471_v9 = vpop.permute.xlu0 %1305 }
 0x2ee   : > { %v4473_v62 = vpop.permute.xlu0 %1309 }
 0x2ef   : > { %6286 = vst [vmem:[#allocation19_spill] sm:$0xff] %v4473_v62  ;;  %v4618_v62 = vld [vmem:[#allocation2 + $0x8] sm:$0xc0] }
 0x2f1   : > { %v1178_v26 = vpop.permute.xlu1 %1177 }
 0x2f2   : > { %v850_v18 = vpop.permute.xlu0 %849  ;;  %v1199_v41 = vsel %vm6247_vm0, %v1176_v46, %v1178_v26 }
 0x2f3   : > { %v870_v27 = vsel %vm6247_vm0, %v850_v18, %v852_v39  ;;  %v4486_v18 = vld [vmem:[%s3768_s25] sm:$0xff] }
 0x2f4   : > { %882 = vst [vmem:[#allocation3 + $0x2] sm:$0xff] %v870_v27 }
 0x2f6   : > { %v854_v52 = vpop.permute.xlu0 %853 }
 0x2f7   : > { %v871_v31 = vsel %vm6247_vm0, %v854_v52, %v856_v49 }
 0x2f8   : > { %883 = vst [vmem:[#allocation3 + $0xa] sm:$0xff] %v871_v31 }
 0x2fa   : > { %v858_v48 = vpop.permute.xlu0 %857 }
 0x2fb   : > { %v887_v8 = vld [vmem:[#allocation3] sm:$0xff]  ;;  %v872_v19 = vsel %vm6247_vm0, %v858_v48, %v860_v30 }
 0x2fc   : > { %v891_v7 = vld [vmem:[#allocation3 + $0x1] sm:$0xff]  ;;  %884 = vst [vmem:[#allocation3 + $0x12] sm:$0xff] %v872_v19 }
 0x2fd   : > { %1211 = vst [vmem:[#allocation3 - $0x6] sm:$0xc0] %v1199_v41  ;;  %v895_v21 = vmax.f32 %v887_v8, %v891_v7 }
 0x2fe   : > { %v862_v14 = vpop.permute.xlu0 %861 }
 0x2ff   : > { %v903_v0 = vmax.f32 %v895_v21, %v870_v27  ;;  %v888_v45 = vld [vmem:[#allocation3 + $0x8] sm:$0xff]  ;;  %v873_v38 = vsel %vm6247_vm0, %v862_v14, %v864_v51 }
 0x300   : > { %v892_v22 = vld [vmem:[#allocation3 + $0x9] sm:$0xff]  ;;  %885 = vst [vmem:[#allocation3 + $0x1a] sm:$0xff] %v873_v38 }
 0x301   : > { %v907_v13 = vld [vmem:[#allocation3 + $0x3] sm:$0xff]  ;;  %v896_v36 = vmax.f32 %v888_v45, %v892_v22 }
 0x302   : > { %v911_v63 = vmax.f32 %v903_v0, %v907_v13  ;;  %v915_v58 = vld [vmem:[#allocation3 + $0x4] sm:$0xff]  ;;  %v4480_v32 = vpop.permute.xlu0 %1313 }
 0x303   : > { %6287 = vst [vmem:[#allocation20_spill] sm:$0xff] %v4480_v32  ;;  %v904_v60 = vmax.f32 %v896_v36, %v871_v31  ;;  %v889_v53 = vld [vmem:[#allocation3 + $0x10] sm:$0xff] }
 0x304   : > { %v4482_v42 = vmax.f32 %v911_v63, %v915_v58  ;;  %v893_v57 = vld [vmem:[#allocation3 + $0x11] sm:$0xff] }
 0x305   : > { %v908_v39 = vld [vmem:[#allocation3 + $0xb] sm:$0xff]  ;;  %v897_v49 = vmax.f32 %v889_v53, %v893_v57  ;;  %v1198_v30 = vpop.permute.xlu1 %1197  ;;  %v4521_v53 = vld [vmem:[%s3768_s25 + $0x10] sm:$0xff] }
 0x306   : > { %vm923_vm9 = vcmp.gt.f32.partialorder %v4482_v42, 0.0  ;;  %v912_v46 = vmax.f32 %v904_v60, %v908_v39  ;;  %v916_v51 = vld [vmem:[#allocation3 + $0xc] sm:$0xff]  ;;  %v4493_v52 = vpop.permute.xlu0 %1317  ;;  %v1204_v31 = vsel %vm6247_vm0, %v1196_v4, %v1198_v30  ;;  %v6308_v42 = vmov 0 }
 0x307   : > { %v4491_v27 = vsel %vm923_vm9, 0.0, %v4486_v18  ;;  %6288 = vst [vmem:[#allocation21_spill] sm:$0xff] %v4493_v52  ;;  %v905_v48 = vmax.f32 %v897_v49, %v872_v19  ;;  %v890_v8 = vld [vmem:[#allocation3 + $0x18] sm:$0xff]  ;;  %v4502_v4 = vld [vmem:[%s3768_s25 + $0x8] sm:$0xff] }
 0x308   : > { %965 = vrot.lane.b32.xlu1 %v4491_v27, %s3624_s8  ;;  %v4498_v26 = vmax.f32 %v912_v46, %v916_v51  ;;  %v894_v7 = vld [vmem:[#allocation3 + $0x19] sm:$0xff] }
 0x309   : > { %v909_v41 = vld [vmem:[#allocation3 + $0x13] sm:$0xff]  ;;  %v910_v21 = vld [vmem:[#allocation3 + $0x1b] sm:$0xff]  ;;  %v898_v45 = vmax.f32 %v890_v8, %v894_v7  ;;  %v1308_v13 = vpop.permute.xlu1 %1307 }
 0x30a   : > { %v918_v14 = vld [vmem:[#allocation3 + $0x1c] sm:$0xff]  ;;  %vm924_vm10 = vcmp.gt.f32.partialorder %v4498_v26, 0.0  ;;  %v913_v0 = vmax.f32 %v905_v48, %v909_v41  ;;  %v917_v22 = vld [vmem:[#allocation3 + $0x14] sm:$0xff]  ;;  %v4509_v19 = vpop.permute.xlu0 %1321  ;;  %v1329_v8 = vsel %vm6272_vm2, %v4471_v9, %v1308_v13 }
 0x30b   : > { %1216 = vst [vmem:[#allocation3 + $0x22] sm:$0x3] %v1204_v31  ;;  %v4507_v63 = vsel %vm924_vm10, 0.0, %v4502_v4  ;;  %6289 = vst [vmem:[#allocation22_spill] sm:$0xff] %v4509_v19  ;;  %v906_v58 = vmax.f32 %v898_v45, %v873_v38  ;;  %v4536_v51 = vld [vmem:[%s3768_s25 + $0x18] sm:$0xff] }
 0x30c   : > { %1017 = vrot.lane.b32.xlu0 %v4507_v63, %s3625_s26  ;;  %969 = vrot.lane.b32.xlu1 %v4507_v63, %s3624_s8  ;;  %v4515_v36 = vmax.f32 %v913_v0, %v917_v22  ;;  %vm1258_vm14 = vmxor %vm924_vm10, %vm3630_vm13 }
 0x30d   : > { %v4518_v60 = vpop.permute.xlu1 %1327  ;;  %v914_v39 = vmax.f32 %v906_v58, %v910_v21  ;;  %v1347_v21 = vmax.f32 %v4363_v50, %v1329_v8 }
 0x30e   : > { %vm925_vm11 = vcmp.gt.f32.partialorder %v4515_v36, 0.0  ;;  %v1326_v46 = vpop.permute.xlu0 %1325 }
 0x30f   : > { %v4526_v57 = vsel %vm925_vm11, 0.0, %v4521_v53  ;;  %v4530_v49 = vmax.f32 %v914_v39, %v918_v14  ;;  %v1334_v41 = vsel %vm6272_vm2, %v1326_v46, %v4518_v60 }
 0x310   : > { %973 = vrot.lane.b32.xlu1 %v4526_v57, %s3624_s8  ;;  %v1357_v45 = vmax.f32 %v4423_v20, %v1334_v41 }
 0x311   : > { %v4532_v30 = vpop.permute.xlu1 %1369  ;;  %vm926_vm12 = vcmp.gt.f32.partialorder %v4530_v49, 0.0 }
 0x312   : > { %v1360_v38 = vpop.permute.xlu0 %1359  ;;  %v4541_v31 = vsel %vm926_vm12, 0.0, %v4536_v51  ;;  %v1387_v16 = vmax.f32 %v1357_v45, %v4532_v30 }
 0x313   : > { %v1377_v22 = vmax.f32 %v1347_v21, %v1360_v38  ;;  %v4568_v21 = vld [vmem:[#allocation2] sm:$0xc0] }
 0x314   : > { %977 = vrot.lane.b32.xlu1 %v4541_v31, %s3624_s8  ;;  %6294 = vst [vmem:[#allocation27_spill] sm:$0xff] %v4568_v21 }
 0x315   : > { %v1404_v48 = vpop.permute.xlu1 %1403 }
 0x316   : > { %v1402_v7 = vpop.permute.xlu0 %1401 }
 0x317   : > { %v1443_v58 = vmax.f32 %v1377_v22, %v1402_v7  ;;  %v1348_v22 = vmax.f32 %v4415_v28, %v1308_v13 }
 0x318   : > { %1015 = vrot.lane.b32.xlu1 %v4491_v27, %s3625_s26 }
 0x319   : > { %v4552_v14 = vpop.permute.xlu1 %1407 }
 0x31a   : > { %6290 = vst [vmem:[#allocation23_spill] sm:$0xff] %v4552_v14  ;;  %v1422_v0 = vpop.permute.xlu0 %1421 }
 0x31b   : > { %v1453_v50 = vmax.f32 %v1387_v16, %v1422_v0  ;;  %v1425_v16 = vsel %vm6248_vm3, %v1402_v7, %v1404_v48 }
 0x31c   : > { %1019 = vrot.lane.b32.xlu1 %v4526_v57, %s3625_s26 }
 0x31d   : > { %v4557_v9 = vpop.permute.xlu1 %1411 }
 0x31e   : > { %6291 = vst [vmem:[#allocation24_spill] sm:$0xff] %v4557_v9  ;;  %v1456_v39 = vpop.permute.xlu0 %1455 }
 0x31f   : > { %v1497_v19 = vmax.f32 %v1443_v58, %v1456_v39 }
 0x320   : > { %1477 = vrot.lane.b32.xlu1 %v4458_v61, %s3627_s11  ;;  %v1378_v61 = vmax.f32 %v1348_v22, %v1360_v38 }
 0x321   : > { %1521 = vrot.lane.b32.xlu0 %v1497_v19, %s3628_s12  ;;  %v4563_v46 = vpop.permute.xlu1 %1415 }
 0x322   : > { %6292 = vst [vmem:[#allocation25_spill] sm:$0xff] %v4563_v46  ;;  %v1476_v20 = vpop.permute.xlu0 %1475  ;;  %v1444_v19 = vmax.f32 %v1378_v61, %v1425_v16 }
 0x323   : > { %v1507_v8 = vmax.f32 %v1453_v50, %v1476_v20 }
 0x325   : > { %1541 = vrot.lane.b32.xlu0 %v1507_v8, %s3628_s12  ;;  %v4566_v41 = vpop.permute.xlu1 %1419 }
 0x326   : > { %6293 = vst [vmem:[#allocation26_spill] sm:$0xff] %v4566_v41 }
 0x329   : > { %1635 = vrot.lane.b32.xlu0 %v4568_v21, %s3624_s8  ;;  %v1424_v45 = vpop.permute.xlu1 %1423 }
 0x32d   : > { %1639 = vrot.lane.b32.xlu0 %v4407_v2, %s3624_s8  ;;  %v1458_v58 = vpop.permute.xlu1 %1457 }
 0x32e   : > { %v1479_v50 = vsel %vm6246_vm4, %v1456_v39, %v1458_v58 }
 0x32f   : > { %v1498_v8 = vmax.f32 %v1444_v19, %v1479_v50  ;;  %v1358_v19 = vmax.f32 %v4421_v23, %v4518_v60  ;;  %v1430_v50 = vsel %vm6248_vm3, %v1422_v0, %v1424_v45 }
 0x331   : > { %1021 = vrot.lane.b32.xlu0 %v4541_v31, %s3625_s26  ;;  %1523 = vrot.lane.b32.xlu1 %v1498_v8, %s3628_s12  ;;  %v4600_v28 = vpop.permute.xlu1 %1461  ;;  %v1388_v8 = vmax.f32 %v1358_v19, %v4532_v30 }
 0x332   : > { %6295 = vst [vmem:[#allocation28_spill] sm:$0xff] %v4600_v28 }
 0x335   : > { %1059 = vrot.lane.b32.xlu0 %v4491_v27, %s3626_s10  ;;  %v4602_v13 = vpop.permute.xlu1 %1465 }
 0x336   : > { %6296 = vst [vmem:[#allocation29_spill] sm:$0xff] %v4602_v13  ;;  %v1454_v13 = vmax.f32 %v1388_v8, %v1430_v50 }
 0x339   : > { %1063 = vrot.lane.b32.xlu0 %v4507_v63, %s3626_s10  ;;  %v4604_v38 = vpop.permute.xlu1 %1469 }
 0x33a   : > { %6297 = vst [vmem:[#allocation30_spill] sm:$0xff] %v4604_v38 }
 0x33d   : > { %1067 = vrot.lane.b32.xlu0 %v4526_v57, %s3626_s10  ;;  %v4606_v48 = vpop.permute.xlu1 %1473 }
 0x33e   : > { %6298 = vst [vmem:[#allocation31_spill] sm:$0xff] %v4606_v48 }
 0x341   : > { %1071 = vrot.lane.b32.xlu0 %v4541_v31, %s3626_s10 }
 0x345   : > { %1113 = vrot.lane.b32.xlu0 %v4491_v27, %s3627_s11 }
 0x349   : > { %1117 = vrot.lane.b32.xlu0 %v4507_v63, %s3627_s11 }
 0x34d   : > { %1121 = vrot.lane.b32.xlu0 %v4526_v57, %s3627_s11 }
 0x351   : > { %1125 = vrot.lane.b32.xlu0 %v4541_v31, %s3627_s11 }
 0x355   : > { %1643 = vrot.lane.b32.xlu0 %v4407_v2, %s3624_s8 }
 0x359   : > { %1647 = vrot.lane.b32.xlu0 %v4407_v2, %s3624_s8 }
 0x37a   : > { %v966_v7 = vpop.permute.xlu1 %965 }
 0x37e   : > { %v970_v39 = vpop.permute.xlu1 %969  ;;  %v1018_v28 = vpop.permute.xlu0 %1017 }
 0x37f   : > { %v1006_v9 = vmax.f32 %v4507_v63, %v970_v39 }
 0x382   : > { %v974_v22 = vpop.permute.xlu1 %973 }
 0x386   : > { %v4608_v16 = vpop.permute.xlu1 %977 }
 0x38a   : > { %v1016_v61 = vpop.permute.xlu1 %1015 }
 0x38e   : > { %v1020_v58 = vpop.permute.xlu1 %1019 }
 0x392   : > { %v1478_v52 = vpop.permute.xlu1 %1477 }
 0x393   : > { %v1484_v38 = vsel %vm6246_vm4, %v1476_v20, %v1478_v52  ;;  %v4615_v48 = vpop.permute.xlu0 %1521  ;;  %v984_v52 = vsel %vm6272_vm2, %v4260_v40, %v966_v7  ;;  %v986_v40 = vsel %vm6272_vm2, %v4264_v11, %v974_v22  ;;  %v987_v11 = vsel %vm6272_vm2, %v4318_v34, %v4608_v16 }
 0x394   : > { %v1508_v41 = vmax.f32 %v1454_v13, %v1484_v38  ;;  %v1003_v13 = vmax.f32 %v4407_v2, %v984_v52  ;;  %v1004_v38 = vmax.f32 %v4491_v27, %v966_v7  ;;  %v1010_v34 = vmax.f32 %v4541_v31, %v4608_v16 }
 0x396   : > { %1543 = vrot.lane.b32.xlu1 %v1508_v41, %s3628_s12  ;;  %v985_v41 = vsel %vm6272_vm2, %v4262_v10, %v970_v39  ;;  %v1033_v8 = vmax.f32 %v1003_v13, %v1016_v61  ;;  %v1034_v32 = vmax.f32 %v1004_v38, %v1016_v61  ;;  %v1036_v13 = vmax.f32 %v1006_v9, %v1018_v28 }
 0x397   : > { %v4620_v46 = vpop.permute.xlu0 %1541  ;;  %v1005_v50 = vmax.f32 %v4407_v2, %v985_v41  ;;  %v1008_v61 = vmax.f32 %v4526_v57, %v974_v22  ;;  %v1009_v22 = vmax.f32 %v4407_v2, %v987_v11 }
 0x39a   : > { %1637 = vrot.lane.b32.xlu1 %v4618_v62, %s3624_s8 }
 0x39b   : > { %v4624_v23 = vpop.permute.xlu0 %1635 }
 0x39c   : > { %6299 = vst [vmem:[#allocation32_spill] sm:$0xff] %v4624_v23  ;;  %v1035_v23 = vmax.f32 %v1005_v50, %v1018_v28 }
 0x39f   : > { %v4626_v60 = vpop.permute.xlu0 %1639 }
 0x3a0   : > { %6300 = vst [vmem:[#allocation33_spill] sm:$0xff] %v4626_v60 }
 0x3a3   : > { %v1022_v30 = vpop.permute.xlu0 %1021 }
 0x3a4   : > { %v1040_v38 = vmax.f32 %v1010_v34, %v1022_v30 }
 0x3a7   : > { %v1060_v0 = vpop.permute.xlu0 %1059 }
 0x3a8   : > { %v1080_v60 = vsel %vm6248_vm3, %v1060_v0, %v4345_v56  ;;  %v1099_v14 = vmax.f32 %v1033_v8, %v1060_v0  ;;  %v1007_v56 = vmax.f32 %v4407_v2, %v986_v40 }
 0x3a9   : > { %v1100_v21 = vmax.f32 %v1034_v32, %v1080_v60 }
 0x3ab   : > { %v1064_v45 = vpop.permute.xlu0 %1063 }
 0x3ac   : > { %v1081_v7 = vsel %vm6248_vm3, %v1064_v45, %v4349_v43  ;;  %v1101_v39 = vmax.f32 %v1035_v23, %v1064_v45  ;;  %v1037_v43 = vmax.f32 %v1007_v56, %v1020_v58  ;;  %v1039_v45 = vmax.f32 %v1009_v22, %v1022_v30 }
 0x3ad   : > { %v1102_v32 = vmax.f32 %v1036_v13, %v1081_v7  ;;  %v1987_v30 = vmax.f32 %v4521_v53, %v4536_v51  ;;  %v1524_v13 = vpop.permute.xlu1 %1523 }
 0x3af   : > { %v1068_v20 = vpop.permute.xlu0 %1067 }
 0x3b0   : > { %v1103_v23 = vmax.f32 %v1037_v43, %v1068_v20 }
 0x3b3   : > { %v1072_v19 = vpop.permute.xlu0 %1071 }
 0x3b7   : > { %v1114_v10 = vpop.permute.xlu0 %1113 }
 0x3b8   : > { %v1134_v52 = vsel %vm6246_vm4, %v1114_v10, %v4385_v25  ;;  %v1153_v41 = vmax.f32 %v1099_v14, %v1114_v10  ;;  %v1082_v25 = vsel %vm6248_vm3, %v1068_v20, %v4352_v29  ;;  %v1083_v29 = vsel %vm6248_vm3, %v1072_v19, %v4360_v54  ;;  %v4672_v54 = vld [vmem:[#allocation2 + $0x78] sm:$0x3] }
 0x3b9   : > { %v1154_v35 = vmax.f32 %v1100_v21, %v1134_v52  ;;  %v1038_v21 = vmax.f32 %v1008_v61, %v1020_v58  ;;  %v1105_v20 = vmax.f32 %v1039_v45, %v1072_v19  ;;  %v1106_v8 = vmax.f32 %v1040_v38, %v1083_v29  ;;  %v1719_v19 = vld [vmem:[#allocation2 + $0x10] sm:$0xc0] }
 0x3ba   : > { %1179 = vrot.lane.b32.xlu0 %v1153_v41, %s3628_s12  ;;  %v1724_v41 = vld [vmem:[#allocation2 + $0x88] sm:$0x3] }
 0x3bb   : > { %v1118_v60 = vpop.permute.xlu0 %1117  ;;  %1181 = vrot.lane.b32.xlu1 %v1154_v35, %s3628_s12  ;;  %v1104_v0 = vmax.f32 %v1038_v21, %v1082_v25 }
 0x3bc   : > { %v1135_v14 = vsel %vm6246_vm4, %v1118_v60, %v4391_v47  ;;  %v1155_v9 = vmax.f32 %v1101_v39, %v1118_v60 }
 0x3bd   : > { %v1156_v28 = vmax.f32 %v1102_v32, %v1135_v14  ;;  %v1545_v14 = vsel %vm6247_vm0, %v4615_v48, %v1524_v13 }
 0x3be   : > { %1183 = vrot.lane.b32.xlu0 %v1155_v9, %s3628_s12 }
 0x3bf   : > { %v1122_v35 = vpop.permute.xlu0 %1121  ;;  %1185 = vrot.lane.b32.xlu1 %v1156_v28, %s3628_s12 }
 0x3c0   : > { %v1136_v47 = vsel %vm6246_vm4, %v1122_v35, %v4396_v55  ;;  %v1157_v58 = vmax.f32 %v1103_v23, %v1122_v35  ;;  %v4676_v55 = vld [vmem:[#allocation2 + $0x80] sm:$0x3] }
 0x3c1   : > { %v1158_v50 = vmax.f32 %v1104_v0, %v1136_v47 }
 0x3c2   : > { %1187 = vrot.lane.b32.xlu0 %v1157_v58, %s3628_s12 }
 0x3c3   : > { %v1126_v40 = vpop.permute.xlu0 %1125  ;;  %1189 = vrot.lane.b32.xlu1 %v1158_v50, %s3628_s12 }
 0x3c4   : > { %v1137_v16 = vsel %vm6246_vm4, %v1126_v40, %v4402_v12  ;;  %v1159_v10 = vmax.f32 %v1105_v20, %v1126_v40  ;;  %v1986_v12 = vmax.f32 %v4486_v18, %v4502_v4 }
 0x3c5   : > { %v1160_v7 = vmax.f32 %v1106_v8, %v1137_v16 }
 0x3c6   : > { %1191 = vrot.lane.b32.xlu0 %v1159_v10, %s3628_s12  ;;  %v1988_v52 = vmax.f32 %v1986_v12, %v1987_v30 }
 0x3c7   : > { %1193 = vrot.lane.b32.xlu1 %v1160_v7, %s3628_s12  ;;  %v4716_v56 = vpop.permute.xlu0 %1643 }
 0x3c8   : > { %6301 = vst [vmem:[#allocation34_spill] sm:$0xff] %v4716_v56  ;;  %v6360_v56 = vld [vmem:[#allocation26_spill] sm:$0xff] }
 0x3cb   : > { %1651 = vrot.lane.b32.xlu1 %v4407_v2, %s3624_s8  ;;  %v4718_v61 = vpop.permute.xlu0 %1647 }
 0x3cc   : > { %6302 = vst [vmem:[#allocation35_spill] sm:$0xff] %v4718_v61  ;;  %v6362_v61 = vld [vmem:[#allocation21_spill] sm:$0xff] }
 0x3cf   : > { %1655 = vrot.lane.b32.xlu1 %v4672_v54, %s3624_s8 }
 0x3d3   : > { %1657 = vrot.lane.b32.xlu1 %v4676_v55, %s3624_s8 }
 0x3d7   : > { %1689 = vrot.lane.b32.xlu1 %v4618_v62, %s3625_s26 }
 0x3db   : > { %1699 = vrot.lane.b32.xlu1 %v4676_v55, %s3625_s26 }
 0x3df   : > { %1731 = vrot.lane.b32.xlu1 %v4618_v62, %s3626_s10 }
 0x3e3   : > { %1733 = vrot.lane.b32.xlu1 %v1719_v19, %s3626_s10 }
 0x3e5   : > { %1989 = vmax.xlane.f32.xlu0 %v1988_v52 }
 0x3e7   : > { %1737 = vrot.lane.b32.xlu1 %v4436_v33, %s3626_s10 }
 0x3eb   : > { %1751 = vrot.lane.b32.xlu1 %v4676_v55, %s3626_s10 }
 0x3ef   : > { %1785 = vrot.lane.b32.xlu1 %v4618_v62, %s3627_s11 }
 0x3f3   : > { %1805 = vrot.lane.b32.xlu1 %v4676_v55, %s3627_s11 }
 0x3fb   : > { %1741 = vrot.lane.b32.xlu0 %v4442_v17, %s3626_s10 }
 0x3ff   : > { %1745 = vrot.lane.b32.xlu0 %v4448_v59, %s3626_s10 }
 0x403   : > { %1749 = vrot.lane.b32.xlu0 %v4454_v15, %s3626_s10 }
 0x407   : > { %1753 = vrot.lane.b32.xlu0 %v1724_v41, %s3626_s10 }
 0x408   : > { %v1544_v39 = vpop.permute.xlu1 %1543 }
 0x409   : > { %v1550_v13 = vsel %vm6247_vm0, %v4620_v46, %v1544_v39  ;;  %v6307_v46 = vmov 0.0  }
 0x40b   : > { %1787 = vrot.lane.b32.xlu0 %v1719_v19, %s3627_s11 }
 0x40c   : > { %v4720_v11 = vpop.permute.xlu1 %1637 }
 0x40f   : > { %1791 = vrot.lane.b32.xlu0 %v4436_v33, %s3627_s11 }
 0x413   : > { %1795 = vrot.lane.b32.xlu0 %v4442_v17, %s3627_s11 }
 0x417   : > { %1799 = vrot.lane.b32.xlu0 %v4448_v59, %s3627_s11 }
 0x41b   : > { %1803 = vrot.lane.b32.xlu0 %v4454_v15, %s3627_s11 }
 0x41f   : > { %1807 = vrot.lane.b32.xlu0 %v1724_v41, %s3627_s11 }
 0x42c   : > { %v1180_v33 = vpop.permute.xlu0 %1179 }
 0x42d   : > { %v1182_v32 = vpop.permute.xlu1 %1181 }
 0x42e   : > { %v1200_v17 = vsel %vm6247_vm0, %v1180_v33, %v1182_v32 }
 0x42f   : > { %1212 = vst [vmem:[#allocation3 + $0x2] sm:$0xff] %v1200_v17 }
 0x430   : > { %v1184_v60 = vpop.permute.xlu0 %1183 }
 0x431   : > { %v1186_v59 = vpop.permute.xlu1 %1185 }
 0x432   : > { %v1201_v43 = vsel %vm6247_vm0, %v1184_v60, %v1186_v59 }
 0x433   : > { %1213 = vst [vmem:[#allocation3 + $0xa] sm:$0xff] %v1201_v43 }
 0x434   : > { %v1188_v15 = vpop.permute.xlu0 %1187 }
 0x435   : > { %v1190_v25 = vpop.permute.xlu1 %1189 }
 0x436   : > { %v1202_v9 = vsel %vm6247_vm0, %v1188_v15, %v1190_v25  ;;  %v1217_v21 = vld [vmem:[#allocation3] sm:$0xff] }
 0x437   : > { %v1221_v28 = vld [vmem:[#allocation3 + $0x1] sm:$0xff]  ;;  %1214 = vst [vmem:[#allocation3 + $0x12] sm:$0xff] %v1202_v9 }
 0x438   : > { %1557 = vst [vmem:[#allocation3 - $0x6] sm:$0xc0] %v1545_v14  ;;  %v1192_v22 = vpop.permute.xlu0 %1191  ;;  %v1225_v23 = vmax.f32 %v1217_v21, %v1221_v28  ;;  %v6318_v28 = vld [vmem:[#allocation32_spill] sm:$0xff] }
 0x439   : > { %v1194_v34 = vpop.permute.xlu1 %1193  ;;  %v1659_v36 = vsel %vm6272_vm2, %v6318_v28, %v4720_v11 }
 0x43a   : > { %v1203_v0 = vsel %vm6247_vm0, %v1192_v22, %v1194_v34  ;;  %v1218_v35 = vld [vmem:[#allocation3 + $0x8] sm:$0xff]  ;;  %v1233_v47 = vmax.f32 %v1225_v23, %v1200_v17  ;;  %v6320_v34 = vld [vmem:[#allocation27_spill] sm:$0xff] }
 0x43b   : > { %v1222_v45 = vld [vmem:[#allocation3 + $0x9] sm:$0xff]  ;;  %1215 = vst [vmem:[#allocation3 + $0x1a] sm:$0xff] %v1203_v0  ;;  %v1677_v5 = vmax.f32 %v6320_v34, %v1659_v36 }
 0x43c   : > { %v1226_v29 = vmax.f32 %v1218_v35, %v1222_v45  ;;  %v1237_v48 = vld [vmem:[#allocation3 + $0x3] sm:$0xff] }
 0x43d   : > { %v4728_v58 = vpop.permute.xlu1 %1651  ;;  %v1241_v10 = vmax.f32 %v1233_v47, %v1237_v48  ;;  %v1245_v17 = vld [vmem:[#allocation3 + $0x4] sm:$0xff] }
 0x43e   : > { %6303 = vst [vmem:[#allocation36_spill] sm:$0xff] %v4728_v58  ;;  %v1234_v38 = vmax.f32 %v1226_v29, %v1201_v43  ;;  %v1238_v50 = vld [vmem:[#allocation3 + $0xb] sm:$0xff]  ;;  %v6304_v43 = vmov 0 }
 0x43f   : > { %v1219_v20 = vld [vmem:[#allocation3 + $0x10] sm:$0xff]  ;;  %v1249_v60 = vmax.f32 %v1241_v10, %v1245_v17 }
 0x440   : > { %v1242_v8 = vmax.f32 %v1234_v38, %v1238_v50  ;;  %v1223_v40 = vld [vmem:[#allocation3 + $0x11] sm:$0xff] }
 0x441   : > { %v1246_v16 = vld [vmem:[#allocation3 + $0xc] sm:$0xff]  ;;  %v4730_v7 = vpop.permute.xlu1 %1655  ;;  %v1227_v30 = vmax.f32 %v1219_v20, %v1223_v40  ;;  %vm1253_vm10 = vcmp.eq.f32.partialorder %v4491_v27, %v1249_v60 }
 0x442   : > { %v1250_v12 = vmax.f32 %v1242_v8, %v1246_v16  ;;  %v1220_v19 = vld [vmem:[#allocation3 + $0x18] sm:$0xff] }
 0x443   : > { %v1224_v52 = vld [vmem:[#allocation3 + $0x19] sm:$0xff]  ;;  %v1235_v15 = vmax.f32 %v1227_v30, %v1202_v9 }
 0x444   : > { %v1240_v41 = vld [vmem:[#allocation3 + $0x1b] sm:$0xff]  ;;  %vm1254_vm15 = vcmp.eq.f32.partialorder %v4507_v63, %v1250_v12  ;;  %v1228_v33 = vmax.f32 %v1220_v19, %v1224_v52  ;;  %v1239_v39 = vld [vmem:[#allocation3 + $0x13] sm:$0xff] }
 0x445   : > { %v1248_v32 = vld [vmem:[#allocation3 + $0x1c] sm:$0xff]  ;;  %vm1262_vm1 = vmand %vm1254_vm15, %vm1258_vm14  ;;  %v4738_v59 = vpop.permute.xlu1 %1657  ;;  %v1243_v14 = vmax.f32 %v1235_v15, %v1239_v39  ;;  %v1247_v9 = vld [vmem:[#allocation3 + $0x14] sm:$0xff] }
 0x446   : > { %1562 = vst [vmem:[#allocation3 + $0x22] sm:$0x3] %v1550_v13  ;;  %vm4743_vm4 = vmor %vm590_vm5, %vm1262_vm1  ;;  %v1236_v26 = vmax.f32 %v1228_v33, %v1203_v0  ;;  %v1664_v40 = vsel %vm6272_vm2, %v4730_v7, %v4738_v59  ;;  %v1678_v7 = vmax.f32 %v4618_v62, %v4720_v11  ;;  %v1688_v11 = vmax.f32 %v4676_v55, %v4738_v59 }
 0x447   : > { %v6305_v43 = vsel %vm4743_vm4, 4294967295, %v6304_v43  ;;  %v4750_v63 = vsel %vm4743_vm4, 1.0, %v6307_v46  ;;  %vm1257_vm1 = vmxor %vm923_vm9, %vm3630_vm13  ;;  %v1251_v27 = vmax.f32 %v1243_v14, %v1247_v9  ;;  %v1687_v30 = vmax.f32 %v4672_v54, %v1664_v40 }
 0x448   : > { %6306 = vst [vmem:[#allocation37_spill] sm:$0xff] %v6305_v43  ;;  %1363 = vrot.lane.b32.xlu0 %v4750_v63, %s3625_s26  ;;  %v1244_v25 = vmax.f32 %v1236_v26, %v1240_v41  ;;  %vm1260_vm5 = vmxor %vm926_vm12, %vm3630_vm13 }
 0x449   : > { %v4758_v3 = vpop.permute.xlu1 %1689  ;;  %vm1261_vm15 = vmand %vm1253_vm10, %vm1257_vm1 }
 0x44a   : > { %v1252_v44 = vmax.f32 %v1244_v25, %v1248_v32  ;;  %vm4783_vm9 = vmor %vm589_vm7, %vm1261_vm15  ;;  %v1707_v35 = vmax.f32 %v1677_v5, %v4758_v3  ;;  %v1708_v60 = vmax.f32 %v1678_v7, %v4758_v3 }
 0x44b   : > { %v4791_v37 = vsel %vm4783_vm9, 1.0, %v6307_v46 }
 0x44c   : > { %vm1256_vm14 = vcmp.eq.f32.partialorder %v4541_v31, %v1252_v44  ;;  %v6311_v31 = vmov 0 }
 0x44d   : > { %vm1264_vm0 = vmand %vm1256_vm14, %vm1260_vm5  ;;  %v4764_v21 = vpop.permute.xlu1 %1699  ;;  %v6312_v31 = vsel %vm4783_vm9, 4294967295, %v6311_v31  ;;  %vm6332_vm5 = vcmask 15360   ;;  %vm6333_vm14 = vcmask 9216  }
 0x44e   : > { %vm4769_vm3 = vmor %vm592_vm6, %vm1264_vm0  ;;  %6313 = vst [vmem:[#allocation39_spill] sm:$0xff] %v6312_v31  ;;  %vm1255_vm0 = vcmp.eq.f32.partialorder %v4526_v57, %v1251_v27  ;;  %v6315_v57 = vmov 0  ;;  %v1717_v52 = vmax.f32 %v1687_v30, %v4764_v21  ;;  %v1718_v9 = vmax.f32 %v1688_v11, %v4764_v21 }
 0x44f   : > { %v6309_v42 = vsel %vm4769_vm3, 4294967295, %v6308_v42  ;;  %v4776_v49 = vsel %vm4769_vm3, 1.0, %v6307_v46  ;;  %vm1259_vm6 = vmxor %vm925_vm11, %vm3630_vm13  ;;  %vm6325_vm11 = vcmask 1014784  }
 0x450   : > { %6310 = vst [vmem:[#allocation38_spill] sm:$0xff] %v6309_v42  ;;  %1367 = vrot.lane.b32.xlu0 %v4776_v49, %s3625_s26  ;;  %vm1263_vm12 = vmand %vm1255_vm0, %vm1259_vm6 }
 0x451   : > { %v1732_v6 = vpop.permute.xlu1 %1731  ;;  %vm4803_vm7 = vmor %vm591_vm8, %vm1263_vm12  ;;  %vm6324_vm8 = vcmask 1022976  }
 0x452   : > { %v6316_v57 = vsel %vm4803_vm7, 4294967295, %v6315_v57  ;;  %v4815_v23 = vsel %vm4803_vm7, 1.0, %v6307_v46  ;;  %v1773_v45 = vmax.f32 %v1707_v35, %v1732_v6  ;;  %vm6330_vm10 = vmmov %vm6324_vm8 }
 0x453   : > { %6317 = vst [vmem:[#allocation18_spill] sm:$0xff] %v6316_v57  ;;  %vm6331_vm1 = vmmov %vm6325_vm11 }
 0x454   : > { %1405 = vrot.lane.b32.xlu0 %v4791_v37, %s3626_s10  ;;  %vm6334_vm15 = vmmov %vm6332_vm5 }
 0x455   : > { %v1734_v1 = vpop.permute.xlu1 %1733  ;;  %vm6335_vm0 = vmmov %vm6332_vm5 }
 0x456   : > { %v1755_v54 = vsel %vm6324_vm8, %v1732_v6, %v1734_v1  ;;  %vm6336_vm6 = vmmov %vm6335_vm0  ;;  %vm2355_vm8 = vcmask 1046528  }
 0x457   : > { %v1774_v26 = vmax.f32 %v1708_v60, %v1755_v54  ;;  %vm6337_vm12 = vmmov %vm6335_vm0 }
 0x458   : > { %1409 = vrot.lane.b32.xlu0 %v4750_v63, %s3626_s10 }
 0x459   : > { %v4810_v22 = vpop.permute.xlu1 %1737 }
 0x45a   : > { %6319 = vst [vmem:[#allocation32_spill] sm:$0xff] %v4810_v22 }
 0x45c   : > { %1413 = vrot.lane.b32.xlu0 %v4815_v23, %s3626_s10 }
 0x45d   : > { %v1752_v0 = vpop.permute.xlu1 %1751 }
 0x45e   : > { %v1783_v33 = vmax.f32 %v1717_v52, %v1752_v0 }
 0x460   : > { %1417 = vrot.lane.b32.xlu0 %v4776_v49, %s3626_s10 }
 0x461   : > { %v1786_v29 = vpop.permute.xlu1 %1785 }
 0x462   : > { %v1827_v47 = vmax.f32 %v1773_v45, %v1786_v29 }
 0x464   : > { %1459 = vrot.lane.b32.xlu0 %v4791_v37, %s3627_s11  ;;  %1851 = vrot.lane.b32.xlu1 %v1827_v47, %s3628_s12 }
 0x465   : > { %v1806_v13 = vpop.permute.xlu1 %1805 }
 0x466   : > { %v1837_v32 = vmax.f32 %v1783_v33, %v1806_v13 }
 0x468   : > { %1463 = vrot.lane.b32.xlu0 %v4750_v63, %s3627_s11  ;;  %1311 = vrot.lane.b32.xlu1 %v4791_v37, %s3624_s8 }
 0x46c   : > { %1467 = vrot.lane.b32.xlu0 %v4815_v23, %s3627_s11  ;;  %1315 = vrot.lane.b32.xlu1 %v4750_v63, %s3624_s8 }
 0x46e   : > { %v1990_v38 = vpop.xlane.xlu0 %1989 }
 0x46f   : > { %v1991_v48 = vrot.slane %v1990_v38, 4 }
 0x470   : > { %1471 = vrot.lane.b32.xlu0 %v4776_v49, %s3627_s11  ;;  %1319 = vrot.lane.b32.xlu1 %v4815_v23, %s3624_s8 }
 0x471   : > { %v1992_v50 = vmax.f32 %v1990_v38, %v1991_v48 }
 0x472   : > { %v4838_v20 = vpop.permute.xlu0 %1741 }
 0x473   : > { %6321 = vst [vmem:[#allocation27_spill] sm:$0xff] %v4838_v20  ;;  %v1993_v8 = vrot.slane %v1992_v50, 2 }
 0x474   : > { %1323 = vrot.lane.b32.xlu1 %v4776_v49, %s3624_s8 }
 0x475   : > { %v1994_v16 = vmax.f32 %v1992_v50, %v1993_v8 }
 0x476   : > { %v4845_v10 = vpop.permute.xlu0 %1745 }
 0x477   : > { %6322 = vst [vmem:[#allocation40_spill] sm:$0xff] %v4845_v10  ;;  %v1995_v12 = vrot.slane %v1994_v16, 1 }
 0x478   : > { %1361 = vrot.lane.b32.xlu1 %v4791_v37, %s3625_s26 }
 0x479   : > { %v1996_v19 = vmax.f32 %v1994_v16, %v1995_v12 }
 0x47a   : > { %v4851_v41 = vpop.permute.xlu0 %1749 }
 0x47b   : > { %6323 = vst [vmem:[#allocation41_spill] sm:$0xff] %v4851_v41  ;;  %3333 = vpush %v1996_v19  ;;  %v6352_v41 = vld [vmem:[#allocation25_spill] sm:$0xff] }
 0x47c   : > { %1365 = vrot.lane.b32.xlu1 %v4815_v23, %s3625_s26 }
 0x47e   : > { %v1754_v17 = vpop.permute.xlu0 %1753 }
 0x47f   : > { %v1760_v3 = vsel %vm6330_vm10, %v1752_v0, %v1754_v17  ;;  %vm2483_vm10 = vcmask 1044480  }
 0x480   : > { %1871 = vrot.lane.b32.xlu1 %v1837_v32, %s3628_s12  ;;  %v1784_v27 = vmax.f32 %v1718_v9, %v1760_v3 }
 0x482   : > { %v1788_v15 = vpop.permute.xlu0 %1787 }
 0x483   : > { %v1809_v46 = vsel %vm6325_vm11, %v1786_v29, %v1788_v15  ;;  %vm2419_vm11 = vcmask 1045504  }
 0x484   : > { %v1828_v39 = vmax.f32 %v1774_v26, %v1809_v46 }
 0x486   : > { %v4861_v25 = vpop.permute.xlu0 %1791  ;;  %1853 = vrot.lane.b32.xlu0 %v1828_v39, %s3628_s12 }
 0x487   : > { %6326 = vst [vmem:[#allocation42_spill] sm:$0xff] %v4861_v25 }
 0x48a   : > { %v4864_v44 = vpop.permute.xlu0 %1795 }
 0x48b   : > { %6327 = vst [vmem:[#allocation43_spill] sm:$0xff] %v4864_v44 }
 0x48e   : > { %v4866_v62 = vpop.permute.xlu0 %1799 }
 0x48f   : > { %6328 = vst [vmem:[#allocation44_spill] sm:$0xff] %v4866_v62 }
 0x492   : > { %v4870_v14 = vpop.permute.xlu0 %1803 }
 0x493   : > { %6329 = vst [vmem:[#allocation45_spill] sm:$0xff] %v4870_v14 }
 0x496   : > { %v1808_v6 = vpop.permute.xlu0 %1807 }
 0x497   : > { %v1814_v1 = vsel %vm6331_vm1, %v1806_v13, %v1808_v6  ;;  %vm6344_vm1 = vcmask 1022976  }
 0x498   : > { %v1838_v24 = vmax.f32 %v1784_v27, %v1814_v1 }
 0x49a   : > { %1873 = vrot.lane.b32.xlu0 %v1838_v24, %s3628_s12 }
 0x4ac   : > { %s3334_s30 = spop %3333 }
 0x4ad   : > { %v1998_v28 = vstv %s3334_s30 }
 0x4ae   : > { %v1999_v36 = vsub.f32 0.0, %v1998_v28  ;;  %v2017_v34 = vsub.f32 %v4486_v18, %v1998_v28  ;;  %v2018_v55 = vsub.f32 %v4502_v4, %v1998_v28  ;;  %v2019_v59 = vsub.f32 %v4521_v53, %v1998_v28 }
 0x4af   : > { %v2020_v5 = vsub.f32 %v4536_v51, %v1998_v28 }
 0x4b0   : > { %v2000_v0 = vmul.f32 10.0, %v1999_v36  ;;  %v2021_v21 = vmul.f32 10.0, %v2017_v34  ;;  %v2022_v35 = vmul.f32 10.0, %v2018_v55  ;;  %v2023_v45 = vmul.f32 10.0, %v2019_v59 }
 0x4b1   : > { %v2024_v29 = vmul.f32 10.0, %v2020_v5 }
 0x4b2   : > { %v2001_v47 = vmul.f32 1.442695, %v2000_v0  ;;  %v2025_v38 = vmul.f32 1.442695, %v2021_v21  ;;  %v2027_v48 = vmul.f32 1.442695, %v2022_v35 }
 0x4b3   : > { %v2029_v50 = vmul.f32 1.442695, %v2023_v45  ;;  %v2031_v8 = vmul.f32 1.442695, %v2024_v29 }
 0x4b4   : > { %3408 = vpow2.f32 %v2001_v47 }
 0x4b5   : > { %3410 = vpow2.f32 %v2025_v38 }
 0x4b6   : > { %3412 = vpow2.f32 %v2027_v48 }
 0x4b7   : > { %3414 = vpow2.f32 %v2029_v50 }
 0x4b8   : > { %3416 = vpow2.f32 %v2031_v8 }
 0x4ba   : > { %v4880_v18 = vpop.permute.xlu0 %1363 }
 0x4c1   : > { %v4882_v4 = vpop.eup %3408 }
 0x4c2   : > { %v4884_v53 = vpop.eup %3410  ;;  %2003 = vst [vmem:[#allocation2] sm:$0xff] %v4882_v4  ;;  %2004 = vst [vmem:[#allocation2 + $0x8] sm:$0xff] %v4882_v4  ;;  %v4906_v40 = vpop.permute.xlu0 %1367  ;;  %v4980_v5 = vrot.slane %v4882_v4, 1  ;;  %v4997_v48 = vrot.slane %v4882_v4, 2 }
 0x4c3   : > { %2005 = vst.msk [vmem:[#allocation2 + $0x10] sm:$0xff] %vm6332_vm5, %v4882_v4  ;;  %2006 = vst [vmem:[#allocation2 + $0x78] sm:$0x3] %v4882_v4  ;;  %v4904_v51 = vpop.eup %3412  ;;  %v6252_v16 = vrot.slane %v4884_v53, 1  ;;  %v6250_v52 = vrot.slane %v4884_v53, 2 }
 0x4c4   : > { %2007 = vst [vmem:[#allocation2 + $0x80] sm:$0x3] %v4882_v4  ;;  %2008 = vst.msk [vmem:[#allocation2 + $0x88] sm:$0x3] %vm6333_vm14, %v4882_v4  ;;  %v4910_v12 = vpop.eup %3414  ;;  %v2367_v19 = vrot.slane %v4904_v51, 1  ;;  %v2425_v13 = vrot.slane %v4904_v51, 2  ;;  %v2401_v8 = vadd.f32 %v4882_v4, %v4980_v5 }
 0x4c5   : > { %2009 = vst [vmem:[#allocation2 + $0x18] sm:$0xff] %v4882_v4  ;;  %2012 = vst [vmem:[#allocation2 + $0x60] sm:$0xff] %v4882_v4  ;;  %v4913_v30 = vpop.eup %3416  ;;  %v6249_v33 = vrot.slane %v4910_v12, 1  ;;  %v6254_v7 = vrot.slane %v4910_v12, 2  ;;  %v6251_v54 = vrot.slane %v4904_v51, 3  ;;  %v6253_v26 = vrot.slane %v4910_v12, 3 }
 0x4c6   : > { %2013 = vst.msk [vmem:[#allocation2 + $0x28] sm:$0xff] %vm6334_vm15, %v4882_v4  ;;  %2033 = vst [vmem:[#allocation2 + $0x20] sm:$0xff] %v4884_v53  ;;  %v2368_v32 = vsel %vm2355_vm8, %v6252_v16, %v2367_v19  ;;  %v4935_v39 = vpop.permute.xlu0 %1405  ;;  %v2426_v11 = vsel %vm2419_vm11, %v6250_v52, %v2425_v13  ;;  %v6343_v52 = vld [vmem:[#allocation23_spill] sm:$0xff]  ;;  %v6346_v57 = vrot.slane %v4913_v30, 2  ;;  %v6347_v43 = vrot.slane %v4910_v12, 2 }
 0x4c7   : > { %2014 = vst.msk [vmem:[#allocation2 + $0x40] sm:$0xff] %vm6335_vm0, %v4882_v4  ;;  %2034 = vst [vmem:[#allocation2 + $0x38] sm:$0xff] %v4904_v51  ;;  %v2402_v17 = vadd.f32 %v4884_v53, %v2368_v32  ;;  %v2374_v60 = vsel %vm2355_vm8, %v2367_v19, %v6249_v33  ;;  %v2432_v27 = vsel %vm2419_vm11, %v2425_v13, %v6254_v7  ;;  %vm2553_vm0 = vcmask 1043456  }
 0x4c8   : > { %2015 = vst.msk [vmem:[#allocation2 + $0x58] sm:$0xff] %vm6336_vm6, %v4882_v4  ;;  %2035 = vst [vmem:[#allocation2 + $0x50] sm:$0xff] %v4910_v12  ;;  %v2405_v3 = vadd.f32 %v4904_v51, %v2374_v60  ;;  %v2496_v1 = vsel %vm2483_vm10, %v6251_v54, %v6253_v26  ;;  %v5012_v60 = vrot.slane %v4882_v4, 4  ;;  %v5026_v54 = vsel %vm6344_vm1, %v4935_v39, %v6343_v52 }
 0x4c9   : > { %2016 = vst.msk [vmem:[#allocation2 + $0x70] sm:$0xff] %vm6337_vm12, %v4882_v4  ;;  %2036 = vst [vmem:[#allocation2 + $0x68] sm:$0xff] %v4913_v30  ;;  %v4931_v15 = vld [vmem:[#allocation2] sm:$0xc0]  ;;  %v4933_v46 = vld [vmem:[#allocation2 + $0x8] sm:$0xc0]  ;;  %v4945_v9 = vadd.f32 %v2426_v11, %v2402_v17  ;;  %v5035_v26 = vadd.f32 %v4997_v48, %v2401_v8  ;;  %v5050_v8 = vsel %vm2419_vm11, %v6347_v43, %v6346_v57 }
 0x4ca   : > { %6338 = vst [vmem:[#allocation46_spill] sm:$0xff] %v4931_v15  ;;  %6339 = vst [vmem:[#allocation47_spill] sm:$0xff] %v4933_v46  ;;  %2061 = vrot.lane.b32.xlu1 %v4931_v15, %s3624_s8  ;;  %2063 = vrot.lane.b32.xlu0 %v4933_v46, %s3624_s8  ;;  %v2463_v6 = vadd.f32 %v2432_v27, %v2405_v3  ;;  %v4963_v36 = vpop.permute.xlu0 %1409  ;;  %v4971_v55 = vld [vmem:[#allocation2 + $0x10] sm:$0xc0]  ;;  %v2334_v35 = vld [vmem:[#allocation2] sm:$0x80] }
 0x4cb   : > { %v4955_v24 = vld [vmem:[#allocation2 + $0x80] sm:$0x3]  ;;  %v4992_v29 = vld [vmem:[#allocation2 + $0x78] sm:$0x3]  ;;  %v2356_v38 = vrot.slane %v2334_v35, 1  ;;  %v5009_v17 = vrot.slane %v4882_v4, 3  ;;  %vm6349_vm5 = vmmov %vm6344_vm1 }
 0x4cc   : > { %v4957_v28 = vadd.f32 %v2496_v1, %v2463_v6  ;;  %6341 = vst [vmem:[#allocation49_spill] sm:$0xff] %v4992_v29  ;;  %v2336_v19 = vld [vmem:[#allocation2 + $0x10] sm:$0x80]  ;;  %v5005_v13 = vld [vmem:[#allocation2 + $0x18] sm:$0xfe]  ;;  %v6345_v3 = vld [vmem:[#allocation20_spill] sm:$0xff] }
 0x4cd   : > { %v4982_v0 = vld [vmem:[#allocation2 + $0x28] sm:$0xff]  ;;  %6342 = vst [vmem:[#allocation50_spill] sm:$0xff] %v5009_v17  ;;  %v2358_v1 = vsel %vm2355_vm8, %v2356_v38, %v4980_v5  ;;  %v2362_v35 = vrot.slane %v2336_v19, 1  ;;  %v5038_v19 = vld [vmem:[#allocation2 + $0x18] sm:$0xfc]  ;;  %vm6353_vm14 = vmmov %vm6344_vm1  ;;  %vm6364_vm6 = vcmask 1014784  }
 0x4ce   : > { %2065 = vrot.lane.b32.xlu1 %v4882_v4, %s3624_s8  ;;  %2083 = vrot.lane.b32.xlu0 %v4955_v24, %s3624_s8  ;;  %v4969_v34 = vpop.permute.xlu0 %1413  ;;  %v4994_v47 = vld [vmem:[#allocation2 + $0x40] sm:$0xff]  ;;  %v2363_v11 = vrot.slane %v4982_v0, 1  ;;  %v6348_v38 = vld [vmem:[#allocation24_spill] sm:$0xff]  ;;  %v2321_v10 = vld [vmem:[#allocation2 + $0x10] sm:$0xc0]  ;;  %v6359_v20 = vrot.slane %v4982_v0, 2 }
 0x4cf   : > { %v5018_v6 = vld [vmem:[#allocation2 + $0x58] sm:$0xff]  ;;  %v2319_v7 = vld [vmem:[#allocation2] sm:$0xc0]  ;;  %v5055_v31 = vsel %vm6349_vm5, %v4963_v36, %v6348_v38  ;;  %v6350_v14 = vrot.slane %v4994_v47, 1  ;;  %v5061_v42 = vld [vmem:[#allocation2 + $0x28] sm:$0xfe]  ;;  %v5068_v43 = vsel %vm6353_vm14, %v4969_v34, %v6352_v41 }
 0x4d0   : > { %v5063_v62 = vld [vmem:[#allocation2 + $0x60] sm:$0x7f]  ;;  %v5070_v57 = vld [vmem:[#allocation2 + $0x70] sm:$0xff]  ;;  %v2335_v38 = vld [vmem:[#allocation2 + $0x8] sm:$0x80]  ;;  %v6358_v25 = vrot.slane %v4994_v47, 2 }
 0x4d1   : > { %v2370_v32 = vsel %vm2355_vm8, %v2363_v11, %v6350_v14  ;;  %6351 = vst [vmem:[#allocation23_spill] sm:$0xff] %v5063_v62  ;;  %v2472_v22 = vld [vmem:[#allocation2 + $0x20] sm:$0xfe]  ;;  %vm6361_vm15 = vmmov %vm6344_vm1  ;;  %v2359_v15 = vrot.slane %v2335_v38, 1  ;;  %vm2626_vm12 = vcmask 1041408  }
 0x4d2   : > { %2069 = vrot.lane.b32.xlu1 %v4882_v4, %s3624_s8  ;;  %2125 = vrot.lane.b32.xlu0 %v4955_v24, %s3625_s26  ;;  %v4990_v45 = vpop.permute.xlu0 %1417  ;;  %v5106_v58 = vsel %vm2419_vm11, %v6359_v20, %v6358_v25  ;;  %vm6370_vm1 = vmmov %vm6364_vm6 }
 0x4d3   : > { %vm6372_vm5 = vmmov %vm6370_vm1 }
 0x4d4   : > { %vm6380_vm14 = vmmov %vm6370_vm1 }
 0x4d6   : > { %2073 = vrot.lane.b32.xlu1 %v4882_v4, %s3624_s8  ;;  %2159 = vrot.lane.b32.xlu0 %v4971_v55, %s3626_s10  ;;  %v4977_v59 = vpop.permute.xlu1 %1851  ;;  %v5016_v27 = vpop.permute.xlu0 %1459 }
 0x4d7   : > { %6340 = vst [vmem:[#allocation48_spill] sm:$0xff] %v4977_v59 }
 0x4da   : > { %2077 = vrot.lane.b32.xlu1 %v4882_v4, %s3624_s8  ;;  %2163 = vrot.lane.b32.xlu0 %v4982_v0, %s3626_s10  ;;  %v4988_v21 = vpop.permute.xlu1 %1311 }
 0x4db   : > { %v1350_v25 = vmax.f32 %v4791_v37, %v4988_v21  ;;  %v2320_v37 = vld [vmem:[#allocation2 + $0x8] sm:$0xc0] }
 0x4de   : > { %2081 = vrot.lane.b32.xlu1 %v4992_v29, %s3624_s8  ;;  %2167 = vrot.lane.b32.xlu0 %v4994_v47, %s3626_s10  ;;  %v1316_v50 = vpop.permute.xlu1 %1315 }
 0x4df   : > { %v1331_v52 = vsel %vm6272_vm2, %v6345_v3, %v1316_v50  ;;  %v1352_v33 = vmax.f32 %v4750_v63, %v1316_v50  ;;  %v2398_v3 = vadd.f32 %v2358_v1, %v2319_v7  ;;  %v2364_v63 = vsel %vm2355_vm8, %v2362_v35, %v2363_v11  ;;  %v6356_v1 = vld [vmem:[#allocation19_spill] sm:$0xff] }
 0x4e0   : > { %v6354_v7 = vrot.slane %v4913_v30, 3  ;;  %v6355_v50 = vrot.slane %v4910_v12, 3  ;;  %v1330_v44 = vsel %vm6272_vm2, %v6356_v1, %v4988_v21  ;;  %v1351_v41 = vmax.f32 %v4407_v2, %v1331_v52  ;;  %v1464_v1 = vpop.permute.xlu0 %1463  ;;  %v2542_v21 = vld [vmem:[#allocation2 + $0x20] sm:$0xfc] }
 0x4e1   : > { %v6357_v35 = vrot.slane %v5005_v13, 3  ;;  %v5099_v52 = vadd.f32 %v2370_v32, %v4982_v0  ;;  %v1382_v32 = vmax.f32 %v1352_v33, %v4880_v18  ;;  %v5117_v29 = vadd.f32 %v4997_v48, %v2398_v3 }
 0x4e2   : > { %2115 = vrot.lane.b32.xlu1 %v4933_v46, %s3625_s26  ;;  %2171 = vrot.lane.b32.xlu0 %v5018_v6, %s3626_s10  ;;  %v5032_v16 = vpop.permute.xlu1 %1319  ;;  %v5079_v14 = vsel %vm2483_vm10, %v6355_v50, %v6354_v7  ;;  %v5113_v50 = vsel %vm6361_vm15, %v4990_v45, %v6360_v56  ;;  %v5119_v59 = vadd.f32 %v2364_v63, %v2321_v10  ;;  %v6363_v56 = vld [vmem:[#allocation28_spill] sm:$0xff] }
 0x4e3   : > { %v5095_v7 = vsel %vm2483_vm10, %v6357_v35, %v5009_v17  ;;  %v1349_v20 = vmax.f32 %v4407_v2, %v1330_v44  ;;  %v1332_v35 = vsel %vm6272_vm2, %v6362_v61, %v5032_v16  ;;  %v1480_v33 = vsel %vm6364_vm6, %v5016_v27, %v6363_v56  ;;  %v6365_v61 = vld [vmem:[#allocation22_spill] sm:$0xff] }
 0x4e4   : > { %v1381_v3 = vmax.f32 %v1351_v41, %v4880_v18  ;;  %v2485_v44 = vrot.slane %v2472_v22, 3  ;;  %v6366_v56 = vrot.slane %v5063_v62, 1  ;;  %v1448_v41 = vmax.f32 %v1382_v32, %v5055_v31  ;;  %v6369_v32 = vld [vmem:[#allocation29_spill] sm:$0xff] }
 0x4e5   : > { %v1354_v22 = vmax.f32 %v4815_v23, %v5032_v16  ;;  %v6368_v16 = vrot.slane %v4904_v51, 3 }
 0x4e6   : > { %2157 = vrot.lane.b32.xlu1 %v4933_v46, %s3626_s10  ;;  %2175 = vrot.lane.b32.xlu0 %v5070_v57, %s3626_s10  ;;  %v5089_v11 = vpop.permute.xlu1 %1323  ;;  %v5143_v18 = vsel %vm2355_vm8, %v4980_v5, %v6366_v56  ;;  %v2555_v5 = vrot.slane %v2542_v21, 4  ;;  %v1447_v56 = vmax.f32 %v1381_v3, %v4963_v36  ;;  %v1481_v3 = vsel %vm6370_vm1, %v1464_v1, %v6369_v32 }
 0x4e7   : > { %v1333_v38 = vsel %vm6272_vm2, %v6365_v61, %v5089_v11 }
 0x4e8   : > { %v1355_v31 = vmax.f32 %v4407_v2, %v1333_v38 }
 0x4ea   : > { %2211 = vrot.lane.b32.xlu1 %v4933_v46, %s3627_s11  ;;  %2213 = vrot.lane.b32.xlu0 %v4971_v55, %s3627_s11  ;;  %v1362_v10 = vpop.permute.xlu1 %1361  ;;  %v1353_v55 = vmax.f32 %v4407_v2, %v1332_v35  ;;  %v6367_v46 = vrot.slane %v4884_v53, 1  ;;  %v1356_v35 = vmax.f32 %v4776_v49, %v5089_v11  ;;  %v6373_v11 = vrot.slane %v4884_v53, 2 }
 0x4eb   : > { %v1379_v63 = vmax.f32 %v1349_v20, %v1362_v10  ;;  %v1380_v17 = vmax.f32 %v1350_v25, %v1362_v10  ;;  %v1468_v20 = vpop.permute.xlu0 %1467 }
 0x4ec   : > { %v2361_v61 = vsel %vm2355_vm8, %v2359_v15, %v6367_v46  ;;  %v2490_v15 = vsel %vm2483_vm10, %v2485_v44, %v6368_v16  ;;  %v2338_v46 = vld [vmem:[#allocation2 + $0x68] sm:$0x7f] }
 0x4ed   : > { %v1445_v25 = vmax.f32 %v1379_v63, %v4935_v39  ;;  %v1446_v10 = vmax.f32 %v1380_v17, %v5026_v54  ;;  %v2399_v62 = vadd.f32 %v2361_v61, %v2320_v37  ;;  %v6371_v37 = vld [vmem:[#allocation30_spill] sm:$0xff]  ;;  %v2530_v38 = vadd.f32 %v2490_v15, %v4945_v9 }
 0x4ee   : > { %2217 = vrot.lane.b32.xlu0 %v4982_v0, %s3627_s11  ;;  %v1366_v23 = vpop.permute.xlu1 %1365  ;;  %v1482_v49 = vsel %vm6372_vm5, %v1468_v20, %v6371_v37  ;;  %v1502_v63 = vmax.f32 %v1448_v41, %v1481_v3  ;;  %v1501_v61 = vmax.f32 %v1447_v56, %v1464_v1  ;;  %v1385_v9 = vmax.f32 %v1355_v31, %v4906_v40 }
 0x4ef   : > { %v1383_v54 = vmax.f32 %v1353_v55, %v1366_v23  ;;  %v1384_v39 = vmax.f32 %v1354_v22, %v1366_v23  ;;  %v1500_v17 = vmax.f32 %v1446_v10, %v1480_v33  ;;  %v1499_v36 = vmax.f32 %v1445_v25, %v5016_v27 }
 0x4f0   : > { %v2457_v21 = vadd.f32 %v6373_v11, %v2399_v62  ;;  %v6374_v55 = vrot.slane %v4904_v51, 4  ;;  %v2379_v22 = vrot.slane %v2338_v46, 1  ;;  %v2565_v27 = vrot.slane %v4910_v12, 4  ;;  %v2475_v62 = vld [vmem:[#allocation2 + $0x80] sm:$0x1]  ;;  %v1472_v11 = vpop.permute.xlu0 %1471 }
 0x4f1   : > { %1527 = vrot.lane.b32.xlu1 %v1500_v17, %s3628_s12  ;;  %v1386_v25 = vmax.f32 %v1356_v35, %v4906_v40  ;;  %v1449_v41 = vmax.f32 %v1383_v54, %v4969_v34  ;;  %v1450_v16 = vmax.f32 %v1384_v39, %v5068_v43  ;;  %v6375_v15 = vrot.slane %v4910_v12, 1  ;;  %v2545_v17 = vld [vmem:[#allocation2 + $0x80] sm:$0x3] }
 0x4f2   : > { %v2560_v33 = vsel %vm2553_vm0, %v2555_v5, %v6374_v55  ;;  %1525 = vrot.lane.b32.xlu0 %v1499_v36, %s3628_s12  ;;  %v2527_v10 = vadd.f32 %v2485_v44, %v2457_v21  ;;  %v6376_v56 = vmov %v6374_v55  ;;  %v2571_v35 = vrot.slane %v4913_v30, 4  ;;  %v2332_v36 = vld [vmem:[#allocation2 + $0x68] sm:$0x3f] }
 0x4f3   : > { %v2600_v23 = vadd.f32 %v2560_v33, %v2530_v38  ;;  %v2380_v46 = vsel %vm2355_vm8, %v6375_v15, %v2379_v22  ;;  %v2566_v44 = vsel %vm2553_vm0, %v6376_v56, %v2565_v27  ;;  %v2411_v43 = vadd.f32 %v2379_v22, %v2332_v36 }
 0x4f4   : > { %v2597_v32 = vadd.f32 %v2555_v5, %v2527_v10  ;;  %v2408_v1 = vadd.f32 %v4910_v12, %v2380_v46  ;;  %v2603_v34 = vadd.f32 %v2566_v44, %v4957_v28  ;;  %v2507_v31 = vrot.slane %v2475_v62, 3  ;;  %v5193_v5 = vld [vmem:[#allocation2 + $0x70] sm:$0x7f]  ;;  %v2543_v62 = vld [vmem:[#allocation2 + $0x28] sm:$0xfc] }
 0x4f5   : > { %1531 = vrot.lane.b32.xlu1 %v1502_v63, %s3628_s12  ;;  %v2631_v40 = vrot.slane %v2600_v23, 6  ;;  %v1452_v54 = vmax.f32 %v1386_v25, %v5113_v50  ;;  %v2577_v37 = vrot.slane %v2545_v17, 4  ;;  %v1451_v21 = vmax.f32 %v1385_v9, %v4990_v45 }
 0x4f6   : > { %1529 = vrot.lane.b32.xlu0 %v1501_v61, %s3628_s12  ;;  %v2630_v39 = vrot.slane %v2597_v32, 6  ;;  %v2466_v3 = vadd.f32 %v5050_v8, %v2408_v1  ;;  %v1504_v38 = vmax.f32 %v1450_v16, %v1482_v49  ;;  %v2638_v63 = vrot.slane %v2603_v34, 6 }
 0x4f7   : > { %v6377_v55 = vrot.slane %v4913_v30, 2  ;;  %v1503_v33 = vmax.f32 %v1449_v41, %v1468_v20  ;;  %v6378_v61 = vrot.slane %v4913_v30, 3  ;;  %v2381_v8 = vrot.slane %v5193_v5, 1  ;;  %v6379_v20 = vld [vmem:[#allocation31_spill] sm:$0xff]  ;;  %v2546_v5 = vld [vmem:[#allocation2 + $0x88] sm:$0x3] }
 0x4f8   : > { %v5200_v22 = vsel %vm2626_vm12, %v2630_v39, %v2631_v40  ;;  %v2536_v50 = vadd.f32 %v5079_v14, %v2466_v3  ;;  %v2572_v45 = vsel %vm2553_vm0, %v2565_v27, %v2571_v35  ;;  %v5210_v49 = vsel %vm2626_vm12, %v2631_v40, %v2638_v63 }
 0x4f9   : > { %v2469_v28 = vadd.f32 %v6377_v55, %v2411_v43  ;;  %v2508_v25 = vsel %vm2483_vm10, %v6378_v61, %v2507_v31  ;;  %1535 = vrot.lane.b32.xlu1 %v1504_v38, %s3628_s12  ;;  %v1483_v23 = vsel %vm6380_vm14, %v1472_v11, %v6379_v20  ;;  %v2461_v14 = vadd.f32 %v5106_v58, %v5099_v52 }
 0x4fa   : > { %1533 = vrot.lane.b32.xlu0 %v1503_v33, %s3628_s12  ;;  %v2606_v9 = vadd.f32 %v2572_v45, %v2536_v50  ;;  %v2578_v41 = vsel %vm2553_vm0, %v2571_v35, %v2577_v37  ;;  %v1506_v16 = vmax.f32 %v1452_v54, %v1483_v23  ;;  %v6381_v27 = vrot.slane %v5005_v13, 3 }
 0x4fb   : > { %v2539_v10 = vadd.f32 %v2508_v25, %v2469_v28  ;;  %v2407_v46 = vadd.f32 %v4882_v4, %v5143_v18  ;;  %v1505_v32 = vmax.f32 %v1451_v21, %v1472_v11  ;;  %v6382_v1 = vrot.slane %v4982_v0, 2 }
 0x4fc   : > { %v2526_v15 = vadd.f32 %v6381_v27, %v5117_v29  ;;  %v6383_v58 = vrot.slane %v5018_v6, 1  ;;  %v6384_v52 = vrot.slane %v4994_v47, 1  ;;  %v2644_v35 = vrot.slane %v2606_v9, 6 }
 0x4fd   : > { %v2609_v17 = vadd.f32 %v2578_v41, %v2539_v10  ;;  %v2458_v56 = vadd.f32 %v6382_v1, %v5119_v59  ;;  %1539 = vrot.lane.b32.xlu1 %v1506_v16, %s3628_s12  ;;  %v2529_v29 = vadd.f32 %v5095_v7, %v5035_v26  ;;  %v2556_v13 = vrot.slane %v2543_v62, 4  ;;  %v6392_v10 = vld [vmem:[#allocation50_spill] sm:$0xff] }
 0x4fe   : > { %v2376_v44 = vsel %vm2355_vm8, %v6384_v52, %v6383_v58  ;;  %v6385_v4 = vmov %v6383_v58  ;;  %1537 = vrot.lane.b32.xlu0 %v1505_v32, %s3628_s12  ;;  %v6386_v18 = vrot.slane %v4994_v47, 3  ;;  %v6387_v36 = vrot.slane %v5061_v42, 3 }
 0x4ff   : > { %v2382_v0 = vsel %vm2355_vm8, %v6385_v4, %v2381_v8  ;;  %v2650_v59 = vrot.slane %v2609_v17, 6  ;;  %v2561_v34 = vrot.slane %v4994_v47, 4  ;;  %v2433_v7 = vrot.slane %v5018_v6, 2  ;;  %v6394_v4 = vld [vmem:[#allocation23_spill] sm:$0xff]  ;;  %vm6398_vm8 = vmmov %vm6361_vm15 }
 0x500   : > { %v2492_v40 = vsel %vm2483_vm10, %v6387_v36, %v6386_v18  ;;  %v5248_v43 = vsel %vm2626_vm12, %v2638_v63, %v2644_v35  ;;  %v2465_v31 = vadd.f32 %v4997_v48, %v2407_v46  ;;  %v2406_v54 = vadd.f32 %v2376_v44, %v4994_v47 }
 0x501   : > { %v2439_v39 = vrot.slane %v5070_v57, 2  ;;  %v5254_v3 = vsel %vm2626_vm12, %v2644_v35, %v2650_v59  ;;  %v6388_v37 = vrot.slane %v5038_v19, 4  ;;  %v6389_v21 = vmov %v6387_v36  ;;  %2177 = vrot.lane.b32.xlu1 %v4955_v24, %s3626_s10  ;;  %v2474_v59 = vld [vmem:[#allocation2 + $0x78] sm:$0x1] }
 0x502   : > { %v2528_v38 = vadd.f32 %v6389_v21, %v2458_v56  ;;  %v2531_v55 = vadd.f32 %v2492_v40, %v2461_v14  ;;  %v2409_v28 = vadd.f32 %v2382_v0, %v5018_v6  ;;  %2221 = vrot.lane.b32.xlu0 %v4994_v47, %s3627_s11  ;;  %v2562_v61 = vsel %vm2553_vm0, %v2556_v13, %v2561_v34  ;;  %v2333_v21 = vld [vmem:[#allocation2 + $0x70] sm:$0x3f] }
 0x503   : > { %v2596_v11 = vadd.f32 %v6388_v37, %v2526_v15  ;;  %v6390_v63 = vmov %v6388_v37  ;;  %v6391_v42 = vrot.slane %v4994_v47, 2  ;;  %v2497_v45 = vrot.slane %v5018_v6, 3 }
 0x504   : > { %v2558_v33 = vsel %vm2553_vm0, %v6390_v63, %v5012_v60  ;;  %v2535_v20 = vadd.f32 %v6392_v10, %v2465_v31  ;;  %v2440_v19 = vsel %vm2419_vm11, %v2433_v7, %v2439_v39  ;;  %v2503_v14 = vrot.slane %v5070_v57, 3 }
 0x505   : > { %v5269_v50 = vadd.f32 %v2558_v33, %v2529_v29  ;;  %v2434_v25 = vsel %vm2419_vm11, %v6391_v42, %v2433_v7  ;;  %v2627_v62 = vrot.slane %v2596_v11, 6  ;;  %v2598_v9 = vadd.f32 %v2556_v13, %v2528_v38  ;;  %2231 = vrot.lane.b32.xlu1 %v4955_v24, %s3627_s11  ;;  %v2331_v13 = vld [vmem:[#allocation2 + $0x60] sm:$0x3f]  ;;  %vm6399_vm11 = vmmov %vm6370_vm1 }
 0x506   : > { %v2464_v23 = vadd.f32 %v2434_v25, %v2406_v54  ;;  %v2601_v41 = vadd.f32 %v2562_v61, %v2531_v55  ;;  %v2467_v16 = vadd.f32 %v2440_v19, %v2409_v28  ;;  %v2532_v27 = vadd.f32 %v6392_v10, %v5035_v26  ;;  %2225 = vrot.lane.b32.xlu0 %v5018_v6, %s3627_s11  ;;  %v2150_v54 = vld [vmem:[#allocation2 + $0x88] sm:$0x3]  ;;  %v2544_v28 = vld [vmem:[#allocation2 + $0x78] sm:$0x3] }
 0x507   : > { %v2628_v15 = vrot.slane %v5269_v50, 6  ;;  %v6393_v46 = vmov %v6386_v18  ;;  %v2567_v32 = vrot.slane %v5018_v6, 4  ;;  %v2605_v1 = vadd.f32 %v5012_v60, %v2535_v20 }
 0x508   : > { %v2498_v17 = vsel %vm2483_vm10, %v6393_v46, %v2497_v45  ;;  %v2504_v56 = vsel %vm2483_vm10, %v2497_v45, %v2503_v14  ;;  %v2573_v52 = vrot.slane %v5070_v57, 4  ;;  %v2633_v44 = vrot.slane %v2598_v9, 6 }
 0x509   : > { %v2534_v58 = vadd.f32 %v2498_v17, %v2464_v23  ;;  %v2629_v26 = vsel %vm2626_vm12, %v2627_v62, %v2628_v15  ;;  %v2634_v35 = vrot.slane %v2601_v41, 6  ;;  %v2537_v29 = vadd.f32 %v2504_v56, %v2467_v16  ;;  %v5331_v17 = vpop.permute.xlu1 %1871 }
 0x50a   : > { %2654 = vrot.lane.b32.xlu1 %v2629_v26, %s3628_s12  ;;  %v2602_v47 = vadd.f32 %v5012_v60, %v2532_v27  ;;  %v6395_v0 = vrot.slane %v6394_v4, 1  ;;  %2229 = vrot.lane.b32.xlu0 %v5070_v57, %s3627_s11  ;;  %v2568_v18 = vsel %vm2553_vm0, %v2561_v34, %v2567_v32  ;;  %v2642_v36 = vrot.slane %v2605_v1, 6  ;;  %v2476_v34 = vld [vmem:[#allocation2 + $0x88] sm:$0x1] }
 0x50b   : > { %v2574_v40 = vsel %vm2553_vm0, %v2567_v32, %v2573_v52  ;;  %v2604_v7 = vadd.f32 %v2568_v18, %v2534_v58  ;;  %v2635_v31 = vsel %vm2626_vm12, %v2633_v44, %v2634_v35  ;;  %v2505_v11 = vrot.slane %v2474_v59, 3 }
 0x50c   : > { %v2410_v6 = vadd.f32 %v6395_v0, %v2331_v13  ;;  %v2607_v37 = vadd.f32 %v2574_v40, %v2537_v29  ;;  %v2636_v38 = vrot.slane %v2602_v47, 6  ;;  %v2412_v63 = vadd.f32 %v2381_v8, %v2333_v21 }
 0x50d   : > { %v2640_v50 = vrot.slane %v2604_v7, 6  ;;  %v2506_v42 = vsel %vm2483_vm10, %v6392_v10, %v2505_v11  ;;  %v2575_v25 = vrot.slane %v2544_v28, 4  ;;  %v2509_v45 = vrot.slane %v2476_v34, 3  ;;  %v6397_v7 = vld [vmem:[#allocation47_spill] sm:$0xff] }
 0x50e   : > { %2658 = vrot.lane.b32.xlu1 %v2635_v31, %s3628_s12  ;;  %v2468_v55 = vadd.f32 %v4997_v48, %v2410_v6  ;;  %2179 = vrot.lane.b32.xlu0 %v2150_v54, %s3626_s10  ;;  %v2643_v33 = vsel %vm2626_vm12, %v2636_v38, %v2642_v36  ;;  %v2646_v61 = vrot.slane %v2607_v37, 6  ;;  %v2470_v48 = vadd.f32 %v2439_v39, %v2412_v63 }
 0x50f   : > { %v2576_v19 = vsel %vm2553_vm0, %v5012_v60, %v2575_v25  ;;  %v2510_v23 = vsel %vm2483_vm10, %v2503_v14, %v2509_v45  ;;  %v2579_v62 = vrot.slane %v2546_v5, 4  ;;  %v2637_v10 = vsel %vm2626_vm12, %v2628_v15, %v2636_v38  ;;  %v1854_v15 = vpop.permute.xlu0 %1853 }
 0x510   : > { %v2538_v20 = vadd.f32 %v2506_v42, %v2468_v55  ;;  %v2647_v8 = vsel %vm2626_vm12, %v2640_v50, %v2646_v61  ;;  %v2540_v41 = vadd.f32 %v2510_v23, %v2470_v48  ;;  %v2641_v39 = vsel %vm2626_vm12, %v2634_v35, %v2640_v50 }
 0x511   : > { %v2580_v57 = vsel %vm2553_vm0, %v2573_v52, %v2579_v62  ;;  %vm6400_vm10 = vcmask 15360   ;;  %v6402_v62 = vld [vmem:[#allocation48_spill] sm:$0xff] }
 0x512   : > { %2666 = vrot.lane.b32.xlu1 %v2643_v33, %s3628_s12  ;;  %2233 = vrot.lane.b32.xlu0 %v2150_v54, %s3627_s11  ;;  %v2608_v9 = vadd.f32 %v2576_v19, %v2538_v20  ;;  %v2610_v27 = vadd.f32 %v2580_v57, %v2540_v41  ;;  %vm6401_vm15 = vmmov %vm6400_vm10 }
 0x513   : > { %v5333_v32 = vpop.permute.xlu0 %1873  ;;  %vm6403_vm0 = vmmov %vm6400_vm10 }
 0x514   : > { %v2648_v16 = vrot.slane %v2608_v9, 6  ;;  %v2652_v14 = vrot.slane %v2610_v27, 6  ;;  %vm6404_vm6 = vmmov %vm6403_vm0 }
 0x515   : > { %vm6407_vm1 = vmmov %vm6403_vm0 }
 0x516   : > { %2670 = vrot.lane.b32.xlu1 %v2647_v8, %s3628_s12  ;;  %2660 = vrot.lane.b32.xlu0 %v2637_v10, %s3628_s12  ;;  %v2649_v60 = vsel %vm2626_vm12, %v2642_v36, %v2648_v16  ;;  %v2653_v46 = vsel %vm2626_vm12, %v2646_v61, %v2652_v14  ;;  %v6396_v36 = vld [vmem:[#allocation46_spill] sm:$0xff]  ;;  %v1875_v10 = vsel %vm6403_vm0, %v6402_v62, %v1854_v15  ;;  %vm6406_vm12 = vmmov %vm6403_vm0 }
 0x517   : > { %vm6420_vm0 = vmmov %vm6398_vm8 }
 0x51a   : > { %2664 = vrot.lane.b32.xlu0 %v2641_v39, %s3628_s12 }
 0x51e   : > { %2672 = vrot.lane.b32.xlu0 %v2649_v60, %s3628_s12  ;;  %v6405_v60 = vld [vmem:[#allocation49_spill] sm:$0xff] }
 0x522   : > { %2676 = vrot.lane.b32.xlu0 %v2653_v46, %s3628_s12 }
 0x53c   : > { %v2064_v1 = vpop.permute.xlu0 %2063  ;;  %v2062_v56 = vpop.permute.xlu1 %2061 }
 0x53d   : > { %v2085_v6 = vsel %vm6272_vm2, %v2062_v56, %v2064_v1  ;;  %v2104_v31 = vadd.f32 %v2064_v1, %v6397_v7 }
 0x53e   : > { %v2103_v40 = vadd.f32 %v2085_v6, %v6396_v36 }
 0x540   : > { %v5335_v58 = vpop.permute.xlu0 %2083  ;;  %v5337_v52 = vpop.permute.xlu1 %2065 }
 0x544   : > { %v5339_v26 = vpop.permute.xlu0 %2125  ;;  %v5341_v44 = vpop.permute.xlu1 %2069 }
 0x548   : > { %v2160_v35 = vpop.permute.xlu0 %2159  ;;  %v5343_v29 = vpop.permute.xlu1 %2073 }
 0x54c   : > { %v5345_v13 = vpop.permute.xlu0 %2163  ;;  %v5347_v47 = vpop.permute.xlu1 %2077 }
 0x550   : > { %v5349_v4 = vpop.permute.xlu0 %2167  ;;  %v2082_v0 = vpop.permute.xlu1 %2081 }
 0x551   : > { %v2090_v9 = vsel %vm6272_vm2, %v2082_v0, %v5335_v58 }
 0x552   : > { %v2113_v14 = vadd.f32 %v2090_v9, %v6405_v60  ;;  %v2114_v60 = vadd.f32 %v5335_v58, %v4955_v24 }
 0x554   : > { %v5352_v59 = vpop.permute.xlu0 %2171  ;;  %v2116_v18 = vpop.permute.xlu1 %2115 }
 0x555   : > { %v2133_v11 = vadd.f32 %v2116_v18, %v2103_v40  ;;  %v2134_v38 = vadd.f32 %v2116_v18, %v2104_v31  ;;  %v2143_v40 = vadd.f32 %v5339_v26, %v2113_v14 }
 0x558   : > { %v5356_v54 = vpop.permute.xlu0 %2175  ;;  %v2158_v37 = vpop.permute.xlu1 %2157 }
 0x559   : > { %v2181_v21 = vsel %vm6398_vm8, %v2158_v37, %v2160_v35  ;;  %v2199_v55 = vadd.f32 %v2158_v37, %v2133_v11 }
 0x55a   : > { %v2200_v28 = vadd.f32 %v2181_v21, %v2134_v38 }
 0x55c   : > { %v2214_v63 = vpop.permute.xlu0 %2213  ;;  %v2212_v34 = vpop.permute.xlu1 %2211 }
 0x55d   : > { %v2235_v33 = vsel %vm6399_vm11, %v2212_v34, %v2214_v63  ;;  %v2253_v50 = vadd.f32 %v2212_v34, %v2199_v55 }
 0x55e   : > { %v2254_v61 = vadd.f32 %v2235_v33, %v2200_v28 }
 0x55f   : > { %2277 = vrot.lane.b32.xlu1 %v2253_v50, %s3628_s12 }
 0x560   : > { %v5361_v42 = vpop.permute.xlu0 %2217  ;;  %2279 = vrot.lane.b32.xlu0 %v2254_v61, %s3628_s12 }
 0x563   : > { %v1528_v25 = vpop.permute.xlu1 %1527 }
 0x564   : > { %v1526_v45 = vpop.permute.xlu0 %1525 }
 0x565   : > { %v1546_v20 = vsel %vm6400_vm10, %v1526_v45, %v1528_v25  ;;  %vm6413_vm10 = vcmask 1014784  }
 0x566   : > { %1558 = vst [vmem:[#allocation3 + $0x2] sm:$0xff] %v1546_v20 }
 0x567   : > { %v1532_v48 = vpop.permute.xlu1 %1531 }
 0x568   : > { %v1530_v5 = vpop.permute.xlu0 %1529 }
 0x569   : > { %v1547_v8 = vsel %vm6401_vm15, %v1530_v5, %v1532_v48  ;;  %v1880_v5 = vsel %vm6407_vm1, %v5331_v17, %v5333_v32 }
 0x56a   : > { %1559 = vst [vmem:[#allocation3 + $0xa] sm:$0xff] %v1547_v8 }
 0x56b   : > { %v1536_v19 = vpop.permute.xlu1 %1535 }
 0x56c   : > { %v1534_v23 = vpop.permute.xlu0 %1533 }
 0x56d   : > { %v1548_v41 = vsel %vm6404_vm6, %v1534_v23, %v1536_v19  ;;  %v1563_v57 = vld [vmem:[#allocation3] sm:$0xff]  ;;  %vm2695_vm6 = vcmask 31744  }
 0x56e   : > { %v1567_v39 = vld [vmem:[#allocation3 + $0x1] sm:$0xff]  ;;  %1560 = vst [vmem:[#allocation3 + $0x12] sm:$0xff] %v1548_v41 }
 0x56f   : > { %v1571_v16 = vmax.f32 %v1563_v57, %v1567_v39  ;;  %1887 = vst [vmem:[#allocation3 - $0x6] sm:$0xc0] %v1875_v10  ;;  %v1540_v27 = vpop.permute.xlu1 %1539  ;;  %v5390_v57 = vld [vmem:[%s3768_s25] sm:$0xff] }
 0x570   : > { %v1538_v46 = vpop.permute.xlu0 %1537  ;;  %6408 = vst [vmem:[#allocation20_spill] sm:$0xff] %v5390_v57 }
 0x571   : > { %v1579_v1 = vmax.f32 %v1571_v16, %v1546_v20  ;;  %v1549_v56 = vsel %vm6406_vm12, %v1538_v46, %v1540_v27  ;;  %v1583_v35 = vld [vmem:[#allocation3 + $0x3] sm:$0xff]  ;;  %vm6421_vm12 = vmmov %vm6407_vm1 }
 0x572   : > { %v1564_v6 = vld [vmem:[#allocation3 + $0x8] sm:$0xff]  ;;  %1561 = vst [vmem:[#allocation3 + $0x1a] sm:$0xff] %v1549_v56 }
 0x573   : > { %v1587_v15 = vmax.f32 %v1579_v1, %v1583_v35  ;;  %v1568_v18 = vld [vmem:[#allocation3 + $0x9] sm:$0xff]  ;;  %v2178_v0 = vpop.permute.xlu1 %2177  ;;  %v2144_v35 = vadd.f32 %v5339_v26, %v2114_v60  ;;  %v5433_v26 = vld [vmem:[%s3768_s25 + $0x18] sm:$0xff] }
 0x574   : > { %v1572_v36 = vmax.f32 %v1564_v6, %v1568_v18  ;;  %v5374_v7 = vpop.permute.xlu0 %2221  ;;  %v1591_v31 = vld [vmem:[#allocation3 + $0x4] sm:$0xff]  ;;  %v2209_v38 = vadd.f32 %v2178_v0, %v2143_v40  ;;  %v5406_v1 = vld [vmem:[%s3768_s25 + $0x8] sm:$0xff]  ;;  %v5421_v18 = vld [vmem:[%s3768_s25 + $0x10] sm:$0xff]  ;;  %6415 = vst [vmem:[#allocation28_spill] sm:$0xff] %v5433_v26  ;;  %s3468_s25 = scalar_lea.vmem %s5840_s6, 512 }
 0x575   : > { %v1584_v11 = vld [vmem:[#allocation3 + $0xb] sm:$0xff]  ;;  %v5376_v55 = vmax.f32 %v1587_v15, %v1591_v31  ;;  %6410 = vst [vmem:[#allocation25_spill] sm:$0xff] %v5406_v1  ;;  %6414 = vst [vmem:[#allocation21_spill] sm:$0xff] %v5421_v18  ;;  %p3469_p11 = scmp.ne.s32.totalorder %s5840_s6, %s3468_s25 }
 0x576   : > { %v1580_v37 = vmax.f32 %v1572_v36, %v1547_v8  ;;  %v1565_v21 = vld [vmem:[#allocation3 + $0x10] sm:$0xff] }
 0x577   : > { %v1569_v28 = vld [vmem:[#allocation3 + $0x11] sm:$0xff]  ;;  %v2232_v63 = vpop.permute.xlu1 %2231  ;;  %vm1599_vm5 = vcmp.gt.f32.partialorder %v5376_v55, 0.0  ;;  %p3470_p13 = pnand %p3469_p11, %p6476_p12 }
 0x578   : > { %v1588_v34 = vmax.f32 %v1580_v37, %v1584_v11  ;;  %v1573_v33 = vmax.f32 %v1565_v21, %v1569_v28  ;;  %v2263_v50 = vadd.f32 %v2232_v63, %v2209_v38  ;;  %v5378_v61 = vpop.permute.xlu0 %2225  ;;  %v1592_v25 = vld [vmem:[#allocation3 + $0xc] sm:$0xff]  ;;  %v5395_v17 = vsel %vm1599_vm5, 0.0, %v5390_v57 }
 0x579   : > { %v1585_v20 = vld [vmem:[#allocation3 + $0x13] sm:$0xff]  ;;  %v1586_v23 = vld [vmem:[#allocation3 + $0x1b] sm:$0xff]  ;;  %p3471_p4 = pneg %p3470_p13 }
 0x57a   : > { %v1581_v45 = vmax.f32 %v1573_v33, %v1548_v41  ;;  %v1566_v48 = vld [vmem:[#allocation3 + $0x18] sm:$0xff]  ;;  %2297 = vrot.lane.b32.xlu1 %v2263_v50, %s3628_s12  ;;  %v5385_v8 = vmax.f32 %v1588_v34, %v1592_v25 }
 0x57b   : > { %v1570_v19 = vld [vmem:[#allocation3 + $0x19] sm:$0xff] }
 0x57c   : > { %v1594_v62 = vld [vmem:[#allocation3 + $0x1c] sm:$0xff]  ;;  %v1589_v10 = vmax.f32 %v1581_v45, %v1585_v20  ;;  %v1574_v9 = vmax.f32 %v1566_v48, %v1570_v19  ;;  %v5387_v41 = vpop.permute.xlu0 %2229  ;;  %v1593_v32 = vld [vmem:[#allocation3 + $0x14] sm:$0xff]  ;;  %vm1600_vm14 = vcmp.gt.f32.partialorder %v5385_v8, 0.0 }
 0x57d   : > { %1892 = vst [vmem:[#allocation3 + $0x22] sm:$0x3] %v1880_v5 }
 0x57e   : > { %v1582_v39 = vmax.f32 %v1574_v9, %v1549_v56  ;;  %1641 = vrot.lane.b32.xlu1 %v5395_v17, %s3624_s8  ;;  %v5400_v16 = vmax.f32 %v1589_v10, %v1593_v32  ;;  %v5411_v56 = vsel %vm1600_vm14, 0.0, %v5406_v1  ;;  %v6417_v9 = vld [vmem:[#allocation33_spill] sm:$0xff] }
 0x57f   : > { %6411 = vst [vmem:[#allocation19_spill] sm:$0xff] %v5411_v56 }
 0x580   : > { %6409 = vst [vmem:[#allocation24_spill] sm:$0xff] %v5400_v16  ;;  %v1590_v27 = vmax.f32 %v1582_v39, %v1586_v23  ;;  %v2180_v14 = vpop.permute.xlu0 %2179  ;;  %vm1601_vm11 = vcmp.gt.f32.partialorder %v5400_v16, 0.0  ;;  %v6422_v16 = vld [vmem:[#allocation35_spill] sm:$0xff] }
 0x581   : > { %v2186_v46 = vsel %vm6398_vm8, %v2178_v0, %v2180_v14  ;;  %v5426_v0 = vsel %vm1601_vm11, 0.0, %v5421_v18  ;;  %vm6425_vm8 = vmmov %vm6420_vm0 }
 0x582   : > { %1645 = vrot.lane.b32.xlu1 %v5411_v56, %s3624_s8  ;;  %v5417_v6 = vmax.f32 %v1590_v27, %v1594_v62  ;;  %v2210_v24 = vadd.f32 %v2186_v46, %v2144_v35  ;;  %v6418_v46 = vld [vmem:[#allocation34_spill] sm:$0xff] }
 0x584   : > { %6412 = vst [vmem:[#allocation26_spill] sm:$0xff] %v5417_v6  ;;  %v2234_v58 = vpop.permute.xlu0 %2233  ;;  %vm6273_vm15 = vcmp.gt.f32.partialorder %v5417_v6, 0.0 }
 0x585   : > { %v2240_v15 = vsel %vm6413_vm10, %v2232_v63, %v2234_v58  ;;  %v5438_v40 = vsel %vm6273_vm15, 0.0, %v5433_v26  ;;  %vm6462_vm15 = vcmask 15360  }
 0x586   : > { %v2264_v36 = vadd.f32 %v2240_v15, %v2210_v24  ;;  %1649 = vrot.lane.b32.xlu1 %v5426_v0, %s3624_s8  ;;  %v6419_v15 = vld [vmem:[#allocation32_spill] sm:$0xff] }
 0x588   : > { %2299 = vrot.lane.b32.xlu0 %v2264_v36, %s3628_s12  ;;  %v5502_v37 = vpop.permute.xlu0 %2660 }
 0x58a   : > { %1653 = vrot.lane.b32.xlu1 %v5438_v40, %s3624_s8 }
 0x58c   : > { %1697 = vrot.lane.b32.xlu0 %v5438_v40, %s3625_s26  ;;  %v5506_v21 = vpop.permute.xlu0 %2664 }
 0x58e   : > { %1691 = vrot.lane.b32.xlu1 %v5395_v17, %s3625_s26 }
 0x590   : > { %2067 = vrot.lane.b32.xlu0 %v4884_v53, %s3624_s8 }
 0x592   : > { %1693 = vrot.lane.b32.xlu1 %v5411_v56, %s3625_s26 }
 0x594   : > { %2071 = vrot.lane.b32.xlu0 %v4904_v51, %s3624_s8 }
 0x596   : > { %1695 = vrot.lane.b32.xlu1 %v5426_v0, %s3625_s26 }
 0x598   : > { %2075 = vrot.lane.b32.xlu0 %v4910_v12, %s3624_s8 }
 0x59a   : > { %1735 = vrot.lane.b32.xlu1 %v5395_v17, %s3626_s10 }
 0x59c   : > { %2079 = vrot.lane.b32.xlu0 %v4913_v30, %s3624_s8 }
 0x59e   : > { %1739 = vrot.lane.b32.xlu1 %v5411_v56, %s3626_s10 }
 0x5a0   : > { %2117 = vrot.lane.b32.xlu0 %v4884_v53, %s3625_s26 }
 0x5a2   : > { %1743 = vrot.lane.b32.xlu1 %v5426_v0, %s3626_s10 }
 0x5a4   : > { %2121 = vrot.lane.b32.xlu0 %v4910_v12, %s3625_s26 }
 0x5a6   : > { %1747 = vrot.lane.b32.xlu1 %v5438_v40, %s3626_s10 }
 0x5a8   : > { %2656 = vrot.lane.b32.xlu0 %v5200_v22, %s3628_s12  ;;  %v2655_v22 = vpop.permute.xlu1 %2654 }
 0x5aa   : > { %1789 = vrot.lane.b32.xlu1 %v5395_v17, %s3627_s11 }
 0x5ac   : > { %2668 = vrot.lane.b32.xlu0 %v5248_v43, %s3628_s12  ;;  %v2659_v43 = vpop.permute.xlu1 %2658 }
 0x5ae   : > { %1793 = vrot.lane.b32.xlu1 %v5411_v56, %s3627_s11 }
 0x5b0   : > { %v2667_v31 = vpop.permute.xlu1 %2666 }
 0x5b2   : > { %1797 = vrot.lane.b32.xlu1 %v5426_v0, %s3627_s11 }
 0x5b4   : > { %v2671_v11 = vpop.permute.xlu1 %2670 }
 0x5b6   : > { %1801 = vrot.lane.b32.xlu1 %v5438_v40, %s3627_s11 }
 0x5ba   : > { %2119 = vrot.lane.b32.xlu1 %v4904_v51, %s3625_s26 }
 0x5be   : > { %2123 = vrot.lane.b32.xlu1 %v4913_v30, %s3625_s26 }
 0x5c2   : > { %2161 = vrot.lane.b32.xlu1 %v4884_v53, %s3626_s10 }
 0x5c6   : > { %2165 = vrot.lane.b32.xlu1 %v4904_v51, %s3626_s10 }
 0x5ca   : > { %2169 = vrot.lane.b32.xlu1 %v4910_v12, %s3626_s10 }
 0x5ce   : > { %2173 = vrot.lane.b32.xlu1 %v4913_v30, %s3626_s10 }
 0x5d2   : > { %2215 = vrot.lane.b32.xlu1 %v4884_v53, %s3627_s11  ;;  %v5510_v53 = vpop.permute.xlu1 %2277 }
 0x5d6   : > { %2219 = vrot.lane.b32.xlu1 %v4904_v51, %s3627_s11  ;;  %v5512_v51 = vpop.permute.xlu0 %2672 }
 0x5da   : > { %2223 = vrot.lane.b32.xlu1 %v4910_v12, %s3627_s11  ;;  %v5516_v28 = vpop.permute.xlu0 %2676 }
 0x5de   : > { %2227 = vrot.lane.b32.xlu1 %v4913_v30, %s3627_s11  ;;  %v5518_v63 = vpop.permute.xlu0 %2279 }
 0x5e2   : > { %2662 = vrot.lane.b32.xlu1 %v5210_v49, %s3628_s12 }
 0x5e6   : > { %2674 = vrot.lane.b32.xlu1 %v5254_v3, %s3628_s12 }
 0x5ec   : > { %v5514_v12 = vpop.permute.xlu1 %2297 }
 0x5ed   : > { %6416 = vst [vmem:[#allocation22_spill] sm:$0xff] %v5514_v12 }
 0x5f0   : > { %v1642_v38 = vpop.permute.xlu1 %1641 }
 0x5f1   : > { %v1660_v32 = vsel %vm6272_vm2, %v6417_v9, %v1642_v38  ;;  %v1680_v14 = vmax.f32 %v5395_v17, %v1642_v38 }
 0x5f2   : > { %v1679_v60 = vmax.f32 %v4407_v2, %v1660_v32 }
 0x5f4   : > { %v1646_v30 = vpop.permute.xlu1 %1645 }
 0x5f5   : > { %v1661_v35 = vsel %vm6272_vm2, %v6418_v46, %v1646_v30  ;;  %v1682_v38 = vmax.f32 %v5411_v56, %v1646_v30 }
 0x5f6   : > { %v1681_v9 = vmax.f32 %v4407_v2, %v1661_v35  ;;  %v6426_v35 = vld [vmem:[#allocation42_spill] sm:$0xff] }
 0x5f8   : > { %v1650_v34 = vpop.permute.xlu1 %1649 }
 0x5f9   : > { %v1662_v46 = vsel %vm6272_vm2, %v6422_v16, %v1650_v34 }
 0x5fa   : > { %v5520_v49 = vpop.permute.xlu0 %2299  ;;  %v1683_v16 = vmax.f32 %v4407_v2, %v1662_v46 }
 0x5fc   : > { %v5522_v33 = vpop.permute.xlu1 %1653 }
 0x5fd   : > { %v1686_v46 = vmax.f32 %v5438_v40, %v5522_v33 }
 0x5fe   : > { %v5524_v50 = vpop.permute.xlu0 %1697 }
 0x600   : > { %v1692_v3 = vpop.permute.xlu1 %1691 }
 0x601   : > { %v1709_v58 = vmax.f32 %v1679_v60, %v1692_v3  ;;  %v1710_v26 = vmax.f32 %v1680_v14, %v1692_v3  ;;  %v6423_v60 = vld [vmem:[#allocation36_spill] sm:$0xff] }
 0x602   : > { %v5526_v25 = vpop.permute.xlu0 %2067 }
 0x604   : > { %v1694_v45 = vpop.permute.xlu1 %1693 }
 0x605   : > { %v1711_v14 = vmax.f32 %v1681_v9, %v1694_v45  ;;  %v1712_v30 = vmax.f32 %v1682_v38, %v1694_v45  ;;  %v6429_v45 = vld [vmem:[#allocation40_spill] sm:$0xff] }
 0x606   : > { %v5528_v20 = vpop.permute.xlu0 %2071 }
 0x608   : > { %v1696_v48 = vpop.permute.xlu1 %1695 }
 0x60a   : > { %v5530_v5 = vpop.permute.xlu0 %2075 }
 0x60c   : > { %v1736_v19 = vpop.permute.xlu1 %1735 }
 0x60d   : > { %v1756_v36 = vsel %vm6420_vm0, %v1736_v19, %v6419_v15  ;;  %v1775_v6 = vmax.f32 %v1709_v58, %v1736_v19  ;;  %v1663_v15 = vsel %vm6272_vm2, %v6423_v60, %v5522_v33  ;;  %v6424_v19 = vld [vmem:[#allocation27_spill] sm:$0xff]  ;;  %vm6427_vm0 = vmmov %vm6407_vm1  ;;  %v1716_v33 = vmax.f32 %v1686_v46, %v5524_v50 }
 0x60e   : > { %v5532_v23 = vpop.permute.xlu0 %2079  ;;  %v1776_v57 = vmax.f32 %v1710_v26, %v1756_v36  ;;  %v1684_v36 = vmax.f32 %v5426_v0, %v1650_v34  ;;  %v1685_v9 = vmax.f32 %v4407_v2, %v1663_v15 }
 0x610   : > { %v1740_v62 = vpop.permute.xlu1 %1739  ;;  %v1714_v34 = vmax.f32 %v1684_v36, %v1696_v48 }
 0x611   : > { %v1777_v12 = vmax.f32 %v1711_v14, %v1740_v62  ;;  %v1715_v14 = vmax.f32 %v1685_v9, %v5524_v50 }
 0x612   : > { %v5534_v10 = vpop.permute.xlu0 %2117 }
 0x614   : > { %v1744_v39 = vpop.permute.xlu1 %1743 }
 0x616   : > { %v5538_v27 = vpop.permute.xlu0 %2121 }
 0x618   : > { %v1748_v24 = vpop.permute.xlu1 %1747 }
 0x61a   : > { %v2657_v18 = vpop.permute.xlu0 %2656 }
 0x61b   : > { %v5548_v1 = vsel %vm6421_vm12, %v2655_v22, %v2657_v18  ;;  %v2679_v32 = vsel %vm6407_vm1, %v2657_v18, %v2659_v43  ;;  %v1757_v22 = vsel %vm6425_vm8, %v1740_v62, %v6424_v19  ;;  %vm6428_vm12 = vmmov %vm6427_vm0  ;;  %v6433_v19 = vld [vmem:[#allocation41_spill] sm:$0xff] }
 0x61c   : > { %2696 = vst.msk [vmem:[#allocation4 + $0x8] sm:$0xff] %vm2695_vm6, %v2679_v32  ;;  %v1790_v3 = vpop.permute.xlu1 %1789  ;;  %v1778_v32 = vmax.f32 %v1712_v30, %v1757_v22  ;;  %vm6430_vm1 = vmmov %vm6425_vm8 }
 0x61d   : > { %v1810_v18 = vsel %vm6413_vm10, %v1790_v3, %v6426_v35  ;;  %v1829_v43 = vmax.f32 %v1775_v6, %v1790_v3  ;;  %v1713_v6 = vmax.f32 %v1683_v16, %v1696_v48  ;;  %v1758_v62 = vsel %vm6430_vm1, %v1744_v39, %v6429_v45  ;;  %vm6432_vm8 = vmmov %vm6413_vm10  ;;  %v6435_v35 = vld [vmem:[#allocation44_spill] sm:$0xff]  ;;  %v3435_v45 = vld [vmem:[#allocation2] sm:$0xff] }
 0x61e   : > { %v2669_v58 = vpop.permute.xlu0 %2668  ;;  %v1830_v56 = vmax.f32 %v1776_v57, %v1810_v18  ;;  %v1780_v15 = vmax.f32 %v1714_v34, %v1758_v62  ;;  %vm6434_vm10 = vmmov %vm6430_vm1 }
 0x61f   : > { %v5564_v60 = vsel %vm6427_vm0, %v2667_v31, %v2669_v58  ;;  %v2683_v26 = vsel %vm6428_vm12, %v2669_v58, %v2671_v11  ;;  %1855 = vrot.lane.b32.xlu1 %v1829_v43, %s3628_s12  ;;  %v6431_v31 = vld [vmem:[#allocation43_spill] sm:$0xff]  ;;  %v1779_v2 = vmax.f32 %v1713_v6, %v1744_v39  ;;  %v1759_v22 = vsel %vm6434_vm10, %v1748_v24, %v6433_v19  ;;  %vm6436_vm0 = vmmov %vm6432_vm8  ;;  %v6437_v58 = vld [vmem:[#allocation45_spill] sm:$0xff] }
 0x620   : > { %2700 = vst.msk [vmem:[#allocation4 + $0x28] sm:$0xff] %vm2695_vm6, %v2683_v26  ;;  %1857 = vrot.lane.b32.xlu0 %v1830_v56, %s3628_s12  ;;  %v1794_v57 = vpop.permute.xlu1 %1793  ;;  %v1781_v43 = vmax.f32 %v1715_v14, %v1748_v24  ;;  %v1782_v39 = vmax.f32 %v1716_v33, %v1759_v22  ;;  %vm6438_vm12 = vmmov %vm6436_vm0  ;;  %v2086_v24 = vsel %vm6272_vm2, %v5337_v52, %v5526_v25 }
 0x621   : > { %v1811_v38 = vsel %vm6432_vm8, %v1794_v57, %v6431_v31  ;;  %v1831_v11 = vmax.f32 %v1777_v12, %v1794_v57  ;;  %v2105_v62 = vadd.f32 %v3435_v45, %v2086_v24  ;;  %v3436_v31 = vld [vmem:[#allocation2 + $0x20] sm:$0xff]  ;;  %vm6439_vm8 = vmmov %vm6430_vm1 }
 0x622   : > { %v1832_v3 = vmax.f32 %v1778_v32, %v1811_v38  ;;  %v2106_v38 = vadd.f32 %v3436_v31, %v5526_v25  ;;  %v2088_v25 = vsel %vm6272_vm2, %v5343_v29, %v5530_v5  ;;  %vm6440_vm10 = vmmov %vm6436_vm0  ;;  %v2089_v29 = vsel %vm6272_vm2, %v5347_v47, %v5532_v23  ;;  %v3439_v47 = vld [vmem:[#allocation2 + $0x68] sm:$0xff] }
 0x623   : > { %1859 = vrot.lane.b32.xlu1 %v1831_v11, %s3628_s12  ;;  %v2087_v11 = vsel %vm6272_vm2, %v5341_v44, %v5528_v20  ;;  %v2135_v34 = vadd.f32 %v5534_v10, %v2105_v62  ;;  %v2109_v33 = vadd.f32 %v3435_v45, %v2088_v25  ;;  %v2807_v25 = vmul.f32 -1.0, %v5564_v60 }
 0x624   : > { %1861 = vrot.lane.b32.xlu0 %v1832_v3, %s3628_s12  ;;  %v1798_v56 = vpop.permute.xlu1 %1797 }
 0x625   : > { %v1812_v12 = vsel %vm6436_vm0, %v1798_v56, %v6435_v35  ;;  %v1833_v18 = vmax.f32 %v1779_v2, %v1798_v56  ;;  %v2136_v2 = vadd.f32 %v5534_v10, %v2106_v38  ;;  %v3437_v56 = vld [vmem:[#allocation2 + $0x38] sm:$0xff]  ;;  %vm6441_vm0 = vmmov %vm6430_vm1 }
 0x626   : > { %v1834_v48 = vmax.f32 %v1780_v15, %v1812_v12  ;;  %v2107_v15 = vadd.f32 %v3435_v45, %v2087_v11  ;;  %v2108_v14 = vadd.f32 %v3437_v56, %v5528_v20  ;;  %v3438_v20 = vld [vmem:[#allocation2 + $0x50] sm:$0xff] }
 0x627   : > { %1863 = vrot.lane.b32.xlu1 %v1833_v18, %s3628_s12 }
 0x628   : > { %1865 = vrot.lane.b32.xlu0 %v1834_v48, %s3628_s12  ;;  %v1802_v30 = vpop.permute.xlu1 %1801 }
 0x629   : > { %v1813_v16 = vsel %vm6438_vm12, %v1802_v30, %v6437_v58  ;;  %v1835_v26 = vmax.f32 %v1781_v43, %v1802_v30  ;;  %v2110_v43 = vadd.f32 %v3438_v20, %v5530_v5  ;;  %vm6442_vm12 = vmmov %vm6440_vm10 }
 0x62a   : > { %v1836_v36 = vmax.f32 %v1782_v39, %v1813_v16 }
 0x62b   : > { %1867 = vrot.lane.b32.xlu1 %v1835_v26, %s3628_s12  ;;  %v2140_v26 = vadd.f32 %v5538_v27, %v2110_v43 }
 0x62c   : > { %1869 = vrot.lane.b32.xlu0 %v1836_v36, %s3628_s12  ;;  %v2120_v9 = vpop.permute.xlu1 %2119  ;;  %v2111_v36 = vadd.f32 %v3435_v45, %v2089_v29 }
 0x62d   : > { %v2137_v44 = vadd.f32 %v2120_v9, %v2107_v15  ;;  %v2138_v10 = vadd.f32 %v2120_v9, %v2108_v14  ;;  %v5664_v15 = vld [vmem:[#allocation4 + $0x28] sm:$0xff] }
 0x630   : > { %v2124_v32 = vpop.permute.xlu1 %2123 }
 0x631   : > { %v2141_v62 = vadd.f32 %v2124_v32, %v2111_v36 }
 0x634   : > { %v2162_v50 = vpop.permute.xlu1 %2161 }
 0x635   : > { %v2182_v3 = vsel %vm6430_vm1, %v2162_v50, %v5345_v13  ;;  %v2201_v52 = vadd.f32 %v2162_v50, %v2135_v34  ;;  %v2112_v50 = vadd.f32 %v3439_v47, %v5532_v23  ;;  %vm6443_vm1 = vmmov %vm6441_vm0 }
 0x636   : > { %v2202_v19 = vadd.f32 %v2182_v3, %v2136_v2 }
 0x637   : > { %v2142_v31 = vadd.f32 %v2124_v32, %v2112_v50 }
 0x638   : > { %v2166_v57 = vpop.permute.xlu1 %2165 }
 0x639   : > { %v2183_v35 = vsel %vm6439_vm8, %v2166_v57, %v5349_v4  ;;  %v2203_v48 = vadd.f32 %v2166_v57, %v2137_v44  ;;  %vm6444_vm8 = vmmov %vm6440_vm10 }
 0x63a   : > { %v2204_v39 = vadd.f32 %v2183_v35, %v2138_v10  ;;  %v2915_v35 = vmul.f32 2.0, %v5548_v1 }
 0x63c   : > { %v2170_v6 = vpop.permute.xlu1 %2169 }
 0x63d   : > { %v2184_v30 = vsel %vm6441_vm0, %v2170_v6, %v5352_v59  ;;  %vm6446_vm0 = vcmask 15360  }
 0x63e   : > { %v2206_v57 = vadd.f32 %v2184_v30, %v2140_v26 }
 0x640   : > { %v2174_v46 = vpop.permute.xlu1 %2173 }
 0x641   : > { %v2185_v59 = vsel %vm6443_vm1, %v2174_v46, %v5356_v54  ;;  %vm6448_vm1 = vmmov %vm6446_vm0 }
 0x642   : > { %v2208_v38 = vadd.f32 %v2185_v59, %v2142_v31 }
 0x644   : > { %v2216_v22 = vpop.permute.xlu1 %2215 }
 0x645   : > { %v2236_v13 = vsel %vm6440_vm10, %v2216_v22, %v5361_v42  ;;  %v2255_v12 = vadd.f32 %v2216_v22, %v2201_v52  ;;  %v2139_v42 = vadd.f32 %v5538_v27, %v2109_v33  ;;  %vm6445_vm10 = vmmov %vm6444_vm8  ;;  %v2920_v33 = vmul.f32 2.0, %v5664_v15 }
 0x646   : > { %v2256_v18 = vadd.f32 %v2236_v13, %v2202_v19  ;;  %v2808_v19 = vmul.f32 -1.0, %v5664_v15 }
 0x647   : > { %2281 = vrot.lane.b32.xlu1 %v2255_v12, %s3628_s12  ;;  %v2205_v9 = vadd.f32 %v2170_v6, %v2139_v42  ;;  %v2207_v6 = vadd.f32 %v2174_v46, %v2141_v62  ;;  %v5723_v42 = vmul.f32 4.0, %v5548_v1 }
 0x648   : > { %2283 = vrot.lane.b32.xlu0 %v2256_v18, %s3628_s12  ;;  %v2220_v4 = vpop.permute.xlu1 %2219  ;;  %v2919_v18 = vmul.f32 2.0, %v5564_v60 }
 0x649   : > { %v2237_v58 = vsel %vm6442_vm12, %v2220_v4, %v5374_v7  ;;  %v2257_v16 = vadd.f32 %v2220_v4, %v2203_v48  ;;  %vm6447_vm12 = vmmov %vm6446_vm0 }
 0x64a   : > { %v2258_v5 = vadd.f32 %v2237_v58, %v2204_v39  ;;  %v1949_v58 = vlaneseq }
 0x64b   : > { %2285 = vrot.lane.b32.xlu1 %v2257_v16, %s3628_s12 }
 0x64c   : > { %2287 = vrot.lane.b32.xlu0 %v2258_v5, %s3628_s12  ;;  %v2224_v24 = vpop.permute.xlu1 %2223  ;;  %v1950_v47 = vshrl.u32 %v1949_v58, 7  ;;  %v5734_v50 = vand.u32 127, %v1949_v58 }
 0x64d   : > { %v2238_v7 = vsel %vm6444_vm8, %v2224_v24, %v5378_v61  ;;  %v2259_v27 = vadd.f32 %v2224_v24, %v2205_v9  ;;  %vm6449_vm8 = vmmov %vm6446_vm0 }
 0x64e   : > { %v2260_v45 = vadd.f32 %v2238_v7, %v2206_v57  ;;  %v2301_v57 = vsel %vm6446_vm0, %v5510_v53, %v5518_v63 }
 0x64f   : > { %2289 = vrot.lane.b32.xlu1 %v2259_v27, %s3628_s12 }
 0x650   : > { %2291 = vrot.lane.b32.xlu0 %v2260_v45, %s3628_s12  ;;  %v2228_v23 = vpop.permute.xlu1 %2227  ;;  %v5744_v45 = vmul.f32 4.0, %v5564_v60 }
 0x651   : > { %v2239_v11 = vsel %vm6445_vm10, %v2228_v23, %v5387_v41  ;;  %v2261_v34 = vadd.f32 %v2228_v23, %v2207_v6  ;;  %v5645_v41 = vld [vmem:[#allocation4 + $0x8] sm:$0xff]  ;;  %vm6451_vm10 = vmmov %vm6446_vm0 }
 0x652   : > { %v2262_v3 = vadd.f32 %v2239_v11, %v2208_v38  ;;  %v2804_v52 = vmul.f32 -1.0, %v5645_v41  ;;  %v2916_v13 = vmul.f32 2.0, %v5645_v41  ;;  %v2959_v26 = vmul.f32 4.0, %v5645_v41 }
 0x653   : > { %2293 = vrot.lane.b32.xlu1 %v2261_v34, %s3628_s12 }
 0x654   : > { %2295 = vrot.lane.b32.xlu0 %v2262_v3, %s3628_s12  ;;  %v2663_v54 = vpop.permute.xlu1 %2662  ;;  %v2961_v3 = vmul.f32 4.0, %v5664_v15 }
 0x655   : > { %v5638_v61 = vsel %vm6446_vm0, %v5502_v37, %v2663_v54  ;;  %v2681_v32 = vsel %vm6447_vm12, %v2663_v54, %v5506_v21  ;;  %vm6452_vm12 = vmmov %vm6446_vm0 }
 0x656   : > { %2698 = vst.msk [vmem:[#allocation4 + $0x18] sm:$0xff] %vm2695_vm6, %v2681_v32  ;;  %v2805_v56 = vmul.f32 -1.0, %v5638_v61  ;;  %v2917_v12 = vmul.f32 2.0, %v5638_v61  ;;  %v5731_v36 = vmul.f32 4.0, %v5638_v61 }
 0x657   : > { %2855 = vrot.lane.b32.xlu1 %v5548_v1, %s3624_s8 }
 0x658   : > { %2857 = vrot.lane.b32.xlu0 %v5645_v41, %s3624_s8  ;;  %v2675_v46 = vpop.permute.xlu1 %2674 }
 0x659   : > { %v5651_v2 = vsel %vm6448_vm1, %v5512_v51, %v2675_v46  ;;  %v2685_v37 = vsel %vm6449_vm8, %v2675_v46, %v5516_v28  ;;  %v2803_v28 = vmul.f32 -1.0, %v5548_v1  ;;  %vm1956_vm1 = vcmp.ge.s32.totalorder %v1950_v47, 3 }
 0x65a   : > { %2702 = vst.msk [vmem:[#allocation4 + $0x38] sm:$0xff] %vm2695_vm6, %v2685_v37  ;;  %v2809_v22 = vmul.f32 -1.0, %v5651_v2  ;;  %v2921_v20 = vmul.f32 2.0, %v5651_v2  ;;  %vm6450_vm6 = vmmov %vm6446_vm0  ;;  %vm1968_vm8 = vcmp.ge.s32.totalorder %v5734_v50, 3  ;;  %v5760_v46 = vmul.f32 4.0, %v5651_v2 }
 0x65b   : > { %2859 = vrot.lane.b32.xlu1 %v5638_v61, %s3624_s8 }
 0x65d   : > { %v5658_v21 = vld [vmem:[#allocation4 + $0x18] sm:$0xff] }
 0x65e   : > { %2861 = vrot.lane.b32.xlu0 %v5658_v21, %s3624_s8  ;;  %v2806_v14 = vmul.f32 -1.0, %v5658_v21  ;;  %v2918_v10 = vmul.f32 2.0, %v5658_v21  ;;  %v2960_v7 = vmul.f32 4.0, %v5658_v21 }
 0x65f   : > { %2863 = vrot.lane.b32.xlu1 %v5564_v60, %s3624_s8 }
 0x661   : > { %v5670_v51 = vld [vmem:[#allocation4 + $0x38] sm:$0xff] }
 0x662   : > { %2865 = vrot.lane.b32.xlu0 %v5664_v15, %s3624_s8  ;;  %v2810_v44 = vmul.f32 -1.0, %v5670_v51  ;;  %v2922_v39 = vmul.f32 2.0, %v5670_v51 }
 0x663   : > { %2867 = vrot.lane.b32.xlu1 %v5651_v2, %s3624_s8 }
 0x666   : > { %2869 = vrot.lane.b32.xlu0 %v5670_v51, %s3624_s8 }
 0x667   : > { %2883 = vrot.lane.b32.xlu1 %v5548_v1, %s3626_s10 }
 0x66a   : > { %2885 = vrot.lane.b32.xlu0 %v5645_v41, %s3626_s10 }
 0x66b   : > { %2887 = vrot.lane.b32.xlu1 %v5638_v61, %s3626_s10 }
 0x66e   : > { %2889 = vrot.lane.b32.xlu0 %v5658_v21, %s3626_s10 }
 0x66f   : > { %2891 = vrot.lane.b32.xlu1 %v5564_v60, %s3626_s10 }
 0x672   : > { %2893 = vrot.lane.b32.xlu0 %v5664_v15, %s3626_s10 }
 0x673   : > { %2895 = vrot.lane.b32.xlu1 %v5651_v2, %s3626_s10 }
 0x676   : > { %2897 = vrot.lane.b32.xlu0 %v5670_v51, %s3626_s10 }
 0x677   : > { %2819 = vrot.lane.b32.xlu1 %v2803_v28, %s3624_s8 }
 0x67a   : > { %2821 = vrot.lane.b32.xlu0 %v2804_v52, %s3624_s8 }
 0x67b   : > { %2823 = vrot.lane.b32.xlu1 %v2805_v56, %s3624_s8  ;;  %v2962_v56 = vmul.f32 4.0, %v5670_v51 }
 0x67e   : > { %2825 = vrot.lane.b32.xlu0 %v2806_v14, %s3624_s8 }
 0x67f   : > { %2827 = vrot.lane.b32.xlu1 %v2807_v25, %s3624_s8 }
 0x682   : > { %2829 = vrot.lane.b32.xlu0 %v2808_v19, %s3624_s8 }
 0x683   : > { %2831 = vrot.lane.b32.xlu1 %v2809_v22, %s3624_s8  ;;  %v1953_v22 = vadd.s32 24, %v1950_v47  ;;  %v6469_v47 = vld [vmem:[#allocation25_spill] sm:$0xff] }
 0x686   : > { %2833 = vrot.lane.b32.xlu0 %v2810_v44, %s3624_s8  ;;  %s3631_s8 = smov [#allocation8]  }
 0x687   : > { %2931 = vrot.lane.b32.xlu1 %v2915_v35, %s3627_s11  ;;  %s3472_s26 = sshll.u32 %s3631_s8, 4  ;;  %s3473_s26 = int_to_ptr.vmem [resolvable:$false] %s3472_s26 }
 0x688   : > { %s3474_s10 = scalar_lea.vmem %s3473_s26, 1024  ;;  %p3475_p5 = scmp.lt.s32.totalorder %s5840_s6, %s3473_s26 }
 0x689   : > { %p3476_p7 = scmp.lt.s32.totalorder %s3474_s10, %s3468_s25 }
 0x68a   : > { %2933 = vrot.lane.b32.xlu0 %v2916_v13, %s3627_s11 }
 0x68b   : > { %2935 = vrot.lane.b32.xlu1 %v2917_v12, %s3627_s11  ;;  %p3477_p8 = por %p3476_p7, %p3475_p5 }
 0x68d   : > { %p3478_p10 = pnand %p3477_p8, %p3471_p4 }
 0x68e   : > { %2937 = vrot.lane.b32.xlu0 %v2918_v10, %s3627_s11 }
 0x68f   : > { %2939 = vrot.lane.b32.xlu1 %v2919_v18, %s3627_s11 }
 0x691   : > { %v1856_v48 = vpop.permute.xlu1 %1855 }
 0x692   : > { %v1858_v43 = vpop.permute.xlu0 %1857  ;;  %2941 = vrot.lane.b32.xlu0 %v2920_v33, %s3627_s11  ;;  %v6463_v33 = vld [vmem:[#allocation20_spill] sm:$0xff] }
 0x693   : > { %v1876_v29 = vsel %vm6450_vm6, %v1856_v48, %v1858_v43  ;;  %2943 = vrot.lane.b32.xlu1 %v2921_v20, %s3627_s11  ;;  %vm6453_vm6 = vmmov %vm6446_vm0 }
 0x694   : > { %1888 = vst [vmem:[#allocation3 + $0x2] sm:$0xff] %v1876_v29  ;;  %vm1969_vm0 = vmand %vm1956_vm1, %vm1968_vm8 }
 0x695   : > { %v1860_v4 = vpop.permute.xlu1 %1859 }
 0x696   : > { %v1862_v30 = vpop.permute.xlu0 %1861  ;;  %2945 = vrot.lane.b32.xlu0 %v2922_v39, %s3627_s11 }
 0x697   : > { %v1877_v16 = vsel %vm6451_vm10, %v1860_v4, %v1862_v30  ;;  %2971 = vrot.lane.b32.xlu1 %v5723_v42, %s3627_s11  ;;  %vm5754_vm10 = vmxor %vm1599_vm5, %vm3630_vm13  ;;  %v6464_v4 = vld [vmem:[#allocation19_spill] sm:$0xff] }
 0x698   : > { %1889 = vst [vmem:[#allocation3 + $0xa] sm:$0xff] %v1877_v16  ;;  %vm5768_vm5 = vmxor %vm1600_vm14, %vm3630_vm13 }
 0x699   : > { %v1864_v5 = vpop.permute.xlu1 %1863 }
 0x69a   : > { %v1866_v9 = vpop.permute.xlu0 %1865  ;;  %2973 = vrot.lane.b32.xlu0 %v2959_v26, %s3627_s11 }
 0x69b   : > { %v1878_v24 = vsel %vm6452_vm12, %v1864_v5, %v1866_v9  ;;  %2975 = vrot.lane.b32.xlu1 %v5731_v36, %s3627_s11  ;;  %v1893_v62 = vld [vmem:[#allocation3] sm:$0xff]  ;;  %vm1973_vm12 = vcmp.lt.s32.totalorder %v5734_v50, 126 }
 0x69c   : > { %v1897_v59 = vld [vmem:[#allocation3 + $0x1] sm:$0xff]  ;;  %1890 = vst [vmem:[#allocation3 + $0x12] sm:$0xff] %v1878_v24  ;;  %vm5779_vm14 = vmand %vm1969_vm0, %vm1973_vm12 }
 0x69d   : > { %2313 = vst [vmem:[#allocation3 - $0x6] sm:$0xc0] %v2301_v57  ;;  %v1901_v27 = vmax.f32 %v1893_v62, %v1897_v59  ;;  %v1868_v31 = vpop.permute.xlu1 %1867 }
 0x69e   : > { %v1870_v6 = vpop.permute.xlu0 %1869  ;;  %2977 = vrot.lane.b32.xlu0 %v2960_v7, %s3627_s11 }
 0x69f   : > { %v1909_v53 = vmax.f32 %v1901_v27, %v1876_v29  ;;  %v1894_v63 = vld [vmem:[#allocation3 + $0x8] sm:$0xff]  ;;  %v1879_v11 = vsel %vm6453_vm6, %v1868_v31, %v1870_v6  ;;  %2979 = vrot.lane.b32.xlu1 %v5744_v45, %s3627_s11  ;;  %v6473_v31 = vld [vmem:[#allocation21_spill] sm:$0xff] }
 0x6a0   : > { %v1898_v38 = vld [vmem:[#allocation3 + $0x9] sm:$0xff]  ;;  %1891 = vst [vmem:[#allocation3 + $0x1a] sm:$0xff] %v1879_v11 }
 0x6a1   : > { %v1913_v23 = vld [vmem:[#allocation3 + $0x3] sm:$0xff]  ;;  %v1902_v54 = vmax.f32 %v1894_v63, %v1898_v38  ;;  %v6475_v63 = vld [vmem:[#allocation28_spill] sm:$0xff] }
 0x6a2   : > { %v1917_v32 = vmax.f32 %v1909_v53, %v1913_v23  ;;  %v1921_v41 = vld [vmem:[#allocation3 + $0x4] sm:$0xff]  ;;  %2981 = vrot.lane.b32.xlu0 %v2961_v3, %s3627_s11 }
 0x6a3   : > { %v1910_v37 = vmax.f32 %v1902_v54, %v1877_v16  ;;  %v1895_v15 = vld [vmem:[#allocation3 + $0x10] sm:$0xff]  ;;  %2983 = vrot.lane.b32.xlu1 %v5760_v46, %s3627_s11  ;;  %v6471_v27 = vld [vmem:[#allocation26_spill] sm:$0xff] }
 0x6a4   : > { %v1925_v21 = vmax.f32 %v1917_v32, %v1921_v41  ;;  %v1899_v28 = vld [vmem:[#allocation3 + $0x11] sm:$0xff] }
 0x6a5   : > { %v1914_v52 = vld [vmem:[#allocation3 + $0xb] sm:$0xff]  ;;  %v1903_v14 = vmax.f32 %v1895_v15, %v1899_v28 }
 0x6a6   : > { %v1918_v25 = vmax.f32 %v1910_v37, %v1914_v52  ;;  %vm1929_vm1 = vcmp.eq.f32.partialorder %v5395_v17, %v1925_v21  ;;  %v1922_v19 = vld [vmem:[#allocation3 + $0xc] sm:$0xff]  ;;  %2985 = vrot.lane.b32.xlu0 %v2962_v56, %s3627_s11 }
 0x6a7   : > { %vm1937_vm6 = vmand %vm1929_vm1, %vm5754_vm10  ;;  %v1911_v44 = vmax.f32 %v1903_v14, %v1878_v24  ;;  %v6461_v17 = vld [vmem:[#allocation22_spill] sm:$0xff]  ;;  %v1896_v12 = vld [vmem:[#allocation3 + $0x18] sm:$0xff] }
 0x6a8   : > { %v1926_v35 = vmax.f32 %v1918_v25, %v1922_v19  ;;  %vm1941_vm2 = vmor %vm4783_vm9, %vm1937_vm6  ;;  %v2306_v13 = vsel %vm6462_vm15, %v6461_v17, %v5520_v49  ;;  %v1900_v10 = vld [vmem:[#allocation3 + $0x19] sm:$0xff]  ;;  %vm1963_vm15 = vcmp.lt.s32.totalorder %v1953_v22, 30 }
 0x6a9   : > { %v1915_v18 = vld [vmem:[#allocation3 + $0x13] sm:$0xff]  ;;  %v1945_v48 = vsel %vm1941_vm2, %v6463_v33, 0.0  ;;  %v1916_v20 = vld [vmem:[#allocation3 + $0x1b] sm:$0xff]  ;;  %v1904_v29 = vmax.f32 %v1896_v12, %v1900_v10  ;;  %vm5797_vm9 = vmand %vm1968_vm8, %vm1973_vm12 }
 0x6aa   : > { %v1924_v43 = vld [vmem:[#allocation3 + $0x1c] sm:$0xff]  ;;  %v1919_v39 = vmax.f32 %v1911_v44, %v1915_v18  ;;  %vm1930_vm10 = vcmp.eq.f32.partialorder %v6464_v4, %v1926_v35  ;;  %v1978_v49 = vsel %vm5779_vm14, %v1945_v48, 0.0  ;;  %v1923_v58 = vld [vmem:[#allocation3 + $0x14] sm:$0xff]  ;;  %vm1935_vm1 = vmxor %vm1601_vm11, %vm3630_vm13  ;;  %vm6472_vm11 = vcmp.gt.f32.partialorder %v6471_v27, 0.0 }
 0x6ab   : > { %2318 = vst [vmem:[#allocation3 + $0x22] sm:$0x3] %v2306_v13  ;;  %vm1938_vm2 = vmand %vm1930_vm10, %vm5768_vm5  ;;  %v1912_v16 = vmax.f32 %v1904_v29, %v1879_v11 }
 0x6ac   : > { %1982 = vst [vmem:[%s222_s29] sm:$0xff] %v1978_v49  ;;  %v1927_v26 = vmax.f32 %v1919_v39, %v1923_v58  ;;  %vm1942_vm0 = vmor %vm4743_vm4, %vm1938_vm2 }
 0x6ad   : > { %v1946_v57 = vsel %vm1942_vm0, %v6469_v47, 0.0  ;;  %v1920_v24 = vmax.f32 %v1912_v16, %v1916_v20  ;;  %vm1972_vm5 = vmand %vm1963_vm15, %vm1968_vm8 }
 0x6ae   : > { %vm1931_vm14 = vcmp.eq.f32.partialorder %v5426_v0, %v1927_v26  ;;  %v1979_v62 = vsel %vm5797_vm9, %v1946_v57, 0.0  ;;  %vm1936_vm10 = vmxor %vm6472_vm11, %vm3630_vm13 }
 0x6af   : > { %vm1939_vm6 = vmand %vm1931_vm14, %vm1935_vm1  ;;  %1983 = vst [vmem:[%s222_s29 + $0x8] sm:$0xff] %v1979_v62  ;;  %v1928_v59 = vmax.f32 %v1920_v24, %v1924_v43 }
 0x6b0   : > { %vm1943_vm4 = vmor %vm4803_vm7, %vm1939_vm6 }
 0x6b1   : > { %v1947_v6 = vsel %vm1943_vm4, %v6473_v31, 0.0  ;;  %vm1932_vm8 = vcmp.eq.f32.partialorder %v5438_v40, %v1928_v59  ;;  %vm1977_vm2 = vmand %vm1972_vm5, %vm1973_vm12 }
 0x6b2   : > { %v1980_v0 = vsel %vm5797_vm9, %v1947_v6, 0.0  ;;  %vm1940_vm7 = vmand %vm1932_vm8, %vm1936_vm10 }
 0x6b3   : > { %1984 = vst [vmem:[%s222_s29 + $0x10] sm:$0xff] %v1980_v0  ;;  %vm1944_vm13 = vmor %vm4769_vm3, %vm1940_vm7 }
 0x6b4   : > { %v1948_v38 = vsel %vm1944_vm13, %v6475_v63, 0.0 }
 0x6b5   : > { %v1981_v40 = vsel %vm1977_vm2, %v1948_v38, 0.0 }
 0x6b6   : > { %1985 = vst [vmem:[%s222_s29 + $0x18] sm:$0xff] %v1981_v40 }
 0x6b7   : > { %3481 = shalt.err (!%p3478_p10)
}
 0x6b8   : > { %s3482_s11 = scalar_lea.hbm %s5838_s13, 512  ;;  %s3486_s29 = scalar_lea.hbm %s6235_s1, 1024 }
 0x6b9   : > { %p3483_p0 = scmp.ne.s32.totalorder %s5838_s13, %s3482_s11  ;;  %p3487_p1 = scmp.lt.s32.totalorder %s5838_s13, %s6235_s1 }
 0x6ba   : > { %p3488_p3 = scmp.lt.s32.totalorder %s3486_s29, %s3482_s11 }
 0x6bb   : > { %p3484_p2 = pnand %p3483_p0, %p6476_p12 }
 0x6bc   : > { %p3489_p6 = por %p3488_p3, %p3487_p1 }
 0x6bd   : > { %p3485_p9 = pneg %p3484_p2 }
 0x6bf   : > { %p3490_p11 = pnand %p3489_p6, %p3485_p9 }
 0x6c1   : > { %3493 = shalt.err (!%p3490_p11)
}
 0x6c2   : > { %s6277_s25 = smov 128   ;;  %s3633_s8 = smov 8   ;;  %v2282_v50 = vpop.permute.xlu1 %2281  ;;  %v2284_v23 = vpop.permute.xlu0 %2283  ;;  %vm6477_vm3 = vcmask 15360   ;;  %vm6483_vm0 = vcmask 1039360   ;;  %vm6485_vm14 = vcmask 1022976   ;;  %vm6487_vm6 = vcmask 1014784  }
 0x6c3   : > { %3337 = dma.vmem_to_hbm [thread:$0]  (%p6476_p12), %s5840_s6, 512, %s5838_s13, %s3052_s23, %s6277_s25, %s6277_s25, %s3633_s8   ;;  %v2302_v11 = vsel %vm6477_vm3, %v2282_v50, %v2284_v23  ;;  %vm6478_vm12 = vmmov %vm6477_vm3 }
 0x6c4   : > { %2314 = vst [vmem:[#allocation3 + $0x2] sm:$0xff] %v2302_v11  ;;  %vm6479_vm9 = vmmov %vm6477_vm3  ;;  %s5954_s6 = scalar_lea.vmem [#allocation11], %s3764_s22  ;;  %s6022_s13 = scalar_lea.vmem [#allocation9], %s3764_s22 }
 0x6c5   : > { %vm6480_vm15 = vmmov %vm6477_vm3  ;;  %s3096_s23 = sshll.u32 %s6022_s13, 4  ;;  %s3056_s26 = sand.u32 1, %s3683_s19   ;;  %s6065_s23 = int_to_ptr.vmem [resolvable:$true] %s3096_s23 }
 0x6c6   : > { %v2286_v34 = vpop.permute.xlu1 %2285  ;;  %v2288_v3 = vpop.permute.xlu0 %2287  ;;  %vm6484_vm1 = vmmov %vm6483_vm0  ;;  %s3112_s10 = sshll.u32 %s5954_s6, 4  ;;  %s6075_s12 = scalar_lea.hbm %s6236_s2, %s5824_s5  ;;  %s6091_s10 = int_to_ptr.vmem [resolvable:$true] %s3112_s10 }
 0x6c7   : > { %v2303_v54 = vsel %vm6478_vm12, %v2286_v34, %v2288_v3  ;;  %vm6486_vm5 = vmmov %vm6483_vm0  ;;  %s6089_s7 = scalar_lea.hbm %s6237_s3, %s5824_s5  ;;  %s6098_s9 = scalar_lea.sflag [#allocation10], %s3056_s26 }
 0x6c8   : > { %2315 = vst [vmem:[#allocation3 + $0xa] sm:$0xff] %v2303_v54  ;;  %vm6488_vm4 = vmmov %vm6485_vm14  ;;  %s3634_s19 = smov [#allocation9]  }
 0x6c9   : > { %vm6489_vm11 = vmmov %vm6483_vm0  ;;  %s3498_s11 = sshll.u32 %s3634_s19, 4  ;;  %s3499_s11 = int_to_ptr.vmem [resolvable:$false] %s3498_s11 }
 0x6ca   : > { %v2290_v32 = vpop.permute.xlu1 %2289  ;;  %v2292_v41 = vpop.permute.xlu0 %2291  ;;  %vm6490_vm10 = vmmov %vm6487_vm6  ;;  %s3500_s30 = scalar_lea.vmem %s3499_s11, 1024  ;;  %p3501_p7 = scmp.lt.s32.totalorder %s6065_s23, %s3499_s11 }
 0x6cb   : > { %v2304_v55 = vsel %vm6479_vm9, %v2290_v32, %v2292_v41  ;;  %v5871_v37 = vld [vmem:[#allocation3] sm:$0xff]  ;;  %vm6491_vm8 = vmmov %vm6488_vm4 }
 0x6cc   : > { %v5873_v21 = vld [vmem:[#allocation3 + $0x1] sm:$0xff]  ;;  %2316 = vst [vmem:[#allocation3 + $0x12] sm:$0xff] %v2304_v55  ;;  %v2707_v29 = vmul.f32 -2.0, %v5871_v37  ;;  %vm6492_vm2 = vmmov %vm6487_vm6 }
 0x6cd   : > { %v2719_v15 = vadd.f32 %v5873_v21, %v5871_v37  ;;  %v2723_v39 = vmul.f32 -1.0, %v5873_v21  ;;  %vm6493_vm7 = vmmov %vm6488_vm4 }
 0x6ce   : > { %v2294_v28 = vpop.permute.xlu1 %2293  ;;  %v2296_v52 = vpop.permute.xlu0 %2295  ;;  %vm6494_vm13 = vmmov %vm6483_vm0 }
 0x6cf   : > { %v2739_v56 = vadd.f32 %v2719_v15, %v2302_v11  ;;  %v2305_v14 = vsel %vm6480_vm15, %v2294_v28, %v2296_v52  ;;  %v5878_v25 = vld [vmem:[#allocation3 + $0x3] sm:$0xff]  ;;  %v2727_v24 = vadd.f32 %v2723_v39, %v2707_v29  ;;  %vm6495_vm3 = vmmov %vm6492_vm2 }
 0x6d0   : > { %v5880_v8 = vld [vmem:[#allocation3 + $0x8] sm:$0xff]  ;;  %2317 = vst [vmem:[#allocation3 + $0x1a] sm:$0xff] %v2305_v14  ;;  %vm6496_vm12 = vmmov %vm6483_vm0 }
 0x6d1   : > { %v2747_v19 = vadd.f32 %v5878_v25, %v2739_v56  ;;  %v5883_v22 = vld [vmem:[#allocation3 + $0x9] sm:$0xff]  ;;  %v2708_v59 = vmul.f32 -2.0, %v5880_v8  ;;  %v2751_v38 = vadd.f32 %v5878_v25, %v2727_v24  ;;  %vm6497_vm9 = vmmov %vm6492_vm2 }
 0x6d2   : > { %v5885_v44 = vpop.permute.xlu1 %2855  ;;  %v5887_v35 = vld [vmem:[#allocation3 + $0x4] sm:$0xff]  ;;  %v2720_v51 = vadd.f32 %v5883_v22, %v5880_v8  ;;  %v5896_v18 = vpop.permute.xlu0 %2857  ;;  %v2724_v7 = vmul.f32 -1.0, %v5883_v22  ;;  %vm6498_vm15 = vmmov %vm6483_vm0 }
 0x6d3   : > { %v2763_v17 = vadd.f32 %v5887_v35, %v2747_v19  ;;  %v5892_v12 = vld [vmem:[#allocation3 + $0xb] sm:$0xff]  ;;  %v2767_v40 = vmul.f32 2.0, %v5887_v35 }
 0x6d4   : > { %v2740_v13 = vadd.f32 %v2720_v51, %v2303_v54  ;;  %v5894_v10 = vld [vmem:[#allocation3 + $0x10] sm:$0xff]  ;;  %v2728_v11 = vadd.f32 %v2724_v7, %v2708_v59 }
 0x6d5   : > { %v2999_v33 = vmax.f32 %v2763_v17, 1e-20  ;;  %v5898_v48 = vld [vmem:[#allocation3 + $0x11] sm:$0xff]  ;;  %v2709_v3 = vmul.f32 -2.0, %v5894_v10  ;;  %v2771_v28 = vadd.f32 %v2767_v40, %v2751_v38 }
 0x6d6   : > { %v2748_v20 = vadd.f32 %v5892_v12, %v2740_v13  ;;  %v5901_v43 = vpop.permute.xlu1 %2859  ;;  %v5905_v4 = vld [vmem:[#allocation3 + $0xc] sm:$0xff]  ;;  %v2721_v30 = vadd.f32 %v5898_v48, %v5894_v10  ;;  %v5912_v16 = vpop.permute.xlu0 %2861  ;;  %v2725_v54 = vmul.f32 -1.0, %v5898_v48  ;;  %v2752_v56 = vadd.f32 %v5892_v12, %v2728_v11 }
 0x6d7   : > { %3418 = vrcp.f32 %v2999_v33  ;;  %v5910_v58 = vld [vmem:[#allocation3 + $0x13] sm:$0xff]  ;;  %v5934_v23 = vld [vmem:[#allocation3 + $0x1b] sm:$0xff] }
 0x6d8   : > { %v2764_v49 = vadd.f32 %v5905_v4, %v2748_v20  ;;  %v2741_v26 = vadd.f32 %v2721_v30, %v2304_v55  ;;  %v5914_v5 = vld [vmem:[#allocation3 + $0x18] sm:$0xff]  ;;  %v2729_v51 = vadd.f32 %v2725_v54, %v2709_v3 }
 0x6d9   : > { %v5916_v9 = vld [vmem:[#allocation3 + $0x19] sm:$0xff]  ;;  %v2710_v33 = vmul.f32 -2.0, %v5914_v5 }
 0x6da   : > { %v3000_v47 = vmax.f32 %v2764_v49, 1e-20  ;;  %v5918_v57 = vpop.permute.xlu1 %2863  ;;  %v2749_v62 = vadd.f32 %v5910_v58, %v2741_v26  ;;  %v5923_v27 = vld [vmem:[#allocation3 + $0x14] sm:$0xff]  ;;  %v2722_v31 = vadd.f32 %v5916_v9, %v5914_v5  ;;  %v5927_v6 = vpop.permute.xlu0 %2865  ;;  %v5941_v41 = vld [vmem:[#allocation3 + $0x1c] sm:$0xff]  ;;  %v2726_v20 = vmul.f32 -1.0, %v5916_v9 }
 0x6db   : > { %v2753_v49 = vadd.f32 %v5910_v58, %v2729_v51  ;;  %v2769_v26 = vmul.f32 2.0, %v5923_v27 }
 0x6dc   : > { %3420 = vrcp.f32 %v3000_v47  ;;  %v2765_v0 = vadd.f32 %v5923_v27, %v2749_v62  ;;  %v2742_v53 = vadd.f32 %v2722_v31, %v2305_v14  ;;  %v2768_v14 = vmul.f32 2.0, %v5905_v4 }
 0x6dd   : > { %v2730_v24 = vadd.f32 %v2726_v20, %v2710_v33  ;;  %v2773_v31 = vadd.f32 %v2769_v26, %v2753_v49  ;;  %v2787_v49 = vmul.f32 -2.0, %v5548_v1  ;;  %v2713_v1 = vmul.f32 4.0, %v5894_v10 }
 0x6de   : > { %v5930_v63 = vpop.permute.xlu1 %2867  ;;  %v3001_v50 = vmax.f32 %v2765_v0, 1e-20  ;;  %v2750_v34 = vadd.f32 %v5934_v23, %v2742_v53  ;;  %v5939_v32 = vpop.permute.xlu0 %2869  ;;  %v2772_v39 = vadd.f32 %v2768_v14, %v2752_v56  ;;  %v2790_v10 = vmul.f32 -2.0, %v5651_v2 }
 0x6df   : > { %v2754_v53 = vadd.f32 %v5934_v23, %v2730_v24  ;;  %v2776_v2 = vmul.f32 4.0, %v5905_v4 }
 0x6e0   : > { %3422 = vrcp.f32 %v3001_v50  ;;  %v2766_v55 = vadd.f32 %v5941_v41, %v2750_v34  ;;  %v2770_v50 = vmul.f32 2.0, %v5941_v41 }
 0x6e2   : > { %v2884_v15 = vpop.permute.xlu1 %2883  ;;  %v3002_v19 = vmax.f32 %v2766_v55, 1e-20  ;;  %v2886_v17 = vpop.permute.xlu0 %2885  ;;  %v2774_v3 = vadd.f32 %v2770_v50, %v2754_v53 }
 0x6e4   : > { %v5944_v52 = vpop.eup %3418  ;;  %3424 = vrcp.f32 %v3002_v19 }
 0x6e5   : > { %v5949_v13 = vmul.f32 %v5944_v52, %v2771_v28 }
 0x6e6   : > { %v2888_v29 = vpop.permute.xlu1 %2887  ;;  %v2890_v47 = vpop.permute.xlu0 %2889 }
 0x6e7   : > { %3043 = vst [vmem:[%s5954_s6] sm:$0xff] %v5949_v13 }
 0x6e9   : > { %v5958_v30 = vpop.eup %3420 }
 0x6ea   : > { %v5962_v62 = vpop.permute.xlu1 %2891  ;;  %v5965_v59 = vmul.f32 %v5958_v30, %v2772_v39  ;;  %v2894_v7 = vpop.permute.xlu0 %2893  ;;  %v2711_v39 = vmul.f32 4.0, %v5871_v37 }
 0x6ec   : > { %3044 = vst [vmem:[%s5954_s6 + $0x8] sm:$0xff] %v5965_v59  ;;  %v2731_v50 = vadd.f32 %v5873_v21, %v2711_v39 }
 0x6ed   : > { %v5969_v0 = vpop.eup %3422 }
 0x6ee   : > { %v5972_v38 = vpop.permute.xlu1 %2895  ;;  %v5975_v40 = vmul.f32 %v5969_v0, %v2773_v31  ;;  %v5978_v11 = vpop.permute.xlu0 %2897 }
 0x6f0   : > { %6481 = vst [vmem:[#allocation29_spill] sm:$0xff] %v5975_v40  ;;  %3045 = vst [vmem:[%s5954_s6 + $0x10] sm:$0xff] %v5975_v40  ;;  %v5997_v40 = vsel %vm6485_vm14, %v2884_v15, %v2886_v17 }
 0x6f1   : > { %v5982_v54 = vpop.eup %3424 }
 0x6f2   : > { %v2820_v34 = vpop.permute.xlu1 %2819  ;;  %v5985_v55 = vmul.f32 %v5982_v54, %v2774_v3  ;;  %v2822_v28 = vpop.permute.xlu0 %2821  ;;  %v2712_v3 = vmul.f32 4.0, %v5880_v8  ;;  %v2755_v8 = vadd.f32 %v5878_v25, %v2731_v50  ;;  %v2733_v25 = vadd.f32 %v5898_v48, %v2713_v1 }
 0x6f3   : > { %v2835_v33 = vsel %vm6483_vm0, %v2820_v34, %v2822_v28  ;;  %v6028_v48 = vsel %vm6491_vm8, %v5962_v62, %v2894_v7 }
 0x6f4   : > { %6482 = vst [vmem:[#allocation30_spill] sm:$0xff] %v5985_v55  ;;  %3046 = vst [vmem:[%s5954_s6 + $0x18] sm:$0xff] %v5985_v55  ;;  %v2843_v26 = vadd.f32 %v2835_v33, %v2787_v49  ;;  %v2788_v55 = vmul.f32 -2.0, %v5638_v61  ;;  %v2789_v33 = vmul.f32 -2.0, %v5564_v60  ;;  %v2775_v61 = vmul.f32 4.0, %v5887_v35  ;;  %s3494_s6 = scalar_lea.vmem %s6065_s23, 512 }
 0x6f5   : > { %v2732_v15 = vadd.f32 %v5883_v22, %v2712_v3  ;;  %v2714_v35 = vmul.f32 4.0, %v5914_v5  ;;  %v2757_v4 = vadd.f32 %v5910_v58, %v2733_v25  ;;  %v6044_v58 = vsel %vm6493_vm7, %v5972_v38, %v5978_v11  ;;  %p3495_p13 = scmp.ne.s32.totalorder %s6065_s23, %s3494_s6  ;;  %p3502_p8 = scmp.lt.s32.totalorder %s3500_s30, %s3494_s6 }
 0x6f6   : > { %v2824_v56 = vpop.permute.xlu1 %2823  ;;  %v2826_v14 = vpop.permute.xlu0 %2825  ;;  %v2907_v37 = vadd.f32 %v5997_v40, %v2843_v26 }
 0x6f7   : > { %v2836_v31 = vsel %vm6484_vm1, %v2824_v56, %v2826_v14  ;;  %v2734_v50 = vadd.f32 %v5916_v9, %v2714_v35  ;;  %p3496_p4 = pnand %p3495_p13, %p6476_p12  ;;  %p3503_p10 = por %p3502_p8, %p3501_p7 }
 0x6f8   : > { %v2844_v34 = vadd.f32 %v2836_v31, %v2788_v55  ;;  %v6008_v55 = vsel %vm6488_vm4, %v2888_v29, %v2890_v47  ;;  %v2779_v29 = vadd.f32 %v2775_v61, %v2755_v8  ;;  %v2756_v47 = vadd.f32 %v5892_v12, %v2732_v15 }
 0x6f9   : > { %p3497_p5 = pneg %p3496_p4 }
 0x6fa   : > { %v2828_v19 = vpop.permute.xlu1 %2827  ;;  %v2830_v51 = vpop.permute.xlu0 %2829  ;;  %v2795_v62 = vadd.f32 %v5723_v42, %v2779_v29  ;;  %v2780_v7 = vadd.f32 %v2776_v2, %v2756_v47  ;;  %v2871_v42 = vsel %vm6494_vm13, %v5885_v44, %v5896_v18  ;;  %v2872_v44 = vsel %vm6496_vm12, %v5901_v43, %v5912_v16 }
 0x6fb   : > { %v2837_v56 = vsel %vm6486_vm5, %v2828_v19, %v2830_v51  ;;  %v2908_v51 = vadd.f32 %v6008_v55, %v2844_v34  ;;  %v2778_v18 = vmul.f32 4.0, %v5941_v41  ;;  %p3504_p0 = pnand %p3503_p10, %p3497_p5 }
 0x6fc   : > { %v2845_v39 = vadd.f32 %v2837_v56, %v2789_v33  ;;  %v2758_v33 = vadd.f32 %v5934_v23, %v2734_v50  ;;  %v2879_v38 = vadd.f32 %v2871_v42, %v2795_v62  ;;  %v2796_v11 = vadd.f32 %v5731_v36, %v2780_v7 }
 0x6fe   : > { %v2832_v20 = vpop.permute.xlu1 %2831  ;;  %v2834_v24 = vpop.permute.xlu0 %2833  ;;  %v2909_v12 = vadd.f32 %v6028_v48, %v2845_v39  ;;  %v2911_v23 = vadd.f32 %v5997_v40, %v2879_v38  ;;  %v6080_v16 = vadd.f32 %v2778_v18, %v2758_v33  ;;  %v2880_v40 = vadd.f32 %v2872_v44, %v2796_v11 }
 0x6ff   : > { %v2838_v22 = vsel %vm6489_vm11, %v2832_v20, %v2834_v24 }
 0x700   : > { %v2846_v5 = vadd.f32 %v2838_v22, %v2790_v10 }
 0x702   : > { %v2932_v53 = vpop.permute.xlu1 %2931  ;;  %v2934_v28 = vpop.permute.xlu0 %2933 }
 0x703   : > { %v2947_v14 = vsel %vm6487_vm6, %v2932_v53, %v2934_v28  ;;  %v2777_v53 = vmul.f32 4.0, %v5923_v27 }
 0x704   : > { %v2955_v17 = vadd.f32 %v2947_v14, %v2907_v37  ;;  %v2910_v37 = vadd.f32 %v6044_v58, %v2846_v5 }
 0x705   : > { %v2781_v1 = vadd.f32 %v2777_v53, %v2757_v4 }
 0x706   : > { %v2936_v21 = vpop.permute.xlu1 %2935  ;;  %v6012_v60 = vmul.f32 %v5944_v52, %v2955_v17  ;;  %v2938_v19 = vpop.permute.xlu0 %2937 }
 0x707   : > { %v2948_v49 = vsel %vm6490_vm10, %v2936_v21, %v2938_v19  ;;  %v6078_v43 = vadd.f32 %v5744_v45, %v2781_v1  ;;  %v2873_v45 = vsel %vm6498_vm15, %v5918_v57, %v5927_v6 }
 0x708   : > { %3039 = vst [vmem:[%s6022_s13] sm:$0xff] %v6012_v60  ;;  %v2956_v31 = vadd.f32 %v2948_v49, %v2908_v51 }
 0x70a   : > { %v2940_v26 = vpop.permute.xlu1 %2939  ;;  %v6031_v20 = vmul.f32 %v5958_v30, %v2956_v31  ;;  %v2942_v24 = vpop.permute.xlu0 %2941 }
 0x70b   : > { %v2949_v3 = vsel %vm6492_vm2, %v2940_v26, %v2942_v24 }
 0x70c   : > { %3040 = vst [vmem:[%s6022_s13 + $0x8] sm:$0xff] %v6031_v20  ;;  %v2957_v28 = vadd.f32 %v2949_v3, %v2909_v12 }
 0x70e   : > { %v2944_v34 = vpop.permute.xlu1 %2943  ;;  %v6048_v9 = vmul.f32 %v5969_v0, %v2957_v28  ;;  %v2946_v27 = vpop.permute.xlu0 %2945 }
 0x70f   : > { %v2950_v56 = vsel %vm6495_vm3, %v2944_v34, %v2946_v27 }
 0x710   : > { %3041 = vst [vmem:[%s6022_s13 + $0x10] sm:$0xff] %v6048_v9  ;;  %v2958_v21 = vadd.f32 %v2950_v56, %v2910_v37 }
 0x712   : > { %v2972_v14 = vpop.permute.xlu1 %2971  ;;  %v6069_v8 = vmul.f32 %v5982_v54, %v2958_v21  ;;  %v2974_v36 = vpop.permute.xlu0 %2973 }
 0x713   : > { %v2987_v41 = vsel %vm6497_vm9, %v2972_v14, %v2974_v36 }
 0x714   : > { %3042 = vst [vmem:[%s6022_s13 + $0x18] sm:$0xff] %v6069_v8  ;;  %v2995_v15 = vadd.f32 %v2987_v41, %v2911_v23 }
 0x716   : > { %v6083_v61 = vpop.permute.xlu1 %2975 }
 0x717   : > { %3507 = shalt.err (!%p3504_p0)
}
 0x718   : > { %s3508_s13 = scalar_lea.hbm %s6075_s12, 512  ;;  %s3512_s19 = scalar_lea.hbm %s6236_s2, 1024 }
 0x719   : > { %p3509_p2 = scmp.ne.s32.totalorder %s6075_s12, %s3508_s13  ;;  %p3513_p3 = scmp.lt.s32.totalorder %s6075_s12, %s6236_s2 }
 0x71a   : > { %p3514_p6 = scmp.lt.s32.totalorder %s3512_s19, %s3508_s13 }
 0x71b   : > { %p3510_p9 = pnand %p3509_p2, %p6476_p12 }
 0x71c   : > { %p3515_p11 = por %p3514_p6, %p3513_p3 }
 0x71d   : > { %p3511_p1 = pneg %p3510_p9 }
 0x71f   : > { %p3516_p13 = pnand %p3515_p11, %p3511_p1 }
 0x721   : > { %3519 = shalt.err (!%p3516_p13)
}
 0x722   : > { %s6499_s6 = smov 128   ;;  %v2912_v57 = vadd.f32 %v6008_v55, %v2880_v40  ;;  %v3019_v6 = vmul.f32 %v6012_v60, %v6012_v60  ;;  %v3015_v17 = vmul.f32 %v5944_v52, %v2995_v15  ;;  %v2978_v39 = vpop.permute.xlu0 %2977  ;;  %s3520_s20 = scalar_lea.vmem %s6091_s10, 512 }
 0x723   : > { %3338 = dma.vmem_to_hbm [thread:$0]  (%p6476_p12), %s6065_s23, 512, %s6075_s12, %s6098_s9, %s6499_s6, %s6499_s6, %s3633_s8  }
 0x724   : > { %p3521_p4 = scmp.ne.s32.totalorder %s6091_s10, %s3520_s20  ;;  %s3635_s25 = smov [#allocation11]  }
 0x725   : > { %s3524_s11 = sshll.u32 %s3635_s25, 4  ;;  %s3525_s11 = int_to_ptr.vmem [resolvable:$false] %s3524_s11 }
 0x726   : > { %p3522_p5 = pnand %p3521_p4, %p6476_p12  ;;  %s3526_s30 = scalar_lea.vmem %s3525_s11, 1024 }
 0x727   : > { %p3527_p8 = scmp.lt.s32.totalorder %s6091_s10, %s3525_s11  ;;  %p3528_p10 = scmp.lt.s32.totalorder %s3526_s30, %s3520_s20 }
 0x728   : > { %p3523_p7 = pneg %p3522_p5 }
 0x729   : > { %p3529_p0 = por %p3528_p10, %p3527_p8 }
 0x72b   : > { %p3530_p2 = pnand %p3529_p0, %p3523_p7 }
 0x72d   : > { %3533 = shalt.err (!%p3530_p2)
}
 0x72e   : > { %s3534_s23 = scalar_lea.hbm %s6089_s7, 512  ;;  %s3538_s26 = scalar_lea.hbm %s6237_s3, 1024 }
 0x72f   : > { %p3535_p9 = scmp.ne.s32.totalorder %s6089_s7, %s3534_s23  ;;  %p3539_p6 = scmp.lt.s32.totalorder %s6089_s7, %s6237_s3 }
 0x730   : > { %p3540_p11 = scmp.lt.s32.totalorder %s3538_s26, %s3534_s23 }
 0x731   : > { %p3536_p1 = pnand %p3535_p9, %p6476_p12 }
 0x732   : > { %p3541_p13 = por %p3540_p11, %p3539_p6 }
 0x733   : > { %p3537_p3 = pneg %p3536_p1 }
 0x735   : > { %p3542_p4 = pnand %p3541_p13, %p3537_p3 }
 0x737   : > { %3545 = shalt.err (!%p3542_p4)
}
 0x738   : > { %3339 = dma.vmem_to_hbm [thread:$0]  (%p6476_p12), %s6091_s10, 512, %s6089_s7, %s6098_s9, %s6499_s6, %s6499_s6, %s3633_s8   ;;  %v2881_v52 = vadd.f32 %v2873_v45, %v6078_v43  ;;  %v2798_v55 = vadd.f32 %v5760_v46, %v6080_v16  ;;  %vm6500_vm0 = vmmov %vm6492_vm2  ;;  %v2874_v60 = vsel %vm6484_vm1, %v5930_v63, %v5939_v32  ;;  %v3027_v19 = vmul.f32 %v5949_v13, %v5949_v13  ;;  %v2980_v35 = vpop.permute.xlu1 %2979  ;;  %v2982_v29 = vpop.permute.xlu0 %2981  ;;  %v6503_v50 = vld [vmem:[#allocation29_spill] sm:$0xff] }
 0x739   : > { %v2988_v10 = vsel %vm6500_vm0, %v6083_v61, %v2978_v39  ;;  %v3023_v51 = vsub.f32 %v3015_v17, %v3019_v6  ;;  %v3020_v49 = vmul.f32 %v6031_v20, %v6031_v20  ;;  %vm6501_vm14 = vmmov %vm6500_vm0  ;;  %v3028_v32 = vmul.f32 %v5965_v59, %v5965_v59  ;;  %s243_s10 = scalar_lea.vmem [#allocation12], %s3764_s22  ;;  %s6186_s20 = scalar_lea.hbm %s6238_s4, %s5824_s5 }
 0x73a   : > { %v2996_v25 = vadd.f32 %v2988_v10, %v2912_v57  ;;  %v2913_v22 = vadd.f32 %v6028_v48, %v2881_v52  ;;  %v2882_v47 = vadd.f32 %v2874_v60, %v2798_v55  ;;  %v2989_v2 = vsel %vm6501_vm14, %v2980_v35, %v2982_v29  ;;  %vm6502_vm5 = vmmov %vm6500_vm0  ;;  %s3128_s22 = sshll.u32 %s243_s10, 4  ;;  %s3067_s25 = scalar_lea.sflag [#allocation13], %s3761_s14  ;;  %s6188_s22 = int_to_ptr.vmem [resolvable:$true] %s3128_s22 }
 0x73b   : > { %v3031_v46 = vsub.f32 %v3023_v51, %v3027_v19  ;;  %v3021_v48 = vmul.f32 %v6048_v9, %v6048_v9  ;;  %v3029_v59 = vmul.f32 %v6503_v50, %v6503_v50  ;;  %v3022_v62 = vmul.f32 %v6069_v8, %v6069_v8  ;;  %s3546_s11 = scalar_lea.vmem %s6188_s22, 512  ;;  %s3636_s30 = smov [#allocation12]  }
 0x73c   : > { %v3016_v26 = vmul.f32 %v5958_v30, %v2996_v25  ;;  %v2997_v31 = vadd.f32 %v2989_v2, %v2913_v22  ;;  %v2914_v5 = vadd.f32 %v6044_v58, %v2882_v47  ;;  %v2986_v24 = vpop.permute.xlu0 %2985  ;;  %v2984_v12 = vpop.permute.xlu1 %2983  ;;  %v6504_v58 = vld [vmem:[#allocation30_spill] sm:$0xff]  ;;  %p3547_p5 = scmp.ne.s32.totalorder %s6188_s22, %s3546_s11  ;;  %s3550_s23 = sshll.u32 %s3636_s30, 4  ;;  %s3551_s23 = int_to_ptr.vmem [resolvable:$false] %s3550_s23 }
 0x73d   : > { %v3035_v63 = vmul.f32 0.25, %v3031_v46  ;;  %v2990_v4 = vsel %vm6502_vm5, %v2984_v12, %v2986_v24  ;;  %v3030_v9 = vmul.f32 %v6504_v58, %v6504_v58  ;;  %s3552_s12 = scalar_lea.vmem %s3551_s23, 1024  ;;  %p3553_p10 = scmp.lt.s32.totalorder %s6188_s22, %s3551_s23 }
 0x73e   : > { %v3024_v13 = vsub.f32 %v3016_v26, %v3020_v49  ;;  %v3017_v30 = vmul.f32 %v5969_v0, %v2997_v31  ;;  %v2998_v34 = vadd.f32 %v2990_v4, %v2914_v5  ;;  %p3548_p7 = pnand %p3547_p5, %p6476_p12  ;;  %p3554_p0 = scmp.lt.s32.totalorder %s3552_s12, %s3546_s11 }
 0x73f   : > { %3047 = vst [vmem:[%s243_s10] sm:$0xff] %v3035_v63 }
 0x740   : > { %v3032_v20 = vsub.f32 %v3024_v13, %v3028_v32  ;;  %v3025_v3 = vsub.f32 %v3017_v30, %v3021_v48  ;;  %v3018_v0 = vmul.f32 %v5982_v54, %v2998_v34  ;;  %p3549_p8 = pneg %p3548_p7  ;;  %p3555_p2 = por %p3554_p0, %p3553_p10 }
 0x742   : > { %v3036_v53 = vmul.f32 0.25, %v3032_v20  ;;  %v3033_v7 = vsub.f32 %v3025_v3, %v3029_v59  ;;  %v3026_v27 = vsub.f32 %v3018_v0, %v3022_v62  ;;  %p3556_p9 = pnand %p3555_p2, %p3549_p8 }
 0x744   : > { %3048 = vst [vmem:[%s243_s10 + $0x8] sm:$0xff] %v3036_v53  ;;  %v3037_v28 = vmul.f32 0.25, %v3033_v7  ;;  %v3034_v37 = vsub.f32 %v3026_v27, %v3030_v9 }
 0x746   : > { %3049 = vst [vmem:[%s243_s10 + $0x10] sm:$0xff] %v3037_v28  ;;  %v3038_v42 = vmul.f32 0.25, %v3034_v37 }
 0x748   : > { %3050 = vst [vmem:[%s243_s10 + $0x18] sm:$0xff] %v3038_v42 }
 0x749   : > { %3559 = shalt.err (!%p3556_p9)
}
 0x74a   : > { %s3560_s5 = scalar_lea.hbm %s6186_s20, 512  ;;  %s3564_s26 = scalar_lea.hbm %s6238_s4, 1024 }
 0x74b   : > { %p3561_p1 = scmp.ne.s32.totalorder %s6186_s20, %s3560_s5  ;;  %p3565_p11 = scmp.lt.s32.totalorder %s6186_s20, %s6238_s4 }
 0x74c   : > { %p3566_p13 = scmp.lt.s32.totalorder %s3564_s26, %s3560_s5 }
 0x74d   : > { %p3562_p3 = pnand %p3561_p1, %p6476_p12 }
 0x74e   : > { %p3567_p4 = por %p3566_p13, %p3565_p11 }
 0x74f   : > { %p3563_p6 = pneg %p3562_p3 }
 0x751   : > { %p3568_p5 = pnand %p3567_p4, %p3563_p6 }
 0x753   : > { %3571 = shalt.err (!%p3568_p5)
}
 0x754   : > { %3340 = dma.vmem_to_hbm [thread:$0]  (%p6476_p12), %s6188_s22, 512, %s6186_s20, %s3067_s25, %s6499_s6, %s6499_s6, %s3633_s8  }
 0x755 PF: > { %s3143_s10 = sand.u32 1, %s3606_s15   ;;  %p6505_p7 = scmp.ne.s32.totalorder %s6282_s28, 0 }
 0x756   : > { %p6506_p8 = scmp.ge.s32.totalorder %s3618_s18, 2  ;;  %s3144_s7 = scalar_lea.sflag [#allocation7], %s3143_s10 }
 0x758   : > { %p3350_p10 = pnand %p6506_p8, %p6505_p7 }
 0x75a   : > { %p3351_p0 = pneg %p3350_p10 }
 0x75c   : > { %3593 = dma.done.wait (%p3351_p0), %s3144_s7, 512  }
 0x75d   : > { %3595 = vsyncadd (%p3351_p0), %s3144_s7, 4294966784  ;;  %s6507_s27 = sadd.s32 4294967294, %s3618_s18  }
 0x75e   : > { %s3152_s9 = sand.u32 1, %s6507_s27  }
 0x75f   : > { %s3153_s11 = scalar_lea.sflag [#allocation10], %s3152_s9 }
 0x760   : > { %3597 = dma.done.wait (%p3351_p0), %s3153_s11, 1024  }
 0x761   : > { %3599 = vsyncadd (%p3351_p0), %s3153_s11, 4294966272  ;;  %s3171_s30 = scalar_lea.sflag [#allocation13], %s3143_s10 }
 0x762   : > { %3601 = dma.done.wait (%p3351_p0), %s3171_s30, 512  }
 0x763   : > { %3603 = vsyncadd (%p3351_p0), %s3171_s30, 4294966784  ;;  %p24_p12 = scmp.ge.s32.totalorder %s3687_s21, 4   ;;  %s6508_s15 = smov %s3610_s16 }
 0x764   : > { %s6509_s16 = smov %s3614_s17  ;;  %s6510_s17 = smov %s3699_s24 }
 0x765   : > { %s6511_s18 = smov %s3687_s21  ;;  %26 = sbr.rel (!%p24_p12) target bundleno = 9 (0x9), region = 118 }
 0x76a   :  { %3176 = vsyncpa [#allocation6], 1 }
 0x76b   :  { %3178 = vsyncpa [#allocation6 + $0x1], 1 }
 0x76c   :  { %3179 = vsyncpa [#allocation7], 1 }
 0x76d   :  { %3181 = vsyncpa [#allocation7 + $0x1], 1 }
 0x76e   :  { %3182 = vsyncpa [#allocation10], 1 }
 0x76f   :  { %3184 = vsyncpa [#allocation10 + $0x1], 1 }
 0x770   :  { %3185 = vsyncpa [#allocation13], 1 }
 0x771   :  { %3187 = vsyncpa [#allocation13 + $0x1], 1 }

</bundles_post_ra>
